<compile_context>
chip_gen: v6e
topology: v6e:2x2x1
jax: 0.10.0
libtpu: 0.0.40
codegen_flags: <defaults>
</compile_context>

<pallas_src>
import functools

import jax
import jax.numpy as jnp
from jax.experimental import pallas as pl
from jax.experimental.pallas import tpu as pltpu


# -----------------------------------------------------------------------------
# Fused decoder kernel (one batch element per grid step)
# -----------------------------------------------------------------------------
def _layernorm(v, g, b, eps):
    mu = jnp.mean(v, axis=-1, keepdims=True)
    var = jnp.mean((v - mu) ** 2, axis=-1, keepdims=True)
    return (v - mu) * jax.lax.rsqrt(var + eps) * g + b


def _mm(a, w):
    # bf16 operands into the MXU, f32 accumulation.
    return jnp.dot(a.astype(w.dtype), w, preferred_element_type=jnp.float32)


def _decoder_kernel(x_ref,
                    ln1_g_ref, ln1_b_ref,
                    wq_ref, bq_ref, wk_ref, bk_ref, wv_ref, bv_ref,
                    wo_ref, bo_ref,
                    ln2_g_ref, ln2_b_ref,
                    w1_ref, b1_ref, w2_ref, b2_ref,
                    outw_ref, outb_ref,
                    o_ref,
                    *, num_blocks, num_heads, head_dim, eps):
    x = x_ref[0]                                   # (M, E) float32
    scale = 1.0 / (head_dim ** 0.5)

    for i in range(num_blocks):                    # static unroll over blocks
        # ---- Multi-head self-attention (pre-LN) ---------------------------
        xn = _layernorm(x, ln1_g_ref[i], ln1_b_ref[i], eps)

        attn = jnp.zeros_like(x)                   # (M, E) f32 accumulator
        for h in range(num_heads):                 # per-head weights: no lane slicing
            qh = _mm(xn, wq_ref[i, h]) + bq_ref[i, h]          # (M, hd)
            kh = _mm(xn, wk_ref[i, h]) + bk_ref[i, h]          # (M, hd)
            vh = _mm(xn, wv_ref[i, h]) + bv_ref[i, h]          # (M, hd)

            s = jnp.dot(qh, kh.T, preferred_element_type=jnp.float32) * scale
            s = s - jnp.max(s, axis=-1, keepdims=True)
            p = jnp.exp(s)
            p = p * pl.reciprocal(jnp.sum(p, axis=-1, keepdims=True), approx=True)

            oh = jnp.dot(p, vh, preferred_element_type=jnp.float32)   # (M, hd)
            # head-h rows of W_o map this head's output back into (M, E)
            attn = attn + _mm(oh, wo_ref[i, h])

        x = x + attn + bo_ref[i]

        # ---- MLP (pre-LN) ---------------------------------------------------
        xn2 = _layernorm(x, ln2_g_ref[i], ln2_b_ref[i], eps)
        h1 = _mm(xn2, w1_ref[i]) + b1_ref[i]
        h1 = jax.nn.gelu(h1, approximate=True)
        h2 = _mm(h1, w2_ref[i]) + b2_ref[i]
        x = x + h2

    # ---- final out_layer (fused into the same kernel) ----------------------
    o_ref[0] = (_mm(x, outw_ref[...]) + outb_ref[...]).astype(o_ref.dtype)


# -----------------------------------------------------------------------------
# Wrapper (pallas_call plumbing)
# -----------------------------------------------------------------------------
_STACKED_NAMES = ("ln1_g", "ln1_b",
                  "wq", "bq", "wk", "bk", "wv", "bv",
                  "wo", "bo",
                  "ln2_g", "ln2_b",
                  "w1", "b1", "w2", "b2")


def _const_spec(arr):
    nd = arr.ndim
    return pl.BlockSpec(arr.shape, lambda n, _nd=nd: (0,) * _nd)   # grid-resident


def decoder_forward(x, params, *, num_heads, eps=1e-5):
    N, M, E = x.shape
    head_dim = E // num_heads
    num_blocks = params["wq"].shape[0]
    F = params["out_w"].shape[-1]

    stacked = [params[name] for name in _STACKED_NAMES]
    kernel = functools.partial(_decoder_kernel,
                               num_blocks=num_blocks, num_heads=num_heads,
                               head_dim=head_dim, eps=eps)

    in_specs = ([pl.BlockSpec((1, M, E), lambda n: (n, 0, 0))]
                + [_const_spec(w) for w in stacked]
                + [_const_spec(params["out_w"]), _const_spec(params["out_b"])])

    return pl.pallas_call(
        kernel,
        out_shape=jax.ShapeDtypeStruct((N, M, F), jnp.float32),
        grid=(N,),
        in_specs=in_specs,
        out_specs=pl.BlockSpec((1, M, F), lambda n: (n, 0, 0)),
        compiler_params=pltpu.CompilerParams(
            dimension_semantics=("parallel",)),       # 2 TCs on v7x
    )(x, *stacked, params["out_w"], params["out_b"])


# -----------------------------------------------------------------------------
# Parameter construction (deterministic, synthetic, head-split packing)
# -----------------------------------------------------------------------------
def init_decoder_params(key, *, in_dim, out_dim, final_out, num_blocks,
                        emb_size, num_heads, param_dtype=jnp.bfloat16):
    assert out_dim == emb_size, "residual stacking requires out_dim == emb_size"
    assert emb_size % num_heads == 0
    E, Hm, hd, B = emb_size, in_dim, emb_size // num_heads, num_blocks

    keys = jax.random.split(key, 6 * B + 1)
    wq, wk, wv, wo, w1, w2 = [], [], [], [], [], []
    for b in range(B):
        kq, kk, kv, ko, k1, k2 = keys[6 * b:6 * b + 6]
        wq_full = 0.02 * jax.random.normal(kq, (E, E), jnp.float32)
        wk_full = 0.02 * jax.random.normal(kk, (E, E), jnp.float32)
        wv_full = 0.02 * jax.random.normal(kv, (E, E), jnp.float32)
        wo_full = 0.02 * jax.random.normal(ko, (E, E), jnp.float32)
        # split Q/K/V columns per head: (E, E) -> (heads, E, hd)
        wq.append(wq_full.reshape(E, num_heads, hd).transpose(1, 0, 2))
        wk.append(wk_full.reshape(E, num_heads, hd).transpose(1, 0, 2))
        wv.append(wv_full.reshape(E, num_heads, hd).transpose(1, 0, 2))
        # split W_o rows per head: (E, E) -> (heads, hd, E)
        wo.append(wo_full.reshape(num_heads, hd, E))
        w1.append(0.02 * jax.random.normal(k1, (E, Hm), jnp.float32))
        w2.append(0.02 * jax.random.normal(k2, (Hm, out_dim), jnp.float32))

    p = {
        "ln1_g": jnp.ones((B, 1, E), jnp.float32),
        "ln1_b": jnp.zeros((B, 1, E), jnp.float32),
        "ln2_g": jnp.ones((B, 1, E), jnp.float32),
        "ln2_b": jnp.zeros((B, 1, E), jnp.float32),
        "wq": jnp.stack(wq).astype(param_dtype),
        "wk": jnp.stack(wk).astype(param_dtype),
        "wv": jnp.stack(wv).astype(param_dtype),
        "wo": jnp.stack(wo).astype(param_dtype),
        "bq": jnp.zeros((B, num_heads, 1, hd), jnp.float32),
        "bk": jnp.zeros((B, num_heads, 1, hd), jnp.float32),
        "bv": jnp.zeros((B, num_heads, 1, hd), jnp.float32),
        "bo": jnp.zeros((B, 1, E), jnp.float32),
        "w1": jnp.stack(w1).astype(param_dtype),
        "b1": jnp.zeros((B, 1, Hm), jnp.float32),
        "w2": jnp.stack(w2).astype(param_dtype),
        "b2": jnp.zeros((B, 1, out_dim), jnp.float32),
        "out_w": (0.02 * jax.random.normal(keys[-1], (out_dim, final_out),
                                           jnp.float32)).astype(param_dtype),
        "out_b": jnp.zeros((1, final_out), jnp.float32),
    }
    return p


# -----------------------------------------------------------------------------
# Pure-JAX reference (same packed params, same math) for a correctness check
# -----------------------------------------------------------------------------
def decoder_reference(x, p, *, num_heads, eps=1e-5):
    N, M, E = x.shape
    B = p["wq"].shape[0]
    hd = E // num_heads
    scale = 1.0 / (hd ** 0.5)

    def mm(a, w):
        return jnp.dot(a.astype(w.dtype), w, preferred_element_type=jnp.float32)

    def ln(v, g, b):
        mu = jnp.mean(v, -1, keepdims=True)
        var = jnp.mean((v - mu) ** 2, -1, keepdims=True)
        return (v - mu) * jax.lax.rsqrt(var + eps) * g + b

    outs = []
    for n in range(N):
        xb = x[n]
        for i in range(B):
            xn = ln(xb, p["ln1_g"][i], p["ln1_b"][i])
            attn = jnp.zeros_like(xb)
            for h in range(num_heads):
                qh = mm(xn, p["wq"][i, h]) + p["bq"][i, h]
                kh = mm(xn, p["wk"][i, h]) + p["bk"][i, h]
                vh = mm(xn, p["wv"][i, h]) + p["bv"][i, h]
                s = jnp.dot(qh, kh.T, preferred_element_type=jnp.float32) * scale
                pm = jax.nn.softmax(s, axis=-1)
                attn = attn + mm(jnp.dot(pm, vh,
                                         preferred_element_type=jnp.float32),
                                 p["wo"][i, h])
            xb = xb + attn + p["bo"][i]
            xn2 = ln(xb, p["ln2_g"][i], p["ln2_b"][i])
            h1 = jax.nn.gelu(mm(xn2, p["w1"][i]) + p["b1"][i], approximate=True)
            xb = xb + mm(h1, p["w2"][i]) + p["b2"][i]
        outs.append(mm(xb, p["out_w"]) + p["out_b"])
    return jnp.stack(outs)


# -----------------------------------------------------------------------------
if __name__ == "__main__":
    # Small, module-consistent shapes.
    N, M = 2, 8                 # batch, tokens
    EMB = 32                    # emb_size
    NUM_HEADS = 4
    IN_DIM = 64                 # MLP hidden
    OUT_DIM = EMB               # block output dim (== emb for residual stack)
    FINAL_OUT = 16
    NUM_BLOCKS = 4

    key = jax.random.PRNGKey(0)
    key, kx = jax.random.split(key)
    x = jax.random.normal(kx, (N, M, EMB), jnp.float32)

    params = init_decoder_params(key, in_dim=IN_DIM, out_dim=OUT_DIM,
                                 final_out=FINAL_OUT, num_blocks=NUM_BLOCKS,
                                 emb_size=EMB, num_heads=NUM_HEADS)

    out = decoder_forward(x, params, num_heads=NUM_HEADS)
    out = jax.block_until_ready(out)
    assert out.shape == (N, M, FINAL_OUT), out.shape
    assert bool(jnp.all(jnp.isfinite(out)))

    ref = decoder_reference(x, params, num_heads=NUM_HEADS)
    max_err = float(jnp.max(jnp.abs(out - ref)))
    assert bool(jnp.allclose(out, ref, rtol=2e-2, atol=2e-2)), max_err

    print("KERNEL_OK")
</pallas_src>

<mosaic_0001>
module attributes {stable_mosaic.version = 11 : i64} {
  func.func @_decoder_kernel(%arg0: i32, %arg1: memref<1x8x32xf32, #tpu.memory_space<vmem>>, %arg2: memref<4x1x32xf32, #tpu.memory_space<vmem>>, %arg3: memref<4x1x32xf32, #tpu.memory_space<vmem>>, %arg4: memref<4x4x32x8xbf16, #tpu.memory_space<vmem>>, %arg5: memref<4x4x1x8xf32, #tpu.memory_space<vmem>>, %arg6: memref<4x4x32x8xbf16, #tpu.memory_space<vmem>>, %arg7: memref<4x4x1x8xf32, #tpu.memory_space<vmem>>, %arg8: memref<4x4x32x8xbf16, #tpu.memory_space<vmem>>, %arg9: memref<4x4x1x8xf32, #tpu.memory_space<vmem>>, %arg10: memref<4x4x8x32xbf16, #tpu.memory_space<vmem>>, %arg11: memref<4x1x32xf32, #tpu.memory_space<vmem>>, %arg12: memref<4x1x32xf32, #tpu.memory_space<vmem>>, %arg13: memref<4x1x32xf32, #tpu.memory_space<vmem>>, %arg14: memref<4x32x64xbf16, #tpu.memory_space<vmem>>, %arg15: memref<4x1x64xf32, #tpu.memory_space<vmem>>, %arg16: memref<4x64x32xbf16, #tpu.memory_space<vmem>>, %arg17: memref<4x1x32xf32, #tpu.memory_space<vmem>>, %arg18: memref<32x16xbf16, #tpu.memory_space<vmem>>, %arg19: memref<1x16xf32, #tpu.memory_space<vmem>>, %arg20: memref<1x8x16xf32, #tpu.memory_space<vmem>>) attributes {dimension_semantics = [#tpu.dimension_semantics<parallel>], iteration_bounds = array<i64: 2>, scalar_prefetch = 0 : i64, scratch_operands = 0 : i64, tpu.core_type = #tpu.core_type<tc>, window_params = [{transform_indices = @transform_0, window_bounds = array<i64: 1, 8, 32>}, {pipeline_mode = #tpu.pipeline_mode<synchronous>, transform_indices = @transform_1, window_bounds = array<i64: 4, 1, 32>}, {pipeline_mode = #tpu.pipeline_mode<synchronous>, transform_indices = @transform_2, window_bounds = array<i64: 4, 1, 32>}, {pipeline_mode = #tpu.pipeline_mode<synchronous>, transform_indices = @transform_3, window_bounds = array<i64: 4, 4, 32, 8>}, {pipeline_mode = #tpu.pipeline_mode<synchronous>, transform_indices = @transform_4, window_bounds = array<i64: 4, 4, 1, 8>}, {pipeline_mode = #tpu.pipeline_mode<synchronous>, transform_indices = @transform_5, window_bounds = array<i64: 4, 4, 32, 8>}, {pipeline_mode = #tpu.pipeline_mode<synchronous>, transform_indices = @transform_6, window_bounds = array<i64: 4, 4, 1, 8>}, {pipeline_mode = #tpu.pipeline_mode<synchronous>, transform_indices = @transform_7, window_bounds = array<i64: 4, 4, 32, 8>}, {pipeline_mode = #tpu.pipeline_mode<synchronous>, transform_indices = @transform_8, window_bounds = array<i64: 4, 4, 1, 8>}, {pipeline_mode = #tpu.pipeline_mode<synchronous>, transform_indices = @transform_9, window_bounds = array<i64: 4, 4, 8, 32>}, {pipeline_mode = #tpu.pipeline_mode<synchronous>, transform_indices = @transform_10, window_bounds = array<i64: 4, 1, 32>}, {pipeline_mode = #tpu.pipeline_mode<synchronous>, transform_indices = @transform_11, window_bounds = array<i64: 4, 1, 32>}, {pipeline_mode = #tpu.pipeline_mode<synchronous>, transform_indices = @transform_12, window_bounds = array<i64: 4, 1, 32>}, {pipeline_mode = #tpu.pipeline_mode<synchronous>, transform_indices = @transform_13, window_bounds = array<i64: 4, 32, 64>}, {pipeline_mode = #tpu.pipeline_mode<synchronous>, transform_indices = @transform_14, window_bounds = array<i64: 4, 1, 64>}, {pipeline_mode = #tpu.pipeline_mode<synchronous>, transform_indices = @transform_15, window_bounds = array<i64: 4, 64, 32>}, {pipeline_mode = #tpu.pipeline_mode<synchronous>, transform_indices = @transform_16, window_bounds = array<i64: 4, 1, 32>}, {pipeline_mode = #tpu.pipeline_mode<synchronous>, transform_indices = @transform_17, window_bounds = array<i64: 32, 16>}, {pipeline_mode = #tpu.pipeline_mode<synchronous>, transform_indices = @transform_18, window_bounds = array<i64: 1, 16>}, {transform_indices = @transform_19, window_bounds = array<i64: 1, 8, 16>}]} {
    %c0 = arith.constant 0 : index
    %c0_0 = arith.constant 0 : index
    %c0_1 = arith.constant 0 : index
    %0 = vector.load %arg1[%c0, %c0_0, %c0_1] : memref<1x8x32xf32, #tpu.memory_space<vmem>>, vector<1x8x32xf32>
    %1 = vector.shape_cast %0 : vector<1x8x32xf32> to vector<8x32xf32>
    %c0_2 = arith.constant 0 : index
    %c0_3 = arith.constant 0 : index
    %c0_4 = arith.constant 0 : index
    %2 = vector.load %arg2[%c0_2, %c0_3, %c0_4] : memref<4x1x32xf32, #tpu.memory_space<vmem>>, vector<1x1x32xf32>
    %3 = vector.shape_cast %2 : vector<1x1x32xf32> to vector<1x32xf32>
    %c0_5 = arith.constant 0 : index
    %c0_6 = arith.constant 0 : index
    %c0_7 = arith.constant 0 : index
    %4 = vector.load %arg3[%c0_5, %c0_6, %c0_7] : memref<4x1x32xf32, #tpu.memory_space<vmem>>, vector<1x1x32xf32>
    %5 = vector.shape_cast %4 : vector<1x1x32xf32> to vector<1x32xf32>
    %cst = arith.constant dense<0.000000e+00> : vector<8xf32>
    %6 = vector.multi_reduction <add>, %1, %cst [1] : vector<8x32xf32> to vector<8xf32>
    %7 = vector.shape_cast %6 : vector<8xf32> to vector<8x1xf32>
    %cst_8 = arith.constant 3.200000e+01 : f32
    %8 = vector.broadcast %cst_8 : f32 to vector<8x1xf32>
    %9 = arith.divf %7, %8 : vector<8x1xf32>
    %10 = vector.broadcast %9 : vector<8x1xf32> to vector<8x32xf32>
    %11 = arith.subf %1, %10 : vector<8x32xf32>
    %12 = arith.mulf %11, %11 : vector<8x32xf32>
    %cst_9 = arith.constant dense<0.000000e+00> : vector<8xf32>
    %13 = vector.multi_reduction <add>, %12, %cst_9 [1] : vector<8x32xf32> to vector<8xf32>
    %14 = vector.shape_cast %13 : vector<8xf32> to vector<8x1xf32>
    %cst_10 = arith.constant 3.200000e+01 : f32
    %15 = vector.broadcast %cst_10 : f32 to vector<8x1xf32>
    %16 = arith.divf %14, %15 : vector<8x1xf32>
    %17 = vector.broadcast %9 : vector<8x1xf32> to vector<8x32xf32>
    %18 = arith.subf %1, %17 : vector<8x32xf32>
    %cst_11 = arith.constant 9.99999974E-6 : f32
    %19 = vector.broadcast %cst_11 : f32 to vector<8x1xf32>
    %20 = arith.addf %16, %19 : vector<8x1xf32>
    %21 = math.rsqrt %20 : vector<8x1xf32>
    %22 = vector.broadcast %21 : vector<8x1xf32> to vector<8x32xf32>
    %23 = arith.mulf %18, %22 : vector<8x32xf32>
    %24 = vector.broadcast %3 : vector<1x32xf32> to vector<8x32xf32>
    %25 = arith.mulf %23, %24 : vector<8x32xf32>
    %26 = vector.broadcast %5 : vector<1x32xf32> to vector<8x32xf32>
    %27 = arith.addf %25, %26 : vector<8x32xf32>
    %cst_12 = arith.constant 0.000000e+00 : f32
    %28 = vector.broadcast %cst_12 : f32 to vector<8x32xf32>
    %c0_13 = arith.constant 0 : index
    %c0_14 = arith.constant 0 : index
    %c0_15 = arith.constant 0 : index
    %c0_16 = arith.constant 0 : index
    %29 = vector.load %arg4[%c0_13, %c0_14, %c0_15, %c0_16] : memref<4x4x32x8xbf16, #tpu.memory_space<vmem>>, vector<1x1x32x8xbf16>
    %30 = vector.shape_cast %29 : vector<1x1x32x8xbf16> to vector<32x8xbf16>
    %31 = arith.truncf %27 : vector<8x32xf32> to vector<8x32xbf16>
    %cst_17 = arith.constant dense<0.000000e+00> : vector<8x8xf32>
    %32 = tpu.matmul %31, %30, %cst_17 {dimension_numbers = #tpu.dot_dimension_numbers<[1], [0], [0], [1], [0, 0, 1, 1], [], []>} : vector<8x32xbf16>, vector<32x8xbf16>, vector<8x8xf32> -> vector<8x8xf32>
    %c0_18 = arith.constant 0 : index
    %c0_19 = arith.constant 0 : index
    %c0_20 = arith.constant 0 : index
    %c0_21 = arith.constant 0 : index
    %33 = vector.load %arg5[%c0_18, %c0_19, %c0_20, %c0_21] : memref<4x4x1x8xf32, #tpu.memory_space<vmem>>, vector<1x1x1x8xf32>
    %34 = vector.shape_cast %33 : vector<1x1x1x8xf32> to vector<1x8xf32>
    %35 = vector.broadcast %34 : vector<1x8xf32> to vector<8x8xf32>
    %36 = arith.addf %32, %35 : vector<8x8xf32>
    %c0_22 = arith.constant 0 : index
    %c0_23 = arith.constant 0 : index
    %c0_24 = arith.constant 0 : index
    %c0_25 = arith.constant 0 : index
    %37 = vector.load %arg6[%c0_22, %c0_23, %c0_24, %c0_25] : memref<4x4x32x8xbf16, #tpu.memory_space<vmem>>, vector<1x1x32x8xbf16>
    %38 = vector.shape_cast %37 : vector<1x1x32x8xbf16> to vector<32x8xbf16>
    %39 = arith.truncf %27 : vector<8x32xf32> to vector<8x32xbf16>
    %cst_26 = arith.constant dense<0.000000e+00> : vector<8x8xf32>
    %40 = tpu.matmul %39, %38, %cst_26 {dimension_numbers = #tpu.dot_dimension_numbers<[1], [0], [0], [1], [0, 0, 1, 1], [], []>} : vector<8x32xbf16>, vector<32x8xbf16>, vector<8x8xf32> -> vector<8x8xf32>
    %c0_27 = arith.constant 0 : index
    %c0_28 = arith.constant 0 : index
    %c0_29 = arith.constant 0 : index
    %c0_30 = arith.constant 0 : index
    %41 = vector.load %arg7[%c0_27, %c0_28, %c0_29, %c0_30] : memref<4x4x1x8xf32, #tpu.memory_space<vmem>>, vector<1x1x1x8xf32>
    %42 = vector.shape_cast %41 : vector<1x1x1x8xf32> to vector<1x8xf32>
    %43 = vector.broadcast %42 : vector<1x8xf32> to vector<8x8xf32>
    %44 = arith.addf %40, %43 : vector<8x8xf32>
    %c0_31 = arith.constant 0 : index
    %c0_32 = arith.constant 0 : index
    %c0_33 = arith.constant 0 : index
    %c0_34 = arith.constant 0 : index
    %45 = vector.load %arg8[%c0_31, %c0_32, %c0_33, %c0_34] : memref<4x4x32x8xbf16, #tpu.memory_space<vmem>>, vector<1x1x32x8xbf16>
    %46 = vector.shape_cast %45 : vector<1x1x32x8xbf16> to vector<32x8xbf16>
    %47 = arith.truncf %27 : vector<8x32xf32> to vector<8x32xbf16>
    %cst_35 = arith.constant dense<0.000000e+00> : vector<8x8xf32>
    %48 = tpu.matmul %47, %46, %cst_35 {dimension_numbers = #tpu.dot_dimension_numbers<[1], [0], [0], [1], [0, 0, 1, 1], [], []>} : vector<8x32xbf16>, vector<32x8xbf16>, vector<8x8xf32> -> vector<8x8xf32>
    %c0_36 = arith.constant 0 : index
    %c0_37 = arith.constant 0 : index
    %c0_38 = arith.constant 0 : index
    %c0_39 = arith.constant 0 : index
    %49 = vector.load %arg9[%c0_36, %c0_37, %c0_38, %c0_39] : memref<4x4x1x8xf32, #tpu.memory_space<vmem>>, vector<1x1x1x8xf32>
    %50 = vector.shape_cast %49 : vector<1x1x1x8xf32> to vector<1x8xf32>
    %51 = vector.broadcast %50 : vector<1x8xf32> to vector<8x8xf32>
    %52 = arith.addf %48, %51 : vector<8x8xf32>
    %53 = tpu.transpose %44, [1, 0] : vector<8x8xf32> -> vector<8x8xf32>
    %cst_40 = arith.constant dense<0.000000e+00> : vector<8x8xf32>
    %54 = tpu.matmul %36, %53, %cst_40 {dimension_numbers = #tpu.dot_dimension_numbers<[1], [0], [0], [1], [0, 0, 1, 1], [], []>} : vector<8x8xf32>, vector<8x8xf32>, vector<8x8xf32> -> vector<8x8xf32>
    %cst_41 = arith.constant 0.353553385 : f32
    %55 = vector.broadcast %cst_41 : f32 to vector<8x8xf32>
    %56 = arith.mulf %54, %55 : vector<8x8xf32>
    %cst_42 = arith.constant dense<0xFF800000> : vector<8xf32>
    %57 = vector.multi_reduction <maximumf>, %56, %cst_42 [1] : vector<8x8xf32> to vector<8xf32>
    %58 = vector.shape_cast %57 : vector<8xf32> to vector<8x1xf32>
    %59 = vector.broadcast %58 : vector<8x1xf32> to vector<8x8xf32>
    %60 = arith.subf %56, %59 : vector<8x8xf32>
    %61 = math.exp %60 : vector<8x8xf32>
    %cst_43 = arith.constant dense<0.000000e+00> : vector<8xf32>
    %62 = vector.multi_reduction <add>, %61, %cst_43 [1] : vector<8x8xf32> to vector<8xf32>
    %63 = vector.shape_cast %62 : vector<8xf32> to vector<8x1xf32>
    %64 = tpu.reciprocal %63 {approx = true} : vector<8x1xf32> -> vector<8x1xf32>
    %65 = vector.broadcast %64 : vector<8x1xf32> to vector<8x8xf32>
    %66 = arith.mulf %61, %65 : vector<8x8xf32>
    %cst_44 = arith.constant dense<0.000000e+00> : vector<8x8xf32>
    %67 = tpu.matmul %66, %52, %cst_44 {dimension_numbers = #tpu.dot_dimension_numbers<[1], [0], [0], [1], [0, 0, 1, 1], [], []>} : vector<8x8xf32>, vector<8x8xf32>, vector<8x8xf32> -> vector<8x8xf32>
    %c0_45 = arith.constant 0 : index
    %c0_46 = arith.constant 0 : index
    %c0_47 = arith.constant 0 : index
    %c0_48 = arith.constant 0 : index
    %68 = vector.load %arg10[%c0_45, %c0_46, %c0_47, %c0_48] : memref<4x4x8x32xbf16, #tpu.memory_space<vmem>>, vector<1x1x8x32xbf16>
    %69 = vector.shape_cast %68 : vector<1x1x8x32xbf16> to vector<8x32xbf16>
    %70 = arith.truncf %67 : vector<8x8xf32> to vector<8x8xbf16>
    %cst_49 = arith.constant dense<0.000000e+00> : vector<8x32xf32>
    %71 = tpu.matmul %70, %69, %cst_49 {dimension_numbers = #tpu.dot_dimension_numbers<[1], [0], [0], [1], [0, 0, 1, 1], [], []>} : vector<8x8xbf16>, vector<8x32xbf16>, vector<8x32xf32> -> vector<8x32xf32>
    %72 = arith.addf %28, %71 : vector<8x32xf32>
    %c0_50 = arith.constant 0 : index
    %c1 = arith.constant 1 : index
    %c0_51 = arith.constant 0 : index
    %c0_52 = arith.constant 0 : index
    %73 = vector.load %arg4[%c0_50, %c1, %c0_51, %c0_52] : memref<4x4x32x8xbf16, #tpu.memory_space<vmem>>, vector<1x1x32x8xbf16>
    %74 = vector.shape_cast %73 : vector<1x1x32x8xbf16> to vector<32x8xbf16>
    %75 = arith.truncf %27 : vector<8x32xf32> to vector<8x32xbf16>
    %cst_53 = arith.constant dense<0.000000e+00> : vector<8x8xf32>
    %76 = tpu.matmul %75, %74, %cst_53 {dimension_numbers = #tpu.dot_dimension_numbers<[1], [0], [0], [1], [0, 0, 1, 1], [], []>} : vector<8x32xbf16>, vector<32x8xbf16>, vector<8x8xf32> -> vector<8x8xf32>
    %c0_54 = arith.constant 0 : index
    %c1_55 = arith.constant 1 : index
    %c0_56 = arith.constant 0 : index
    %c0_57 = arith.constant 0 : index
    %77 = vector.load %arg5[%c0_54, %c1_55, %c0_56, %c0_57] : memref<4x4x1x8xf32, #tpu.memory_space<vmem>>, vector<1x1x1x8xf32>
    %78 = vector.shape_cast %77 : vector<1x1x1x8xf32> to vector<1x8xf32>
    %79 = vector.broadcast %78 : vector<1x8xf32> to vector<8x8xf32>
    %80 = arith.addf %76, %79 : vector<8x8xf32>
    %c0_58 = arith.constant 0 : index
    %c1_59 = arith.constant 1 : index
    %c0_60 = arith.constant 0 : index
    %c0_61 = arith.constant 0 : index
    %81 = vector.load %arg6[%c0_58, %c1_59, %c0_60, %c0_61] : memref<4x4x32x8xbf16, #tpu.memory_space<vmem>>, vector<1x1x32x8xbf16>
    %82 = vector.shape_cast %81 : vector<1x1x32x8xbf16> to vector<32x8xbf16>
    %83 = arith.truncf %27 : vector<8x32xf32> to vector<8x32xbf16>
    %cst_62 = arith.constant dense<0.000000e+00> : vector<8x8xf32>
    %84 = tpu.matmul %83, %82, %cst_62 {dimension_numbers = #tpu.dot_dimension_numbers<[1], [0], [0], [1], [0, 0, 1, 1], [], []>} : vector<8x32xbf16>, vector<32x8xbf16>, vector<8x8xf32> -> vector<8x8xf32>
    %c0_63 = arith.constant 0 : index
    %c1_64 = arith.constant 1 : index
    %c0_65 = arith.constant 0 : index
    %c0_66 = arith.constant 0 : index
    %85 = vector.load %arg7[%c0_63, %c1_64, %c0_65, %c0_66] : memref<4x4x1x8xf32, #tpu.memory_space<vmem>>, vector<1x1x1x8xf32>
    %86 = vector.shape_cast %85 : vector<1x1x1x8xf32> to vector<1x8xf32>
    %87 = vector.broadcast %86 : vector<1x8xf32> to vector<8x8xf32>
    %88 = arith.addf %84, %87 : vector<8x8xf32>
    %c0_67 = arith.constant 0 : index
    %c1_68 = arith.constant 1 : index
    %c0_69 = arith.constant 0 : index
    %c0_70 = arith.constant 0 : index
    %89 = vector.load %arg8[%c0_67, %c1_68, %c0_69, %c0_70] : memref<4x4x32x8xbf16, #tpu.memory_space<vmem>>, vector<1x1x32x8xbf16>
    %90 = vector.shape_cast %89 : vector<1x1x32x8xbf16> to vector<32x8xbf16>
    %91 = arith.truncf %27 : vector<8x32xf32> to vector<8x32xbf16>
    %cst_71 = arith.constant dense<0.000000e+00> : vector<8x8xf32>
    %92 = tpu.matmul %91, %90, %cst_71 {dimension_numbers = #tpu.dot_dimension_numbers<[1], [0], [0], [1], [0, 0, 1, 1], [], []>} : vector<8x32xbf16>, vector<32x8xbf16>, vector<8x8xf32> -> vector<8x8xf32>
    %c0_72 = arith.constant 0 : index
    %c1_73 = arith.constant 1 : index
    %c0_74 = arith.constant 0 : index
    %c0_75 = arith.constant 0 : index
    %93 = vector.load %arg9[%c0_72, %c1_73, %c0_74, %c0_75] : memref<4x4x1x8xf32, #tpu.memory_space<vmem>>, vector<1x1x1x8xf32>
    %94 = vector.shape_cast %93 : vector<1x1x1x8xf32> to vector<1x8xf32>
    %95 = vector.broadcast %94 : vector<1x8xf32> to vector<8x8xf32>
    %96 = arith.addf %92, %95 : vector<8x8xf32>
    %97 = tpu.transpose %88, [1, 0] : vector<8x8xf32> -> vector<8x8xf32>
    %cst_76 = arith.constant dense<0.000000e+00> : vector<8x8xf32>
    %98 = tpu.matmul %80, %97, %cst_76 {dimension_numbers = #tpu.dot_dimension_numbers<[1], [0], [0], [1], [0, 0, 1, 1], [], []>} : vector<8x8xf32>, vector<8x8xf32>, vector<8x8xf32> -> vector<8x8xf32>
    %cst_77 = arith.constant 0.353553385 : f32
    %99 = vector.broadcast %cst_77 : f32 to vector<8x8xf32>
    %100 = arith.mulf %98, %99 : vector<8x8xf32>
    %cst_78 = arith.constant dense<0xFF800000> : vector<8xf32>
    %101 = vector.multi_reduction <maximumf>, %100, %cst_78 [1] : vector<8x8xf32> to vector<8xf32>
    %102 = vector.shape_cast %101 : vector<8xf32> to vector<8x1xf32>
    %103 = vector.broadcast %102 : vector<8x1xf32> to vector<8x8xf32>
    %104 = arith.subf %100, %103 : vector<8x8xf32>
    %105 = math.exp %104 : vector<8x8xf32>
    %cst_79 = arith.constant dense<0.000000e+00> : vector<8xf32>
    %106 = vector.multi_reduction <add>, %105, %cst_79 [1] : vector<8x8xf32> to vector<8xf32>
    %107 = vector.shape_cast %106 : vector<8xf32> to vector<8x1xf32>
    %108 = tpu.reciprocal %107 {approx = true} : vector<8x1xf32> -> vector<8x1xf32>
    %109 = vector.broadcast %108 : vector<8x1xf32> to vector<8x8xf32>
    %110 = arith.mulf %105, %109 : vector<8x8xf32>
    %cst_80 = arith.constant dense<0.000000e+00> : vector<8x8xf32>
    %111 = tpu.matmul %110, %96, %cst_80 {dimension_numbers = #tpu.dot_dimension_numbers<[1], [0], [0], [1], [0, 0, 1, 1], [], []>} : vector<8x8xf32>, vector<8x8xf32>, vector<8x8xf32> -> vector<8x8xf32>
    %c0_81 = arith.constant 0 : index
    %c1_82 = arith.constant 1 : index
    %c0_83 = arith.constant 0 : index
    %c0_84 = arith.constant 0 : index
    %112 = vector.load %arg10[%c0_81, %c1_82, %c0_83, %c0_84] : memref<4x4x8x32xbf16, #tpu.memory_space<vmem>>, vector<1x1x8x32xbf16>
    %113 = vector.shape_cast %112 : vector<1x1x8x32xbf16> to vector<8x32xbf16>
    %114 = arith.truncf %111 : vector<8x8xf32> to vector<8x8xbf16>
    %cst_85 = arith.constant dense<0.000000e+00> : vector<8x32xf32>
    %115 = tpu.matmul %114, %113, %cst_85 {dimension_numbers = #tpu.dot_dimension_numbers<[1], [0], [0], [1], [0, 0, 1, 1], [], []>} : vector<8x8xbf16>, vector<8x32xbf16>, vector<8x32xf32> -> vector<8x32xf32>
    %116 = arith.addf %72, %115 : vector<8x32xf32>
    %c0_86 = arith.constant 0 : index
    %c2 = arith.constant 2 : index
    %c0_87 = arith.constant 0 : index
    %c0_88 = arith.constant 0 : index
    %117 = vector.load %arg4[%c0_86, %c2, %c0_87, %c0_88] : memref<4x4x32x8xbf16, #tpu.memory_space<vmem>>, vector<1x1x32x8xbf16>
    %118 = vector.shape_cast %117 : vector<1x1x32x8xbf16> to vector<32x8xbf16>
    %119 = arith.truncf %27 : vector<8x32xf32> to vector<8x32xbf16>
    %cst_89 = arith.constant dense<0.000000e+00> : vector<8x8xf32>
    %120 = tpu.matmul %119, %118, %cst_89 {dimension_numbers = #tpu.dot_dimension_numbers<[1], [0], [0], [1], [0, 0, 1, 1], [], []>} : vector<8x32xbf16>, vector<32x8xbf16>, vector<8x8xf32> -> vector<8x8xf32>
    %c0_90 = arith.constant 0 : index
    %c2_91 = arith.constant 2 : index
    %c0_92 = arith.constant 0 : index
    %c0_93 = arith.constant 0 : index
    %121 = vector.load %arg5[%c0_90, %c2_91, %c0_92, %c0_93] : memref<4x4x1x8xf32, #tpu.memory_space<vmem>>, vector<1x1x1x8xf32>
    %122 = vector.shape_cast %121 : vector<1x1x1x8xf32> to vector<1x8xf32>
    %123 = vector.broadcast %122 : vector<1x8xf32> to vector<8x8xf32>
    %124 = arith.addf %120, %123 : vector<8x8xf32>
    %c0_94 = arith.constant 0 : index
    %c2_95 = arith.constant 2 : index
    %c0_96 = arith.constant 0 : index
    %c0_97 = arith.constant 0 : index
    %125 = vector.load %arg6[%c0_94, %c2_95, %c0_96, %c0_97] : memref<4x4x32x8xbf16, #tpu.memory_space<vmem>>, vector<1x1x32x8xbf16>
    %126 = vector.shape_cast %125 : vector<1x1x32x8xbf16> to vector<32x8xbf16>
    %127 = arith.truncf %27 : vector<8x32xf32> to vector<8x32xbf16>
    %cst_98 = arith.constant dense<0.000000e+00> : vector<8x8xf32>
    %128 = tpu.matmul %127, %126, %cst_98 {dimension_numbers = #tpu.dot_dimension_numbers<[1], [0], [0], [1], [0, 0, 1, 1], [], []>} : vector<8x32xbf16>, vector<32x8xbf16>, vector<8x8xf32> -> vector<8x8xf32>
    %c0_99 = arith.constant 0 : index
    %c2_100 = arith.constant 2 : index
    %c0_101 = arith.constant 0 : index
    %c0_102 = arith.constant 0 : index
    %129 = vector.load %arg7[%c0_99, %c2_100, %c0_101, %c0_102] : memref<4x4x1x8xf32, #tpu.memory_space<vmem>>, vector<1x1x1x8xf32>
    %130 = vector.shape_cast %129 : vector<1x1x1x8xf32> to vector<1x8xf32>
    %131 = vector.broadcast %130 : vector<1x8xf32> to vector<8x8xf32>
    %132 = arith.addf %128, %131 : vector<8x8xf32>
    %c0_103 = arith.constant 0 : index
    %c2_104 = arith.constant 2 : index
    %c0_105 = arith.constant 0 : index
    %c0_106 = arith.constant 0 : index
    %133 = vector.load %arg8[%c0_103, %c2_104, %c0_105, %c0_106] : memref<4x4x32x8xbf16, #tpu.memory_space<vmem>>, vector<1x1x32x8xbf16>
    %134 = vector.shape_cast %133 : vector<1x1x32x8xbf16> to vector<32x8xbf16>
    %135 = arith.truncf %27 : vector<8x32xf32> to vector<8x32xbf16>
    %cst_107 = arith.constant dense<0.000000e+00> : vector<8x8xf32>
    %136 = tpu.matmul %135, %134, %cst_107 {dimension_numbers = #tpu.dot_dimension_numbers<[1], [0], [0], [1], [0, 0, 1, 1], [], []>} : vector<8x32xbf16>, vector<32x8xbf16>, vector<8x8xf32> -> vector<8x8xf32>
    %c0_108 = arith.constant 0 : index
    %c2_109 = arith.constant 2 : index
    %c0_110 = arith.constant 0 : index
    %c0_111 = arith.constant 0 : index
    %137 = vector.load %arg9[%c0_108, %c2_109, %c0_110, %c0_111] : memref<4x4x1x8xf32, #tpu.memory_space<vmem>>, vector<1x1x1x8xf32>
    %138 = vector.shape_cast %137 : vector<1x1x1x8xf32> to vector<1x8xf32>
    %139 = vector.broadcast %138 : vector<1x8xf32> to vector<8x8xf32>
    %140 = arith.addf %136, %139 : vector<8x8xf32>
    %141 = tpu.transpose %132, [1, 0] : vector<8x8xf32> -> vector<8x8xf32>
    %cst_112 = arith.constant dense<0.000000e+00> : vector<8x8xf32>
    %142 = tpu.matmul %124, %141, %cst_112 {dimension_numbers = #tpu.dot_dimension_numbers<[1], [0], [0], [1], [0, 0, 1, 1], [], []>} : vector<8x8xf32>, vector<8x8xf32>, vector<8x8xf32> -> vector<8x8xf32>
    %cst_113 = arith.constant 0.353553385 : f32
    %143 = vector.broadcast %cst_113 : f32 to vector<8x8xf32>
    %144 = arith.mulf %142, %143 : vector<8x8xf32>
    %cst_114 = arith.constant dense<0xFF800000> : vector<8xf32>
    %145 = vector.multi_reduction <maximumf>, %144, %cst_114 [1] : vector<8x8xf32> to vector<8xf32>
    %146 = vector.shape_cast %145 : vector<8xf32> to vector<8x1xf32>
    %147 = vector.broadcast %146 : vector<8x1xf32> to vector<8x8xf32>
    %148 = arith.subf %144, %147 : vector<8x8xf32>
    %149 = math.exp %148 : vector<8x8xf32>
    %cst_115 = arith.constant dense<0.000000e+00> : vector<8xf32>
    %150 = vector.multi_reduction <add>, %149, %cst_115 [1] : vector<8x8xf32> to vector<8xf32>
    %151 = vector.shape_cast %150 : vector<8xf32> to vector<8x1xf32>
    %152 = tpu.reciprocal %151 {approx = true} : vector<8x1xf32> -> vector<8x1xf32>
    %153 = vector.broadcast %152 : vector<8x1xf32> to vector<8x8xf32>
    %154 = arith.mulf %149, %153 : vector<8x8xf32>
    %cst_116 = arith.constant dense<0.000000e+00> : vector<8x8xf32>
    %155 = tpu.matmul %154, %140, %cst_116 {dimension_numbers = #tpu.dot_dimension_numbers<[1], [0], [0], [1], [0, 0, 1, 1], [], []>} : vector<8x8xf32>, vector<8x8xf32>, vector<8x8xf32> -> vector<8x8xf32>
    %c0_117 = arith.constant 0 : index
    %c2_118 = arith.constant 2 : index
    %c0_119 = arith.constant 0 : index
    %c0_120 = arith.constant 0 : index
    %156 = vector.load %arg10[%c0_117, %c2_118, %c0_119, %c0_120] : memref<4x4x8x32xbf16, #tpu.memory_space<vmem>>, vector<1x1x8x32xbf16>
    %157 = vector.shape_cast %156 : vector<1x1x8x32xbf16> to vector<8x32xbf16>
    %158 = arith.truncf %155 : vector<8x8xf32> to vector<8x8xbf16>
    %cst_121 = arith.constant dense<0.000000e+00> : vector<8x32xf32>
    %159 = tpu.matmul %158, %157, %cst_121 {dimension_numbers = #tpu.dot_dimension_numbers<[1], [0], [0], [1], [0, 0, 1, 1], [], []>} : vector<8x8xbf16>, vector<8x32xbf16>, vector<8x32xf32> -> vector<8x32xf32>
    %160 = arith.addf %116, %159 : vector<8x32xf32>
    %c0_122 = arith.constant 0 : index
    %c3 = arith.constant 3 : index
    %c0_123 = arith.constant 0 : index
    %c0_124 = arith.constant 0 : index
    %161 = vector.load %arg4[%c0_122, %c3, %c0_123, %c0_124] : memref<4x4x32x8xbf16, #tpu.memory_space<vmem>>, vector<1x1x32x8xbf16>
    %162 = vector.shape_cast %161 : vector<1x1x32x8xbf16> to vector<32x8xbf16>
    %163 = arith.truncf %27 : vector<8x32xf32> to vector<8x32xbf16>
    %cst_125 = arith.constant dense<0.000000e+00> : vector<8x8xf32>
    %164 = tpu.matmul %163, %162, %cst_125 {dimension_numbers = #tpu.dot_dimension_numbers<[1], [0], [0], [1], [0, 0, 1, 1], [], []>} : vector<8x32xbf16>, vector<32x8xbf16>, vector<8x8xf32> -> vector<8x8xf32>
    %c0_126 = arith.constant 0 : index
    %c3_127 = arith.constant 3 : index
    %c0_128 = arith.constant 0 : index
    %c0_129 = arith.constant 0 : index
    %165 = vector.load %arg5[%c0_126, %c3_127, %c0_128, %c0_129] : memref<4x4x1x8xf32, #tpu.memory_space<vmem>>, vector<1x1x1x8xf32>
    %166 = vector.shape_cast %165 : vector<1x1x1x8xf32> to vector<1x8xf32>
    %167 = vector.broadcast %166 : vector<1x8xf32> to vector<8x8xf32>
    %168 = arith.addf %164, %167 : vector<8x8xf32>
    %c0_130 = arith.constant 0 : index
    %c3_131 = arith.constant 3 : index
    %c0_132 = arith.constant 0 : index
    %c0_133 = arith.constant 0 : index
    %169 = vector.load %arg6[%c0_130, %c3_131, %c0_132, %c0_133] : memref<4x4x32x8xbf16, #tpu.memory_space<vmem>>, vector<1x1x32x8xbf16>
    %170 = vector.shape_cast %169 : vector<1x1x32x8xbf16> to vector<32x8xbf16>
    %171 = arith.truncf %27 : vector<8x32xf32> to vector<8x32xbf16>
    %cst_134 = arith.constant dense<0.000000e+00> : vector<8x8xf32>
    %172 = tpu.matmul %171, %170, %cst_134 {dimension_numbers = #tpu.dot_dimension_numbers<[1], [0], [0], [1], [0, 0, 1, 1], [], []>} : vector<8x32xbf16>, vector<32x8xbf16>, vector<8x8xf32> -> vector<8x8xf32>
    %c0_135 = arith.constant 0 : index
    %c3_136 = arith.constant 3 : index
    %c0_137 = arith.constant 0 : index
    %c0_138 = arith.constant 0 : index
    %173 = vector.load %arg7[%c0_135, %c3_136, %c0_137, %c0_138] : memref<4x4x1x8xf32, #tpu.memory_space<vmem>>, vector<1x1x1x8xf32>
    %174 = vector.shape_cast %173 : vector<1x1x1x8xf32> to vector<1x8xf32>
    %175 = vector.broadcast %174 : vector<1x8xf32> to vector<8x8xf32>
    %176 = arith.addf %172, %175 : vector<8x8xf32>
    %c0_139 = arith.constant 0 : index
    %c3_140 = arith.constant 3 : index
    %c0_141 = arith.constant 0 : index
    %c0_142 = arith.constant 0 : index
    %177 = vector.load %arg8[%c0_139, %c3_140, %c0_141, %c0_142] : memref<4x4x32x8xbf16, #tpu.memory_space<vmem>>, vector<1x1x32x8xbf16>
    %178 = vector.shape_cast %177 : vector<1x1x32x8xbf16> to vector<32x8xbf16>
    %179 = arith.truncf %27 : vector<8x32xf32> to vector<8x32xbf16>
    %cst_143 = arith.constant dense<0.000000e+00> : vector<8x8xf32>
    %180 = tpu.matmul %179, %178, %cst_143 {dimension_numbers = #tpu.dot_dimension_numbers<[1], [0], [0], [1], [0, 0, 1, 1], [], []>} : vector<8x32xbf16>, vector<32x8xbf16>, vector<8x8xf32> -> vector<8x8xf32>
    %c0_144 = arith.constant 0 : index
    %c3_145 = arith.constant 3 : index
    %c0_146 = arith.constant 0 : index
    %c0_147 = arith.constant 0 : index
    %181 = vector.load %arg9[%c0_144, %c3_145, %c0_146, %c0_147] : memref<4x4x1x8xf32, #tpu.memory_space<vmem>>, vector<1x1x1x8xf32>
    %182 = vector.shape_cast %181 : vector<1x1x1x8xf32> to vector<1x8xf32>
    %183 = vector.broadcast %182 : vector<1x8xf32> to vector<8x8xf32>
    %184 = arith.addf %180, %183 : vector<8x8xf32>
    %185 = tpu.transpose %176, [1, 0] : vector<8x8xf32> -> vector<8x8xf32>
    %cst_148 = arith.constant dense<0.000000e+00> : vector<8x8xf32>
    %186 = tpu.matmul %168, %185, %cst_148 {dimension_numbers = #tpu.dot_dimension_numbers<[1], [0], [0], [1], [0, 0, 1, 1], [], []>} : vector<8x8xf32>, vector<8x8xf32>, vector<8x8xf32> -> vector<8x8xf32>
    %cst_149 = arith.constant 0.353553385 : f32
    %187 = vector.broadcast %cst_149 : f32 to vector<8x8xf32>
    %188 = arith.mulf %186, %187 : vector<8x8xf32>
    %cst_150 = arith.constant dense<0xFF800000> : vector<8xf32>
    %189 = vector.multi_reduction <maximumf>, %188, %cst_150 [1] : vector<8x8xf32> to vector<8xf32>
    %190 = vector.shape_cast %189 : vector<8xf32> to vector<8x1xf32>
    %191 = vector.broadcast %190 : vector<8x1xf32> to vector<8x8xf32>
    %192 = arith.subf %188, %191 : vector<8x8xf32>
    %193 = math.exp %192 : vector<8x8xf32>
    %cst_151 = arith.constant dense<0.000000e+00> : vector<8xf32>
    %194 = vector.multi_reduction <add>, %193, %cst_151 [1] : vector<8x8xf32> to vector<8xf32>
    %195 = vector.shape_cast %194 : vector<8xf32> to vector<8x1xf32>
    %196 = tpu.reciprocal %195 {approx = true} : vector<8x1xf32> -> vector<8x1xf32>
    %197 = vector.broadcast %196 : vector<8x1xf32> to vector<8x8xf32>
    %198 = arith.mulf %193, %197 : vector<8x8xf32>
    %cst_152 = arith.constant dense<0.000000e+00> : vector<8x8xf32>
    %199 = tpu.matmul %198, %184, %cst_152 {dimension_numbers = #tpu.dot_dimension_numbers<[1], [0], [0], [1], [0, 0, 1, 1], [], []>} : vector<8x8xf32>, vector<8x8xf32>, vector<8x8xf32> -> vector<8x8xf32>
    %c0_153 = arith.constant 0 : index
    %c3_154 = arith.constant 3 : index
    %c0_155 = arith.constant 0 : index
    %c0_156 = arith.constant 0 : index
    %200 = vector.load %arg10[%c0_153, %c3_154, %c0_155, %c0_156] : memref<4x4x8x32xbf16, #tpu.memory_space<vmem>>, vector<1x1x8x32xbf16>
    %201 = vector.shape_cast %200 : vector<1x1x8x32xbf16> to vector<8x32xbf16>
    %202 = arith.truncf %199 : vector<8x8xf32> to vector<8x8xbf16>
    %cst_157 = arith.constant dense<0.000000e+00> : vector<8x32xf32>
    %203 = tpu.matmul %202, %201, %cst_157 {dimension_numbers = #tpu.dot_dimension_numbers<[1], [0], [0], [1], [0, 0, 1, 1], [], []>} : vector<8x8xbf16>, vector<8x32xbf16>, vector<8x32xf32> -> vector<8x32xf32>
    %204 = arith.addf %160, %203 : vector<8x32xf32>
    %205 = arith.addf %1, %204 : vector<8x32xf32>
    %c0_158 = arith.constant 0 : index
    %c0_159 = arith.constant 0 : index
    %c0_160 = arith.constant 0 : index
    %206 = vector.load %arg11[%c0_158, %c0_159, %c0_160] : memref<4x1x32xf32, #tpu.memory_space<vmem>>, vector<1x1x32xf32>
    %207 = vector.shape_cast %206 : vector<1x1x32xf32> to vector<1x32xf32>
    %208 = vector.broadcast %207 : vector<1x32xf32> to vector<8x32xf32>
    %209 = arith.addf %205, %208 : vector<8x32xf32>
    %c0_161 = arith.constant 0 : index
    %c0_162 = arith.constant 0 : index
    %c0_163 = arith.constant 0 : index
    %210 = vector.load %arg12[%c0_161, %c0_162, %c0_163] : memref<4x1x32xf32, #tpu.memory_space<vmem>>, vector<1x1x32xf32>
    %211 = vector.shape_cast %210 : vector<1x1x32xf32> to vector<1x32xf32>
    %c0_164 = arith.constant 0 : index
    %c0_165 = arith.constant 0 : index
    %c0_166 = arith.constant 0 : index
    %212 = vector.load %arg13[%c0_164, %c0_165, %c0_166] : memref<4x1x32xf32, #tpu.memory_space<vmem>>, vector<1x1x32xf32>
    %213 = vector.shape_cast %212 : vector<1x1x32xf32> to vector<1x32xf32>
    %cst_167 = arith.constant dense<0.000000e+00> : vector<8xf32>
    %214 = vector.multi_reduction <add>, %209, %cst_167 [1] : vector<8x32xf32> to vector<8xf32>
    %215 = vector.shape_cast %214 : vector<8xf32> to vector<8x1xf32>
    %cst_168 = arith.constant 3.200000e+01 : f32
    %216 = vector.broadcast %cst_168 : f32 to vector<8x1xf32>
    %217 = arith.divf %215, %216 : vector<8x1xf32>
    %218 = vector.broadcast %217 : vector<8x1xf32> to vector<8x32xf32>
    %219 = arith.subf %209, %218 : vector<8x32xf32>
    %220 = arith.mulf %219, %219 : vector<8x32xf32>
    %cst_169 = arith.constant dense<0.000000e+00> : vector<8xf32>
    %221 = vector.multi_reduction <add>, %220, %cst_169 [1] : vector<8x32xf32> to vector<8xf32>
    %222 = vector.shape_cast %221 : vector<8xf32> to vector<8x1xf32>
    %cst_170 = arith.constant 3.200000e+01 : f32
    %223 = vector.broadcast %cst_170 : f32 to vector<8x1xf32>
    %224 = arith.divf %222, %223 : vector<8x1xf32>
    %225 = vector.broadcast %217 : vector<8x1xf32> to vector<8x32xf32>
    %226 = arith.subf %209, %225 : vector<8x32xf32>
    %cst_171 = arith.constant 9.99999974E-6 : f32
    %227 = vector.broadcast %cst_171 : f32 to vector<8x1xf32>
    %228 = arith.addf %224, %227 : vector<8x1xf32>
    %229 = math.rsqrt %228 : vector<8x1xf32>
    %230 = vector.broadcast %229 : vector<8x1xf32> to vector<8x32xf32>
    %231 = arith.mulf %226, %230 : vector<8x32xf32>
    %232 = vector.broadcast %211 : vector<1x32xf32> to vector<8x32xf32>
    %233 = arith.mulf %231, %232 : vector<8x32xf32>
    %234 = vector.broadcast %213 : vector<1x32xf32> to vector<8x32xf32>
    %235 = arith.addf %233, %234 : vector<8x32xf32>
    %c0_172 = arith.constant 0 : index
    %c0_173 = arith.constant 0 : index
    %c0_174 = arith.constant 0 : index
    %236 = vector.load %arg14[%c0_172, %c0_173, %c0_174] : memref<4x32x64xbf16, #tpu.memory_space<vmem>>, vector<1x32x64xbf16>
    %237 = vector.shape_cast %236 : vector<1x32x64xbf16> to vector<32x64xbf16>
    %238 = arith.truncf %235 : vector<8x32xf32> to vector<8x32xbf16>
    %cst_175 = arith.constant dense<0.000000e+00> : vector<8x64xf32>
    %239 = tpu.matmul %238, %237, %cst_175 {dimension_numbers = #tpu.dot_dimension_numbers<[1], [0], [0], [1], [0, 0, 1, 1], [], []>} : vector<8x32xbf16>, vector<32x64xbf16>, vector<8x64xf32> -> vector<8x64xf32>
    %c0_176 = arith.constant 0 : index
    %c0_177 = arith.constant 0 : index
    %c0_178 = arith.constant 0 : index
    %240 = vector.load %arg15[%c0_176, %c0_177, %c0_178] : memref<4x1x64xf32, #tpu.memory_space<vmem>>, vector<1x1x64xf32>
    %241 = vector.shape_cast %240 : vector<1x1x64xf32> to vector<1x64xf32>
    %242 = vector.broadcast %241 : vector<1x64xf32> to vector<8x64xf32>
    %243 = arith.addf %239, %242 : vector<8x64xf32>
    %244 = arith.mulf %243, %243 : vector<8x64xf32>
    %245 = arith.mulf %243, %244 : vector<8x64xf32>
    %cst_179 = arith.constant 4.471500e-02 : f32
    %246 = vector.broadcast %cst_179 : f32 to vector<8x64xf32>
    %247 = arith.mulf %246, %245 : vector<8x64xf32>
    %248 = arith.addf %243, %247 : vector<8x64xf32>
    %cst_180 = arith.constant 0.797884583 : f32
    %249 = vector.broadcast %cst_180 : f32 to vector<8x64xf32>
    %250 = arith.mulf %249, %248 : vector<8x64xf32>
    %251 = math.tanh %250 : vector<8x64xf32>
    %cst_181 = arith.constant 1.000000e+00 : f32
    %252 = vector.broadcast %cst_181 : f32 to vector<8x64xf32>
    %253 = arith.addf %252, %251 : vector<8x64xf32>
    %cst_182 = arith.constant 5.000000e-01 : f32
    %254 = vector.broadcast %cst_182 : f32 to vector<8x64xf32>
    %255 = arith.mulf %254, %253 : vector<8x64xf32>
    %256 = arith.mulf %243, %255 : vector<8x64xf32>
    %c0_183 = arith.constant 0 : index
    %c0_184 = arith.constant 0 : index
    %c0_185 = arith.constant 0 : index
    %257 = vector.load %arg16[%c0_183, %c0_184, %c0_185] : memref<4x64x32xbf16, #tpu.memory_space<vmem>>, vector<1x64x32xbf16>
    %258 = vector.shape_cast %257 : vector<1x64x32xbf16> to vector<64x32xbf16>
    %259 = arith.truncf %256 : vector<8x64xf32> to vector<8x64xbf16>
    %cst_186 = arith.constant dense<0.000000e+00> : vector<8x32xf32>
    %260 = tpu.matmul %259, %258, %cst_186 {dimension_numbers = #tpu.dot_dimension_numbers<[1], [0], [0], [1], [0, 0, 1, 1], [], []>} : vector<8x64xbf16>, vector<64x32xbf16>, vector<8x32xf32> -> vector<8x32xf32>
    %c0_187 = arith.constant 0 : index
    %c0_188 = arith.constant 0 : index
    %c0_189 = arith.constant 0 : index
    %261 = vector.load %arg17[%c0_187, %c0_188, %c0_189] : memref<4x1x32xf32, #tpu.memory_space<vmem>>, vector<1x1x32xf32>
    %262 = vector.shape_cast %261 : vector<1x1x32xf32> to vector<1x32xf32>
    %263 = vector.broadcast %262 : vector<1x32xf32> to vector<8x32xf32>
    %264 = arith.addf %260, %263 : vector<8x32xf32>
    %265 = arith.addf %209, %264 : vector<8x32xf32>
    %c1_190 = arith.constant 1 : index
    %c0_191 = arith.constant 0 : index
    %c0_192 = arith.constant 0 : index
    %266 = vector.load %arg2[%c1_190, %c0_191, %c0_192] : memref<4x1x32xf32, #tpu.memory_space<vmem>>, vector<1x1x32xf32>
    %267 = vector.shape_cast %266 : vector<1x1x32xf32> to vector<1x32xf32>
    %c1_193 = arith.constant 1 : index
    %c0_194 = arith.constant 0 : index
    %c0_195 = arith.constant 0 : index
    %268 = vector.load %arg3[%c1_193, %c0_194, %c0_195] : memref<4x1x32xf32, #tpu.memory_space<vmem>>, vector<1x1x32xf32>
    %269 = vector.shape_cast %268 : vector<1x1x32xf32> to vector<1x32xf32>
    %cst_196 = arith.constant dense<0.000000e+00> : vector<8xf32>
    %270 = vector.multi_reduction <add>, %265, %cst_196 [1] : vector<8x32xf32> to vector<8xf32>
    %271 = vector.shape_cast %270 : vector<8xf32> to vector<8x1xf32>
    %cst_197 = arith.constant 3.200000e+01 : f32
    %272 = vector.broadcast %cst_197 : f32 to vector<8x1xf32>
    %273 = arith.divf %271, %272 : vector<8x1xf32>
    %274 = vector.broadcast %273 : vector<8x1xf32> to vector<8x32xf32>
    %275 = arith.subf %265, %274 : vector<8x32xf32>
    %276 = arith.mulf %275, %275 : vector<8x32xf32>
    %cst_198 = arith.constant dense<0.000000e+00> : vector<8xf32>
    %277 = vector.multi_reduction <add>, %276, %cst_198 [1] : vector<8x32xf32> to vector<8xf32>
    %278 = vector.shape_cast %277 : vector<8xf32> to vector<8x1xf32>
    %cst_199 = arith.constant 3.200000e+01 : f32
    %279 = vector.broadcast %cst_199 : f32 to vector<8x1xf32>
    %280 = arith.divf %278, %279 : vector<8x1xf32>
    %281 = vector.broadcast %273 : vector<8x1xf32> to vector<8x32xf32>
    %282 = arith.subf %265, %281 : vector<8x32xf32>
    %cst_200 = arith.constant 9.99999974E-6 : f32
    %283 = vector.broadcast %cst_200 : f32 to vector<8x1xf32>
    %284 = arith.addf %280, %283 : vector<8x1xf32>
    %285 = math.rsqrt %284 : vector<8x1xf32>
    %286 = vector.broadcast %285 : vector<8x1xf32> to vector<8x32xf32>
    %287 = arith.mulf %282, %286 : vector<8x32xf32>
    %288 = vector.broadcast %267 : vector<1x32xf32> to vector<8x32xf32>
    %289 = arith.mulf %287, %288 : vector<8x32xf32>
    %290 = vector.broadcast %269 : vector<1x32xf32> to vector<8x32xf32>
    %291 = arith.addf %289, %290 : vector<8x32xf32>
    %cst_201 = arith.constant 0.000000e+00 : f32
    %292 = vector.broadcast %cst_201 : f32 to vector<8x32xf32>
    %c1_202 = arith.constant 1 : index
    %c0_203 = arith.constant 0 : index
    %c0_204 = arith.constant 0 : index
    %c0_205 = arith.constant 0 : index
    %293 = vector.load %arg4[%c1_202, %c0_203, %c0_204, %c0_205] : memref<4x4x32x8xbf16, #tpu.memory_space<vmem>>, vector<1x1x32x8xbf16>
    %294 = vector.shape_cast %293 : vector<1x1x32x8xbf16> to vector<32x8xbf16>
    %295 = arith.truncf %291 : vector<8x32xf32> to vector<8x32xbf16>
    %cst_206 = arith.constant dense<0.000000e+00> : vector<8x8xf32>
    %296 = tpu.matmul %295, %294, %cst_206 {dimension_numbers = #tpu.dot_dimension_numbers<[1], [0], [0], [1], [0, 0, 1, 1], [], []>} : vector<8x32xbf16>, vector<32x8xbf16>, vector<8x8xf32> -> vector<8x8xf32>
    %c1_207 = arith.constant 1 : index
    %c0_208 = arith.constant 0 : index
    %c0_209 = arith.constant 0 : index
    %c0_210 = arith.constant 0 : index
    %297 = vector.load %arg5[%c1_207, %c0_208, %c0_209, %c0_210] : memref<4x4x1x8xf32, #tpu.memory_space<vmem>>, vector<1x1x1x8xf32>
    %298 = vector.shape_cast %297 : vector<1x1x1x8xf32> to vector<1x8xf32>
    %299 = vector.broadcast %298 : vector<1x8xf32> to vector<8x8xf32>
    %300 = arith.addf %296, %299 : vector<8x8xf32>
    %c1_211 = arith.constant 1 : index
    %c0_212 = arith.constant 0 : index
    %c0_213 = arith.constant 0 : index
    %c0_214 = arith.constant 0 : index
    %301 = vector.load %arg6[%c1_211, %c0_212, %c0_213, %c0_214] : memref<4x4x32x8xbf16, #tpu.memory_space<vmem>>, vector<1x1x32x8xbf16>
    %302 = vector.shape_cast %301 : vector<1x1x32x8xbf16> to vector<32x8xbf16>
    %303 = arith.truncf %291 : vector<8x32xf32> to vector<8x32xbf16>
    %cst_215 = arith.constant dense<0.000000e+00> : vector<8x8xf32>
    %304 = tpu.matmul %303, %302, %cst_215 {dimension_numbers = #tpu.dot_dimension_numbers<[1], [0], [0], [1], [0, 0, 1, 1], [], []>} : vector<8x32xbf16>, vector<32x8xbf16>, vector<8x8xf32> -> vector<8x8xf32>
    %c1_216 = arith.constant 1 : index
    %c0_217 = arith.constant 0 : index
    %c0_218 = arith.constant 0 : index
    %c0_219 = arith.constant 0 : index
    %305 = vector.load %arg7[%c1_216, %c0_217, %c0_218, %c0_219] : memref<4x4x1x8xf32, #tpu.memory_space<vmem>>, vector<1x1x1x8xf32>
    %306 = vector.shape_cast %305 : vector<1x1x1x8xf32> to vector<1x8xf32>
    %307 = vector.broadcast %306 : vector<1x8xf32> to vector<8x8xf32>
    %308 = arith.addf %304, %307 : vector<8x8xf32>
    %c1_220 = arith.constant 1 : index
    %c0_221 = arith.constant 0 : index
    %c0_222 = arith.constant 0 : index
    %c0_223 = arith.constant 0 : index
    %309 = vector.load %arg8[%c1_220, %c0_221, %c0_222, %c0_223] : memref<4x4x32x8xbf16, #tpu.memory_space<vmem>>, vector<1x1x32x8xbf16>
    %310 = vector.shape_cast %309 : vector<1x1x32x8xbf16> to vector<32x8xbf16>
    %311 = arith.truncf %291 : vector<8x32xf32> to vector<8x32xbf16>
    %cst_224 = arith.constant dense<0.000000e+00> : vector<8x8xf32>
    %312 = tpu.matmul %311, %310, %cst_224 {dimension_numbers = #tpu.dot_dimension_numbers<[1], [0], [0], [1], [0, 0, 1, 1], [], []>} : vector<8x32xbf16>, vector<32x8xbf16>, vector<8x8xf32> -> vector<8x8xf32>
    %c1_225 = arith.constant 1 : index
    %c0_226 = arith.constant 0 : index
    %c0_227 = arith.constant 0 : index
    %c0_228 = arith.constant 0 : index
    %313 = vector.load %arg9[%c1_225, %c0_226, %c0_227, %c0_228] : memref<4x4x1x8xf32, #tpu.memory_space<vmem>>, vector<1x1x1x8xf32>
    %314 = vector.shape_cast %313 : vector<1x1x1x8xf32> to vector<1x8xf32>
    %315 = vector.broadcast %314 : vector<1x8xf32> to vector<8x8xf32>
    %316 = arith.addf %312, %315 : vector<8x8xf32>
    %317 = tpu.transpose %308, [1, 0] : vector<8x8xf32> -> vector<8x8xf32>
    %cst_229 = arith.constant dense<0.000000e+00> : vector<8x8xf32>
    %318 = tpu.matmul %300, %317, %cst_229 {dimension_numbers = #tpu.dot_dimension_numbers<[1], [0], [0], [1], [0, 0, 1, 1], [], []>} : vector<8x8xf32>, vector<8x8xf32>, vector<8x8xf32> -> vector<8x8xf32>
    %cst_230 = arith.constant 0.353553385 : f32
    %319 = vector.broadcast %cst_230 : f32 to vector<8x8xf32>
    %320 = arith.mulf %318, %319 : vector<8x8xf32>
    %cst_231 = arith.constant dense<0xFF800000> : vector<8xf32>
    %321 = vector.multi_reduction <maximumf>, %320, %cst_231 [1] : vector<8x8xf32> to vector<8xf32>
    %322 = vector.shape_cast %321 : vector<8xf32> to vector<8x1xf32>
    %323 = vector.broadcast %322 : vector<8x1xf32> to vector<8x8xf32>
    %324 = arith.subf %320, %323 : vector<8x8xf32>
    %325 = math.exp %324 : vector<8x8xf32>
    %cst_232 = arith.constant dense<0.000000e+00> : vector<8xf32>
    %326 = vector.multi_reduction <add>, %325, %cst_232 [1] : vector<8x8xf32> to vector<8xf32>
    %327 = vector.shape_cast %326 : vector<8xf32> to vector<8x1xf32>
    %328 = tpu.reciprocal %327 {approx = true} : vector<8x1xf32> -> vector<8x1xf32>
    %329 = vector.broadcast %328 : vector<8x1xf32> to vector<8x8xf32>
    %330 = arith.mulf %325, %329 : vector<8x8xf32>
    %cst_233 = arith.constant dense<0.000000e+00> : vector<8x8xf32>
    %331 = tpu.matmul %330, %316, %cst_233 {dimension_numbers = #tpu.dot_dimension_numbers<[1], [0], [0], [1], [0, 0, 1, 1], [], []>} : vector<8x8xf32>, vector<8x8xf32>, vector<8x8xf32> -> vector<8x8xf32>
    %c1_234 = arith.constant 1 : index
    %c0_235 = arith.constant 0 : index
    %c0_236 = arith.constant 0 : index
    %c0_237 = arith.constant 0 : index
    %332 = vector.load %arg10[%c1_234, %c0_235, %c0_236, %c0_237] : memref<4x4x8x32xbf16, #tpu.memory_space<vmem>>, vector<1x1x8x32xbf16>
    %333 = vector.shape_cast %332 : vector<1x1x8x32xbf16> to vector<8x32xbf16>
    %334 = arith.truncf %331 : vector<8x8xf32> to vector<8x8xbf16>
    %cst_238 = arith.constant dense<0.000000e+00> : vector<8x32xf32>
    %335 = tpu.matmul %334, %333, %cst_238 {dimension_numbers = #tpu.dot_dimension_numbers<[1], [0], [0], [1], [0, 0, 1, 1], [], []>} : vector<8x8xbf16>, vector<8x32xbf16>, vector<8x32xf32> -> vector<8x32xf32>
    %336 = arith.addf %292, %335 : vector<8x32xf32>
    %c1_239 = arith.constant 1 : index
    %c1_240 = arith.constant 1 : index
    %c0_241 = arith.constant 0 : index
    %c0_242 = arith.constant 0 : index
    %337 = vector.load %arg4[%c1_239, %c1_240, %c0_241, %c0_242] : memref<4x4x32x8xbf16, #tpu.memory_space<vmem>>, vector<1x1x32x8xbf16>
    %338 = vector.shape_cast %337 : vector<1x1x32x8xbf16> to vector<32x8xbf16>
    %339 = arith.truncf %291 : vector<8x32xf32> to vector<8x32xbf16>
    %cst_243 = arith.constant dense<0.000000e+00> : vector<8x8xf32>
    %340 = tpu.matmul %339, %338, %cst_243 {dimension_numbers = #tpu.dot_dimension_numbers<[1], [0], [0], [1], [0, 0, 1, 1], [], []>} : vector<8x32xbf16>, vector<32x8xbf16>, vector<8x8xf32> -> vector<8x8xf32>
    %c1_244 = arith.constant 1 : index
    %c1_245 = arith.constant 1 : index
    %c0_246 = arith.constant 0 : index
    %c0_247 = arith.constant 0 : index
    %341 = vector.load %arg5[%c1_244, %c1_245, %c0_246, %c0_247] : memref<4x4x1x8xf32, #tpu.memory_space<vmem>>, vector<1x1x1x8xf32>
    %342 = vector.shape_cast %341 : vector<1x1x1x8xf32> to vector<1x8xf32>
    %343 = vector.broadcast %342 : vector<1x8xf32> to vector<8x8xf32>
    %344 = arith.addf %340, %343 : vector<8x8xf32>
    %c1_248 = arith.constant 1 : index
    %c1_249 = arith.constant 1 : index
    %c0_250 = arith.constant 0 : index
    %c0_251 = arith.constant 0 : index
    %345 = vector.load %arg6[%c1_248, %c1_249, %c0_250, %c0_251] : memref<4x4x32x8xbf16, #tpu.memory_space<vmem>>, vector<1x1x32x8xbf16>
    %346 = vector.shape_cast %345 : vector<1x1x32x8xbf16> to vector<32x8xbf16>
    %347 = arith.truncf %291 : vector<8x32xf32> to vector<8x32xbf16>
    %cst_252 = arith.constant dense<0.000000e+00> : vector<8x8xf32>
    %348 = tpu.matmul %347, %346, %cst_252 {dimension_numbers = #tpu.dot_dimension_numbers<[1], [0], [0], [1], [0, 0, 1, 1], [], []>} : vector<8x32xbf16>, vector<32x8xbf16>, vector<8x8xf32> -> vector<8x8xf32>
    %c1_253 = arith.constant 1 : index
    %c1_254 = arith.constant 1 : index
    %c0_255 = arith.constant 0 : index
    %c0_256 = arith.constant 0 : index
    %349 = vector.load %arg7[%c1_253, %c1_254, %c0_255, %c0_256] : memref<4x4x1x8xf32, #tpu.memory_space<vmem>>, vector<1x1x1x8xf32>
    %350 = vector.shape_cast %349 : vector<1x1x1x8xf32> to vector<1x8xf32>
    %351 = vector.broadcast %350 : vector<1x8xf32> to vector<8x8xf32>
    %352 = arith.addf %348, %351 : vector<8x8xf32>
    %c1_257 = arith.constant 1 : index
    %c1_258 = arith.constant 1 : index
    %c0_259 = arith.constant 0 : index
    %c0_260 = arith.constant 0 : index
    %353 = vector.load %arg8[%c1_257, %c1_258, %c0_259, %c0_260] : memref<4x4x32x8xbf16, #tpu.memory_space<vmem>>, vector<1x1x32x8xbf16>
    %354 = vector.shape_cast %353 : vector<1x1x32x8xbf16> to vector<32x8xbf16>
    %355 = arith.truncf %291 : vector<8x32xf32> to vector<8x32xbf16>
    %cst_261 = arith.constant dense<0.000000e+00> : vector<8x8xf32>
    %356 = tpu.matmul %355, %354, %cst_261 {dimension_numbers = #tpu.dot_dimension_numbers<[1], [0], [0], [1], [0, 0, 1, 1], [], []>} : vector<8x32xbf16>, vector<32x8xbf16>, vector<8x8xf32> -> vector<8x8xf32>
    %c1_262 = arith.constant 1 : index
    %c1_263 = arith.constant 1 : index
    %c0_264 = arith.constant 0 : index
    %c0_265 = arith.constant 0 : index
    %357 = vector.load %arg9[%c1_262, %c1_263, %c0_264, %c0_265] : memref<4x4x1x8xf32, #tpu.memory_space<vmem>>, vector<1x1x1x8xf32>
    %358 = vector.shape_cast %357 : vector<1x1x1x8xf32> to vector<1x8xf32>
    %359 = vector.broadcast %358 : vector<1x8xf32> to vector<8x8xf32>
    %360 = arith.addf %356, %359 : vector<8x8xf32>
    %361 = tpu.transpose %352, [1, 0] : vector<8x8xf32> -> vector<8x8xf32>
    %cst_266 = arith.constant dense<0.000000e+00> : vector<8x8xf32>
    %362 = tpu.matmul %344, %361, %cst_266 {dimension_numbers = #tpu.dot_dimension_numbers<[1], [0], [0], [1], [0, 0, 1, 1], [], []>} : vector<8x8xf32>, vector<8x8xf32>, vector<8x8xf32> -> vector<8x8xf32>
    %cst_267 = arith.constant 0.353553385 : f32
    %363 = vector.broadcast %cst_267 : f32 to vector<8x8xf32>
    %364 = arith.mulf %362, %363 : vector<8x8xf32>
    %cst_268 = arith.constant dense<0xFF800000> : vector<8xf32>
    %365 = vector.multi_reduction <maximumf>, %364, %cst_268 [1] : vector<8x8xf32> to vector<8xf32>
    %366 = vector.shape_cast %365 : vector<8xf32> to vector<8x1xf32>
    %367 = vector.broadcast %366 : vector<8x1xf32> to vector<8x8xf32>
    %368 = arith.subf %364, %367 : vector<8x8xf32>
    %369 = math.exp %368 : vector<8x8xf32>
    %cst_269 = arith.constant dense<0.000000e+00> : vector<8xf32>
    %370 = vector.multi_reduction <add>, %369, %cst_269 [1] : vector<8x8xf32> to vector<8xf32>
    %371 = vector.shape_cast %370 : vector<8xf32> to vector<8x1xf32>
    %372 = tpu.reciprocal %371 {approx = true} : vector<8x1xf32> -> vector<8x1xf32>
    %373 = vector.broadcast %372 : vector<8x1xf32> to vector<8x8xf32>
    %374 = arith.mulf %369, %373 : vector<8x8xf32>
    %cst_270 = arith.constant dense<0.000000e+00> : vector<8x8xf32>
    %375 = tpu.matmul %374, %360, %cst_270 {dimension_numbers = #tpu.dot_dimension_numbers<[1], [0], [0], [1], [0, 0, 1, 1], [], []>} : vector<8x8xf32>, vector<8x8xf32>, vector<8x8xf32> -> vector<8x8xf32>
    %c1_271 = arith.constant 1 : index
    %c1_272 = arith.constant 1 : index
    %c0_273 = arith.constant 0 : index
    %c0_274 = arith.constant 0 : index
    %376 = vector.load %arg10[%c1_271, %c1_272, %c0_273, %c0_274] : memref<4x4x8x32xbf16, #tpu.memory_space<vmem>>, vector<1x1x8x32xbf16>
    %377 = vector.shape_cast %376 : vector<1x1x8x32xbf16> to vector<8x32xbf16>
    %378 = arith.truncf %375 : vector<8x8xf32> to vector<8x8xbf16>
    %cst_275 = arith.constant dense<0.000000e+00> : vector<8x32xf32>
    %379 = tpu.matmul %378, %377, %cst_275 {dimension_numbers = #tpu.dot_dimension_numbers<[1], [0], [0], [1], [0, 0, 1, 1], [], []>} : vector<8x8xbf16>, vector<8x32xbf16>, vector<8x32xf32> -> vector<8x32xf32>
    %380 = arith.addf %336, %379 : vector<8x32xf32>
    %c1_276 = arith.constant 1 : index
    %c2_277 = arith.constant 2 : index
    %c0_278 = arith.constant 0 : index
    %c0_279 = arith.constant 0 : index
    %381 = vector.load %arg4[%c1_276, %c2_277, %c0_278, %c0_279] : memref<4x4x32x8xbf16, #tpu.memory_space<vmem>>, vector<1x1x32x8xbf16>
    %382 = vector.shape_cast %381 : vector<1x1x32x8xbf16> to vector<32x8xbf16>
    %383 = arith.truncf %291 : vector<8x32xf32> to vector<8x32xbf16>
    %cst_280 = arith.constant dense<0.000000e+00> : vector<8x8xf32>
    %384 = tpu.matmul %383, %382, %cst_280 {dimension_numbers = #tpu.dot_dimension_numbers<[1], [0], [0], [1], [0, 0, 1, 1], [], []>} : vector<8x32xbf16>, vector<32x8xbf16>, vector<8x8xf32> -> vector<8x8xf32>
    %c1_281 = arith.constant 1 : index
    %c2_282 = arith.constant 2 : index
    %c0_283 = arith.constant 0 : index
    %c0_284 = arith.constant 0 : index
    %385 = vector.load %arg5[%c1_281, %c2_282, %c0_283, %c0_284] : memref<4x4x1x8xf32, #tpu.memory_space<vmem>>, vector<1x1x1x8xf32>
    %386 = vector.shape_cast %385 : vector<1x1x1x8xf32> to vector<1x8xf32>
    %387 = vector.broadcast %386 : vector<1x8xf32> to vector<8x8xf32>
    %388 = arith.addf %384, %387 : vector<8x8xf32>
    %c1_285 = arith.constant 1 : index
    %c2_286 = arith.constant 2 : index
    %c0_287 = arith.constant 0 : index
    %c0_288 = arith.constant 0 : index
    %389 = vector.load %arg6[%c1_285, %c2_286, %c0_287, %c0_288] : memref<4x4x32x8xbf16, #tpu.memory_space<vmem>>, vector<1x1x32x8xbf16>
    %390 = vector.shape_cast %389 : vector<1x1x32x8xbf16> to vector<32x8xbf16>
    %391 = arith.truncf %291 : vector<8x32xf32> to vector<8x32xbf16>
    %cst_289 = arith.constant dense<0.000000e+00> : vector<8x8xf32>
    %392 = tpu.matmul %391, %390, %cst_289 {dimension_numbers = #tpu.dot_dimension_numbers<[1], [0], [0], [1], [0, 0, 1, 1], [], []>} : vector<8x32xbf16>, vector<32x8xbf16>, vector<8x8xf32> -> vector<8x8xf32>
    %c1_290 = arith.constant 1 : index
    %c2_291 = arith.constant 2 : index
    %c0_292 = arith.constant 0 : index
    %c0_293 = arith.constant 0 : index
    %393 = vector.load %arg7[%c1_290, %c2_291, %c0_292, %c0_293] : memref<4x4x1x8xf32, #tpu.memory_space<vmem>>, vector<1x1x1x8xf32>
    %394 = vector.shape_cast %393 : vector<1x1x1x8xf32> to vector<1x8xf32>
    %395 = vector.broadcast %394 : vector<1x8xf32> to vector<8x8xf32>
    %396 = arith.addf %392, %395 : vector<8x8xf32>
    %c1_294 = arith.constant 1 : index
    %c2_295 = arith.constant 2 : index
    %c0_296 = arith.constant 0 : index
    %c0_297 = arith.constant 0 : index
    %397 = vector.load %arg8[%c1_294, %c2_295, %c0_296, %c0_297] : memref<4x4x32x8xbf16, #tpu.memory_space<vmem>>, vector<1x1x32x8xbf16>
    %398 = vector.shape_cast %397 : vector<1x1x32x8xbf16> to vector<32x8xbf16>
    %399 = arith.truncf %291 : vector<8x32xf32> to vector<8x32xbf16>
    %cst_298 = arith.constant dense<0.000000e+00> : vector<8x8xf32>
    %400 = tpu.matmul %399, %398, %cst_298 {dimension_numbers = #tpu.dot_dimension_numbers<[1], [0], [0], [1], [0, 0, 1, 1], [], []>} : vector<8x32xbf16>, vector<32x8xbf16>, vector<8x8xf32> -> vector<8x8xf32>
    %c1_299 = arith.constant 1 : index
    %c2_300 = arith.constant 2 : index
    %c0_301 = arith.constant 0 : index
    %c0_302 = arith.constant 0 : index
    %401 = vector.load %arg9[%c1_299, %c2_300, %c0_301, %c0_302] : memref<4x4x1x8xf32, #tpu.memory_space<vmem>>, vector<1x1x1x8xf32>
    %402 = vector.shape_cast %401 : vector<1x1x1x8xf32> to vector<1x8xf32>
    %403 = vector.broadcast %402 : vector<1x8xf32> to vector<8x8xf32>
    %404 = arith.addf %400, %403 : vector<8x8xf32>
    %405 = tpu.transpose %396, [1, 0] : vector<8x8xf32> -> vector<8x8xf32>
    %cst_303 = arith.constant dense<0.000000e+00> : vector<8x8xf32>
    %406 = tpu.matmul %388, %405, %cst_303 {dimension_numbers = #tpu.dot_dimension_numbers<[1], [0], [0], [1], [0, 0, 1, 1], [], []>} : vector<8x8xf32>, vector<8x8xf32>, vector<8x8xf32> -> vector<8x8xf32>
    %cst_304 = arith.constant 0.353553385 : f32
    %407 = vector.broadcast %cst_304 : f32 to vector<8x8xf32>
    %408 = arith.mulf %406, %407 : vector<8x8xf32>
    %cst_305 = arith.constant dense<0xFF800000> : vector<8xf32>
    %409 = vector.multi_reduction <maximumf>, %408, %cst_305 [1] : vector<8x8xf32> to vector<8xf32>
    %410 = vector.shape_cast %409 : vector<8xf32> to vector<8x1xf32>
    %411 = vector.broadcast %410 : vector<8x1xf32> to vector<8x8xf32>
    %412 = arith.subf %408, %411 : vector<8x8xf32>
    %413 = math.exp %412 : vector<8x8xf32>
    %cst_306 = arith.constant dense<0.000000e+00> : vector<8xf32>
    %414 = vector.multi_reduction <add>, %413, %cst_306 [1] : vector<8x8xf32> to vector<8xf32>
    %415 = vector.shape_cast %414 : vector<8xf32> to vector<8x1xf32>
    %416 = tpu.reciprocal %415 {approx = true} : vector<8x1xf32> -> vector<8x1xf32>
    %417 = vector.broadcast %416 : vector<8x1xf32> to vector<8x8xf32>
    %418 = arith.mulf %413, %417 : vector<8x8xf32>
    %cst_307 = arith.constant dense<0.000000e+00> : vector<8x8xf32>
    %419 = tpu.matmul %418, %404, %cst_307 {dimension_numbers = #tpu.dot_dimension_numbers<[1], [0], [0], [1], [0, 0, 1, 1], [], []>} : vector<8x8xf32>, vector<8x8xf32>, vector<8x8xf32> -> vector<8x8xf32>
    %c1_308 = arith.constant 1 : index
    %c2_309 = arith.constant 2 : index
    %c0_310 = arith.constant 0 : index
    %c0_311 = arith.constant 0 : index
    %420 = vector.load %arg10[%c1_308, %c2_309, %c0_310, %c0_311] : memref<4x4x8x32xbf16, #tpu.memory_space<vmem>>, vector<1x1x8x32xbf16>
    %421 = vector.shape_cast %420 : vector<1x1x8x32xbf16> to vector<8x32xbf16>
    %422 = arith.truncf %419 : vector<8x8xf32> to vector<8x8xbf16>
    %cst_312 = arith.constant dense<0.000000e+00> : vector<8x32xf32>
    %423 = tpu.matmul %422, %421, %cst_312 {dimension_numbers = #tpu.dot_dimension_numbers<[1], [0], [0], [1], [0, 0, 1, 1], [], []>} : vector<8x8xbf16>, vector<8x32xbf16>, vector<8x32xf32> -> vector<8x32xf32>
    %424 = arith.addf %380, %423 : vector<8x32xf32>
    %c1_313 = arith.constant 1 : index
    %c3_314 = arith.constant 3 : index
    %c0_315 = arith.constant 0 : index
    %c0_316 = arith.constant 0 : index
    %425 = vector.load %arg4[%c1_313, %c3_314, %c0_315, %c0_316] : memref<4x4x32x8xbf16, #tpu.memory_space<vmem>>, vector<1x1x32x8xbf16>
    %426 = vector.shape_cast %425 : vector<1x1x32x8xbf16> to vector<32x8xbf16>
    %427 = arith.truncf %291 : vector<8x32xf32> to vector<8x32xbf16>
    %cst_317 = arith.constant dense<0.000000e+00> : vector<8x8xf32>
    %428 = tpu.matmul %427, %426, %cst_317 {dimension_numbers = #tpu.dot_dimension_numbers<[1], [0], [0], [1], [0, 0, 1, 1], [], []>} : vector<8x32xbf16>, vector<32x8xbf16>, vector<8x8xf32> -> vector<8x8xf32>
    %c1_318 = arith.constant 1 : index
    %c3_319 = arith.constant 3 : index
    %c0_320 = arith.constant 0 : index
    %c0_321 = arith.constant 0 : index
    %429 = vector.load %arg5[%c1_318, %c3_319, %c0_320, %c0_321] : memref<4x4x1x8xf32, #tpu.memory_space<vmem>>, vector<1x1x1x8xf32>
    %430 = vector.shape_cast %429 : vector<1x1x1x8xf32> to vector<1x8xf32>
    %431 = vector.broadcast %430 : vector<1x8xf32> to vector<8x8xf32>
    %432 = arith.addf %428, %431 : vector<8x8xf32>
    %c1_322 = arith.constant 1 : index
    %c3_323 = arith.constant 3 : index
    %c0_324 = arith.constant 0 : index
    %c0_325 = arith.constant 0 : index
    %433 = vector.load %arg6[%c1_322, %c3_323, %c0_324, %c0_325] : memref<4x4x32x8xbf16, #tpu.memory_space<vmem>>, vector<1x1x32x8xbf16>
    %434 = vector.shape_cast %433 : vector<1x1x32x8xbf16> to vector<32x8xbf16>
    %435 = arith.truncf %291 : vector<8x32xf32> to vector<8x32xbf16>
    %cst_326 = arith.constant dense<0.000000e+00> : vector<8x8xf32>
    %436 = tpu.matmul %435, %434, %cst_326 {dimension_numbers = #tpu.dot_dimension_numbers<[1], [0], [0], [1], [0, 0, 1, 1], [], []>} : vector<8x32xbf16>, vector<32x8xbf16>, vector<8x8xf32> -> vector<8x8xf32>
    %c1_327 = arith.constant 1 : index
    %c3_328 = arith.constant 3 : index
    %c0_329 = arith.constant 0 : index
    %c0_330 = arith.constant 0 : index
    %437 = vector.load %arg7[%c1_327, %c3_328, %c0_329, %c0_330] : memref<4x4x1x8xf32, #tpu.memory_space<vmem>>, vector<1x1x1x8xf32>
    %438 = vector.shape_cast %437 : vector<1x1x1x8xf32> to vector<1x8xf32>
    %439 = vector.broadcast %438 : vector<1x8xf32> to vector<8x8xf32>
    %440 = arith.addf %436, %439 : vector<8x8xf32>
    %c1_331 = arith.constant 1 : index
    %c3_332 = arith.constant 3 : index
    %c0_333 = arith.constant 0 : index
    %c0_334 = arith.constant 0 : index
    %441 = vector.load %arg8[%c1_331, %c3_332, %c0_333, %c0_334] : memref<4x4x32x8xbf16, #tpu.memory_space<vmem>>, vector<1x1x32x8xbf16>
    %442 = vector.shape_cast %441 : vector<1x1x32x8xbf16> to vector<32x8xbf16>
    %443 = arith.truncf %291 : vector<8x32xf32> to vector<8x32xbf16>
    %cst_335 = arith.constant dense<0.000000e+00> : vector<8x8xf32>
    %444 = tpu.matmul %443, %442, %cst_335 {dimension_numbers = #tpu.dot_dimension_numbers<[1], [0], [0], [1], [0, 0, 1, 1], [], []>} : vector<8x32xbf16>, vector<32x8xbf16>, vector<8x8xf32> -> vector<8x8xf32>
    %c1_336 = arith.constant 1 : index
    %c3_337 = arith.constant 3 : index
    %c0_338 = arith.constant 0 : index
    %c0_339 = arith.constant 0 : index
    %445 = vector.load %arg9[%c1_336, %c3_337, %c0_338, %c0_339] : memref<4x4x1x8xf32, #tpu.memory_space<vmem>>, vector<1x1x1x8xf32>
    %446 = vector.shape_cast %445 : vector<1x1x1x8xf32> to vector<1x8xf32>
    %447 = vector.broadcast %446 : vector<1x8xf32> to vector<8x8xf32>
    %448 = arith.addf %444, %447 : vector<8x8xf32>
    %449 = tpu.transpose %440, [1, 0] : vector<8x8xf32> -> vector<8x8xf32>
    %cst_340 = arith.constant dense<0.000000e+00> : vector<8x8xf32>
    %450 = tpu.matmul %432, %449, %cst_340 {dimension_numbers = #tpu.dot_dimension_numbers<[1], [0], [0], [1], [0, 0, 1, 1], [], []>} : vector<8x8xf32>, vector<8x8xf32>, vector<8x8xf32> -> vector<8x8xf32>
    %cst_341 = arith.constant 0.353553385 : f32
    %451 = vector.broadcast %cst_341 : f32 to vector<8x8xf32>
    %452 = arith.mulf %450, %451 : vector<8x8xf32>
    %cst_342 = arith.constant dense<0xFF800000> : vector<8xf32>
    %453 = vector.multi_reduction <maximumf>, %452, %cst_342 [1] : vector<8x8xf32> to vector<8xf32>
    %454 = vector.shape_cast %453 : vector<8xf32> to vector<8x1xf32>
    %455 = vector.broadcast %454 : vector<8x1xf32> to vector<8x8xf32>
    %456 = arith.subf %452, %455 : vector<8x8xf32>
    %457 = math.exp %456 : vector<8x8xf32>
    %cst_343 = arith.constant dense<0.000000e+00> : vector<8xf32>
    %458 = vector.multi_reduction <add>, %457, %cst_343 [1] : vector<8x8xf32> to vector<8xf32>
    %459 = vector.shape_cast %458 : vector<8xf32> to vector<8x1xf32>
    %460 = tpu.reciprocal %459 {approx = true} : vector<8x1xf32> -> vector<8x1xf32>
    %461 = vector.broadcast %460 : vector<8x1xf32> to vector<8x8xf32>
    %462 = arith.mulf %457, %461 : vector<8x8xf32>
    %cst_344 = arith.constant dense<0.000000e+00> : vector<8x8xf32>
    %463 = tpu.matmul %462, %448, %cst_344 {dimension_numbers = #tpu.dot_dimension_numbers<[1], [0], [0], [1], [0, 0, 1, 1], [], []>} : vector<8x8xf32>, vector<8x8xf32>, vector<8x8xf32> -> vector<8x8xf32>
    %c1_345 = arith.constant 1 : index
    %c3_346 = arith.constant 3 : index
    %c0_347 = arith.constant 0 : index
    %c0_348 = arith.constant 0 : index
    %464 = vector.load %arg10[%c1_345, %c3_346, %c0_347, %c0_348] : memref<4x4x8x32xbf16, #tpu.memory_space<vmem>>, vector<1x1x8x32xbf16>
    %465 = vector.shape_cast %464 : vector<1x1x8x32xbf16> to vector<8x32xbf16>
    %466 = arith.truncf %463 : vector<8x8xf32> to vector<8x8xbf16>
    %cst_349 = arith.constant dense<0.000000e+00> : vector<8x32xf32>
    %467 = tpu.matmul %466, %465, %cst_349 {dimension_numbers = #tpu.dot_dimension_numbers<[1], [0], [0], [1], [0, 0, 1, 1], [], []>} : vector<8x8xbf16>, vector<8x32xbf16>, vector<8x32xf32> -> vector<8x32xf32>
    %468 = arith.addf %424, %467 : vector<8x32xf32>
    %469 = arith.addf %265, %468 : vector<8x32xf32>
    %c1_350 = arith.constant 1 : index
    %c0_351 = arith.constant 0 : index
    %c0_352 = arith.constant 0 : index
    %470 = vector.load %arg11[%c1_350, %c0_351, %c0_352] : memref<4x1x32xf32, #tpu.memory_space<vmem>>, vector<1x1x32xf32>
    %471 = vector.shape_cast %470 : vector<1x1x32xf32> to vector<1x32xf32>
    %472 = vector.broadcast %471 : vector<1x32xf32> to vector<8x32xf32>
    %473 = arith.addf %469, %472 : vector<8x32xf32>
    %c1_353 = arith.constant 1 : index
    %c0_354 = arith.constant 0 : index
    %c0_355 = arith.constant 0 : index
    %474 = vector.load %arg12[%c1_353, %c0_354, %c0_355] : memref<4x1x32xf32, #tpu.memory_space<vmem>>, vector<1x1x32xf32>
    %475 = vector.shape_cast %474 : vector<1x1x32xf32> to vector<1x32xf32>
    %c1_356 = arith.constant 1 : index
    %c0_357 = arith.constant 0 : index
    %c0_358 = arith.constant 0 : index
    %476 = vector.load %arg13[%c1_356, %c0_357, %c0_358] : memref<4x1x32xf32, #tpu.memory_space<vmem>>, vector<1x1x32xf32>
    %477 = vector.shape_cast %476 : vector<1x1x32xf32> to vector<1x32xf32>
    %cst_359 = arith.constant dense<0.000000e+00> : vector<8xf32>
    %478 = vector.multi_reduction <add>, %473, %cst_359 [1] : vector<8x32xf32> to vector<8xf32>
    %479 = vector.shape_cast %478 : vector<8xf32> to vector<8x1xf32>
    %cst_360 = arith.constant 3.200000e+01 : f32
    %480 = vector.broadcast %cst_360 : f32 to vector<8x1xf32>
    %481 = arith.divf %479, %480 : vector<8x1xf32>
    %482 = vector.broadcast %481 : vector<8x1xf32> to vector<8x32xf32>
    %483 = arith.subf %473, %482 : vector<8x32xf32>
    %484 = arith.mulf %483, %483 : vector<8x32xf32>
    %cst_361 = arith.constant dense<0.000000e+00> : vector<8xf32>
    %485 = vector.multi_reduction <add>, %484, %cst_361 [1] : vector<8x32xf32> to vector<8xf32>
    %486 = vector.shape_cast %485 : vector<8xf32> to vector<8x1xf32>
    %cst_362 = arith.constant 3.200000e+01 : f32
    %487 = vector.broadcast %cst_362 : f32 to vector<8x1xf32>
    %488 = arith.divf %486, %487 : vector<8x1xf32>
    %489 = vector.broadcast %481 : vector<8x1xf32> to vector<8x32xf32>
    %490 = arith.subf %473, %489 : vector<8x32xf32>
    %cst_363 = arith.constant 9.99999974E-6 : f32
    %491 = vector.broadcast %cst_363 : f32 to vector<8x1xf32>
    %492 = arith.addf %488, %491 : vector<8x1xf32>
    %493 = math.rsqrt %492 : vector<8x1xf32>
    %494 = vector.broadcast %493 : vector<8x1xf32> to vector<8x32xf32>
    %495 = arith.mulf %490, %494 : vector<8x32xf32>
    %496 = vector.broadcast %475 : vector<1x32xf32> to vector<8x32xf32>
    %497 = arith.mulf %495, %496 : vector<8x32xf32>
    %498 = vector.broadcast %477 : vector<1x32xf32> to vector<8x32xf32>
    %499 = arith.addf %497, %498 : vector<8x32xf32>
    %c1_364 = arith.constant 1 : index
    %c0_365 = arith.constant 0 : index
    %c0_366 = arith.constant 0 : index
    %500 = vector.load %arg14[%c1_364, %c0_365, %c0_366] : memref<4x32x64xbf16, #tpu.memory_space<vmem>>, vector<1x32x64xbf16>
    %501 = vector.shape_cast %500 : vector<1x32x64xbf16> to vector<32x64xbf16>
    %502 = arith.truncf %499 : vector<8x32xf32> to vector<8x32xbf16>
    %cst_367 = arith.constant dense<0.000000e+00> : vector<8x64xf32>
    %503 = tpu.matmul %502, %501, %cst_367 {dimension_numbers = #tpu.dot_dimension_numbers<[1], [0], [0], [1], [0, 0, 1, 1], [], []>} : vector<8x32xbf16>, vector<32x64xbf16>, vector<8x64xf32> -> vector<8x64xf32>
    %c1_368 = arith.constant 1 : index
    %c0_369 = arith.constant 0 : index
    %c0_370 = arith.constant 0 : index
    %504 = vector.load %arg15[%c1_368, %c0_369, %c0_370] : memref<4x1x64xf32, #tpu.memory_space<vmem>>, vector<1x1x64xf32>
    %505 = vector.shape_cast %504 : vector<1x1x64xf32> to vector<1x64xf32>
    %506 = vector.broadcast %505 : vector<1x64xf32> to vector<8x64xf32>
    %507 = arith.addf %503, %506 : vector<8x64xf32>
    %508 = arith.mulf %507, %507 : vector<8x64xf32>
    %509 = arith.mulf %507, %508 : vector<8x64xf32>
    %cst_371 = arith.constant 4.471500e-02 : f32
    %510 = vector.broadcast %cst_371 : f32 to vector<8x64xf32>
    %511 = arith.mulf %510, %509 : vector<8x64xf32>
    %512 = arith.addf %507, %511 : vector<8x64xf32>
    %cst_372 = arith.constant 0.797884583 : f32
    %513 = vector.broadcast %cst_372 : f32 to vector<8x64xf32>
    %514 = arith.mulf %513, %512 : vector<8x64xf32>
    %515 = math.tanh %514 : vector<8x64xf32>
    %cst_373 = arith.constant 1.000000e+00 : f32
    %516 = vector.broadcast %cst_373 : f32 to vector<8x64xf32>
    %517 = arith.addf %516, %515 : vector<8x64xf32>
    %cst_374 = arith.constant 5.000000e-01 : f32
    %518 = vector.broadcast %cst_374 : f32 to vector<8x64xf32>
    %519 = arith.mulf %518, %517 : vector<8x64xf32>
    %520 = arith.mulf %507, %519 : vector<8x64xf32>
    %c1_375 = arith.constant 1 : index
    %c0_376 = arith.constant 0 : index
    %c0_377 = arith.constant 0 : index
    %521 = vector.load %arg16[%c1_375, %c0_376, %c0_377] : memref<4x64x32xbf16, #tpu.memory_space<vmem>>, vector<1x64x32xbf16>
    %522 = vector.shape_cast %521 : vector<1x64x32xbf16> to vector<64x32xbf16>
    %523 = arith.truncf %520 : vector<8x64xf32> to vector<8x64xbf16>
    %cst_378 = arith.constant dense<0.000000e+00> : vector<8x32xf32>
    %524 = tpu.matmul %523, %522, %cst_378 {dimension_numbers = #tpu.dot_dimension_numbers<[1], [0], [0], [1], [0, 0, 1, 1], [], []>} : vector<8x64xbf16>, vector<64x32xbf16>, vector<8x32xf32> -> vector<8x32xf32>
    %c1_379 = arith.constant 1 : index
    %c0_380 = arith.constant 0 : index
    %c0_381 = arith.constant 0 : index
    %525 = vector.load %arg17[%c1_379, %c0_380, %c0_381] : memref<4x1x32xf32, #tpu.memory_space<vmem>>, vector<1x1x32xf32>
    %526 = vector.shape_cast %525 : vector<1x1x32xf32> to vector<1x32xf32>
    %527 = vector.broadcast %526 : vector<1x32xf32> to vector<8x32xf32>
    %528 = arith.addf %524, %527 : vector<8x32xf32>
    %529 = arith.addf %473, %528 : vector<8x32xf32>
    %c2_382 = arith.constant 2 : index
    %c0_383 = arith.constant 0 : index
    %c0_384 = arith.constant 0 : index
    %530 = vector.load %arg2[%c2_382, %c0_383, %c0_384] : memref<4x1x32xf32, #tpu.memory_space<vmem>>, vector<1x1x32xf32>
    %531 = vector.shape_cast %530 : vector<1x1x32xf32> to vector<1x32xf32>
    %c2_385 = arith.constant 2 : index
    %c0_386 = arith.constant 0 : index
    %c0_387 = arith.constant 0 : index
    %532 = vector.load %arg3[%c2_385, %c0_386, %c0_387] : memref<4x1x32xf32, #tpu.memory_space<vmem>>, vector<1x1x32xf32>
    %533 = vector.shape_cast %532 : vector<1x1x32xf32> to vector<1x32xf32>
    %cst_388 = arith.constant dense<0.000000e+00> : vector<8xf32>
    %534 = vector.multi_reduction <add>, %529, %cst_388 [1] : vector<8x32xf32> to vector<8xf32>
    %535 = vector.shape_cast %534 : vector<8xf32> to vector<8x1xf32>
    %cst_389 = arith.constant 3.200000e+01 : f32
    %536 = vector.broadcast %cst_389 : f32 to vector<8x1xf32>
    %537 = arith.divf %535, %536 : vector<8x1xf32>
    %538 = vector.broadcast %537 : vector<8x1xf32> to vector<8x32xf32>
    %539 = arith.subf %529, %538 : vector<8x32xf32>
    %540 = arith.mulf %539, %539 : vector<8x32xf32>
    %cst_390 = arith.constant dense<0.000000e+00> : vector<8xf32>
    %541 = vector.multi_reduction <add>, %540, %cst_390 [1] : vector<8x32xf32> to vector<8xf32>
    %542 = vector.shape_cast %541 : vector<8xf32> to vector<8x1xf32>
    %cst_391 = arith.constant 3.200000e+01 : f32
    %543 = vector.broadcast %cst_391 : f32 to vector<8x1xf32>
    %544 = arith.divf %542, %543 : vector<8x1xf32>
    %545 = vector.broadcast %537 : vector<8x1xf32> to vector<8x32xf32>
    %546 = arith.subf %529, %545 : vector<8x32xf32>
    %cst_392 = arith.constant 9.99999974E-6 : f32
    %547 = vector.broadcast %cst_392 : f32 to vector<8x1xf32>
    %548 = arith.addf %544, %547 : vector<8x1xf32>
    %549 = math.rsqrt %548 : vector<8x1xf32>
    %550 = vector.broadcast %549 : vector<8x1xf32> to vector<8x32xf32>
    %551 = arith.mulf %546, %550 : vector<8x32xf32>
    %552 = vector.broadcast %531 : vector<1x32xf32> to vector<8x32xf32>
    %553 = arith.mulf %551, %552 : vector<8x32xf32>
    %554 = vector.broadcast %533 : vector<1x32xf32> to vector<8x32xf32>
    %555 = arith.addf %553, %554 : vector<8x32xf32>
    %cst_393 = arith.constant 0.000000e+00 : f32
    %556 = vector.broadcast %cst_393 : f32 to vector<8x32xf32>
    %c2_394 = arith.constant 2 : index
    %c0_395 = arith.constant 0 : index
    %c0_396 = arith.constant 0 : index
    %c0_397 = arith.constant 0 : index
    %557 = vector.load %arg4[%c2_394, %c0_395, %c0_396, %c0_397] : memref<4x4x32x8xbf16, #tpu.memory_space<vmem>>, vector<1x1x32x8xbf16>
    %558 = vector.shape_cast %557 : vector<1x1x32x8xbf16> to vector<32x8xbf16>
    %559 = arith.truncf %555 : vector<8x32xf32> to vector<8x32xbf16>
    %cst_398 = arith.constant dense<0.000000e+00> : vector<8x8xf32>
    %560 = tpu.matmul %559, %558, %cst_398 {dimension_numbers = #tpu.dot_dimension_numbers<[1], [0], [0], [1], [0, 0, 1, 1], [], []>} : vector<8x32xbf16>, vector<32x8xbf16>, vector<8x8xf32> -> vector<8x8xf32>
    %c2_399 = arith.constant 2 : index
    %c0_400 = arith.constant 0 : index
    %c0_401 = arith.constant 0 : index
    %c0_402 = arith.constant 0 : index
    %561 = vector.load %arg5[%c2_399, %c0_400, %c0_401, %c0_402] : memref<4x4x1x8xf32, #tpu.memory_space<vmem>>, vector<1x1x1x8xf32>
    %562 = vector.shape_cast %561 : vector<1x1x1x8xf32> to vector<1x8xf32>
    %563 = vector.broadcast %562 : vector<1x8xf32> to vector<8x8xf32>
    %564 = arith.addf %560, %563 : vector<8x8xf32>
    %c2_403 = arith.constant 2 : index
    %c0_404 = arith.constant 0 : index
    %c0_405 = arith.constant 0 : index
    %c0_406 = arith.constant 0 : index
    %565 = vector.load %arg6[%c2_403, %c0_404, %c0_405, %c0_406] : memref<4x4x32x8xbf16, #tpu.memory_space<vmem>>, vector<1x1x32x8xbf16>
    %566 = vector.shape_cast %565 : vector<1x1x32x8xbf16> to vector<32x8xbf16>
    %567 = arith.truncf %555 : vector<8x32xf32> to vector<8x32xbf16>
    %cst_407 = arith.constant dense<0.000000e+00> : vector<8x8xf32>
    %568 = tpu.matmul %567, %566, %cst_407 {dimension_numbers = #tpu.dot_dimension_numbers<[1], [0], [0], [1], [0, 0, 1, 1], [], []>} : vector<8x32xbf16>, vector<32x8xbf16>, vector<8x8xf32> -> vector<8x8xf32>
    %c2_408 = arith.constant 2 : index
    %c0_409 = arith.constant 0 : index
    %c0_410 = arith.constant 0 : index
    %c0_411 = arith.constant 0 : index
    %569 = vector.load %arg7[%c2_408, %c0_409, %c0_410, %c0_411] : memref<4x4x1x8xf32, #tpu.memory_space<vmem>>, vector<1x1x1x8xf32>
    %570 = vector.shape_cast %569 : vector<1x1x1x8xf32> to vector<1x8xf32>
    %571 = vector.broadcast %570 : vector<1x8xf32> to vector<8x8xf32>
    %572 = arith.addf %568, %571 : vector<8x8xf32>
    %c2_412 = arith.constant 2 : index
    %c0_413 = arith.constant 0 : index
    %c0_414 = arith.constant 0 : index
    %c0_415 = arith.constant 0 : index
    %573 = vector.load %arg8[%c2_412, %c0_413, %c0_414, %c0_415] : memref<4x4x32x8xbf16, #tpu.memory_space<vmem>>, vector<1x1x32x8xbf16>
    %574 = vector.shape_cast %573 : vector<1x1x32x8xbf16> to vector<32x8xbf16>
    %575 = arith.truncf %555 : vector<8x32xf32> to vector<8x32xbf16>
    %cst_416 = arith.constant dense<0.000000e+00> : vector<8x8xf32>
    %576 = tpu.matmul %575, %574, %cst_416 {dimension_numbers = #tpu.dot_dimension_numbers<[1], [0], [0], [1], [0, 0, 1, 1], [], []>} : vector<8x32xbf16>, vector<32x8xbf16>, vector<8x8xf32> -> vector<8x8xf32>
    %c2_417 = arith.constant 2 : index
    %c0_418 = arith.constant 0 : index
    %c0_419 = arith.constant 0 : index
    %c0_420 = arith.constant 0 : index
    %577 = vector.load %arg9[%c2_417, %c0_418, %c0_419, %c0_420] : memref<4x4x1x8xf32, #tpu.memory_space<vmem>>, vector<1x1x1x8xf32>
    %578 = vector.shape_cast %577 : vector<1x1x1x8xf32> to vector<1x8xf32>
    %579 = vector.broadcast %578 : vector<1x8xf32> to vector<8x8xf32>
    %580 = arith.addf %576, %579 : vector<8x8xf32>
    %581 = tpu.transpose %572, [1, 0] : vector<8x8xf32> -> vector<8x8xf32>
    %cst_421 = arith.constant dense<0.000000e+00> : vector<8x8xf32>
    %582 = tpu.matmul %564, %581, %cst_421 {dimension_numbers = #tpu.dot_dimension_numbers<[1], [0], [0], [1], [0, 0, 1, 1], [], []>} : vector<8x8xf32>, vector<8x8xf32>, vector<8x8xf32> -> vector<8x8xf32>
    %cst_422 = arith.constant 0.353553385 : f32
    %583 = vector.broadcast %cst_422 : f32 to vector<8x8xf32>
    %584 = arith.mulf %582, %583 : vector<8x8xf32>
    %cst_423 = arith.constant dense<0xFF800000> : vector<8xf32>
    %585 = vector.multi_reduction <maximumf>, %584, %cst_423 [1] : vector<8x8xf32> to vector<8xf32>
    %586 = vector.shape_cast %585 : vector<8xf32> to vector<8x1xf32>
    %587 = vector.broadcast %586 : vector<8x1xf32> to vector<8x8xf32>
    %588 = arith.subf %584, %587 : vector<8x8xf32>
    %589 = math.exp %588 : vector<8x8xf32>
    %cst_424 = arith.constant dense<0.000000e+00> : vector<8xf32>
    %590 = vector.multi_reduction <add>, %589, %cst_424 [1] : vector<8x8xf32> to vector<8xf32>
    %591 = vector.shape_cast %590 : vector<8xf32> to vector<8x1xf32>
    %592 = tpu.reciprocal %591 {approx = true} : vector<8x1xf32> -> vector<8x1xf32>
    %593 = vector.broadcast %592 : vector<8x1xf32> to vector<8x8xf32>
    %594 = arith.mulf %589, %593 : vector<8x8xf32>
    %cst_425 = arith.constant dense<0.000000e+00> : vector<8x8xf32>
    %595 = tpu.matmul %594, %580, %cst_425 {dimension_numbers = #tpu.dot_dimension_numbers<[1], [0], [0], [1], [0, 0, 1, 1], [], []>} : vector<8x8xf32>, vector<8x8xf32>, vector<8x8xf32> -> vector<8x8xf32>
    %c2_426 = arith.constant 2 : index
    %c0_427 = arith.constant 0 : index
    %c0_428 = arith.constant 0 : index
    %c0_429 = arith.constant 0 : index
    %596 = vector.load %arg10[%c2_426, %c0_427, %c0_428, %c0_429] : memref<4x4x8x32xbf16, #tpu.memory_space<vmem>>, vector<1x1x8x32xbf16>
    %597 = vector.shape_cast %596 : vector<1x1x8x32xbf16> to vector<8x32xbf16>
    %598 = arith.truncf %595 : vector<8x8xf32> to vector<8x8xbf16>
    %cst_430 = arith.constant dense<0.000000e+00> : vector<8x32xf32>
    %599 = tpu.matmul %598, %597, %cst_430 {dimension_numbers = #tpu.dot_dimension_numbers<[1], [0], [0], [1], [0, 0, 1, 1], [], []>} : vector<8x8xbf16>, vector<8x32xbf16>, vector<8x32xf32> -> vector<8x32xf32>
    %600 = arith.addf %556, %599 : vector<8x32xf32>
    %c2_431 = arith.constant 2 : index
    %c1_432 = arith.constant 1 : index
    %c0_433 = arith.constant 0 : index
    %c0_434 = arith.constant 0 : index
    %601 = vector.load %arg4[%c2_431, %c1_432, %c0_433, %c0_434] : memref<4x4x32x8xbf16, #tpu.memory_space<vmem>>, vector<1x1x32x8xbf16>
    %602 = vector.shape_cast %601 : vector<1x1x32x8xbf16> to vector<32x8xbf16>
    %603 = arith.truncf %555 : vector<8x32xf32> to vector<8x32xbf16>
    %cst_435 = arith.constant dense<0.000000e+00> : vector<8x8xf32>
    %604 = tpu.matmul %603, %602, %cst_435 {dimension_numbers = #tpu.dot_dimension_numbers<[1], [0], [0], [1], [0, 0, 1, 1], [], []>} : vector<8x32xbf16>, vector<32x8xbf16>, vector<8x8xf32> -> vector<8x8xf32>
    %c2_436 = arith.constant 2 : index
    %c1_437 = arith.constant 1 : index
    %c0_438 = arith.constant 0 : index
    %c0_439 = arith.constant 0 : index
    %605 = vector.load %arg5[%c2_436, %c1_437, %c0_438, %c0_439] : memref<4x4x1x8xf32, #tpu.memory_space<vmem>>, vector<1x1x1x8xf32>
    %606 = vector.shape_cast %605 : vector<1x1x1x8xf32> to vector<1x8xf32>
    %607 = vector.broadcast %606 : vector<1x8xf32> to vector<8x8xf32>
    %608 = arith.addf %604, %607 : vector<8x8xf32>
    %c2_440 = arith.constant 2 : index
    %c1_441 = arith.constant 1 : index
    %c0_442 = arith.constant 0 : index
    %c0_443 = arith.constant 0 : index
    %609 = vector.load %arg6[%c2_440, %c1_441, %c0_442, %c0_443] : memref<4x4x32x8xbf16, #tpu.memory_space<vmem>>, vector<1x1x32x8xbf16>
    %610 = vector.shape_cast %609 : vector<1x1x32x8xbf16> to vector<32x8xbf16>
    %611 = arith.truncf %555 : vector<8x32xf32> to vector<8x32xbf16>
    %cst_444 = arith.constant dense<0.000000e+00> : vector<8x8xf32>
    %612 = tpu.matmul %611, %610, %cst_444 {dimension_numbers = #tpu.dot_dimension_numbers<[1], [0], [0], [1], [0, 0, 1, 1], [], []>} : vector<8x32xbf16>, vector<32x8xbf16>, vector<8x8xf32> -> vector<8x8xf32>
    %c2_445 = arith.constant 2 : index
    %c1_446 = arith.constant 1 : index
    %c0_447 = arith.constant 0 : index
    %c0_448 = arith.constant 0 : index
    %613 = vector.load %arg7[%c2_445, %c1_446, %c0_447, %c0_448] : memref<4x4x1x8xf32, #tpu.memory_space<vmem>>, vector<1x1x1x8xf32>
    %614 = vector.shape_cast %613 : vector<1x1x1x8xf32> to vector<1x8xf32>
    %615 = vector.broadcast %614 : vector<1x8xf32> to vector<8x8xf32>
    %616 = arith.addf %612, %615 : vector<8x8xf32>
    %c2_449 = arith.constant 2 : index
    %c1_450 = arith.constant 1 : index
    %c0_451 = arith.constant 0 : index
    %c0_452 = arith.constant 0 : index
    %617 = vector.load %arg8[%c2_449, %c1_450, %c0_451, %c0_452] : memref<4x4x32x8xbf16, #tpu.memory_space<vmem>>, vector<1x1x32x8xbf16>
    %618 = vector.shape_cast %617 : vector<1x1x32x8xbf16> to vector<32x8xbf16>
    %619 = arith.truncf %555 : vector<8x32xf32> to vector<8x32xbf16>
    %cst_453 = arith.constant dense<0.000000e+00> : vector<8x8xf32>
    %620 = tpu.matmul %619, %618, %cst_453 {dimension_numbers = #tpu.dot_dimension_numbers<[1], [0], [0], [1], [0, 0, 1, 1], [], []>} : vector<8x32xbf16>, vector<32x8xbf16>, vector<8x8xf32> -> vector<8x8xf32>
    %c2_454 = arith.constant 2 : index
    %c1_455 = arith.constant 1 : index
    %c0_456 = arith.constant 0 : index
    %c0_457 = arith.constant 0 : index
    %621 = vector.load %arg9[%c2_454, %c1_455, %c0_456, %c0_457] : memref<4x4x1x8xf32, #tpu.memory_space<vmem>>, vector<1x1x1x8xf32>
    %622 = vector.shape_cast %621 : vector<1x1x1x8xf32> to vector<1x8xf32>
    %623 = vector.broadcast %622 : vector<1x8xf32> to vector<8x8xf32>
    %624 = arith.addf %620, %623 : vector<8x8xf32>
    %625 = tpu.transpose %616, [1, 0] : vector<8x8xf32> -> vector<8x8xf32>
    %cst_458 = arith.constant dense<0.000000e+00> : vector<8x8xf32>
    %626 = tpu.matmul %608, %625, %cst_458 {dimension_numbers = #tpu.dot_dimension_numbers<[1], [0], [0], [1], [0, 0, 1, 1], [], []>} : vector<8x8xf32>, vector<8x8xf32>, vector<8x8xf32> -> vector<8x8xf32>
    %cst_459 = arith.constant 0.353553385 : f32
    %627 = vector.broadcast %cst_459 : f32 to vector<8x8xf32>
    %628 = arith.mulf %626, %627 : vector<8x8xf32>
    %cst_460 = arith.constant dense<0xFF800000> : vector<8xf32>
    %629 = vector.multi_reduction <maximumf>, %628, %cst_460 [1] : vector<8x8xf32> to vector<8xf32>
    %630 = vector.shape_cast %629 : vector<8xf32> to vector<8x1xf32>
    %631 = vector.broadcast %630 : vector<8x1xf32> to vector<8x8xf32>
    %632 = arith.subf %628, %631 : vector<8x8xf32>
    %633 = math.exp %632 : vector<8x8xf32>
    %cst_461 = arith.constant dense<0.000000e+00> : vector<8xf32>
    %634 = vector.multi_reduction <add>, %633, %cst_461 [1] : vector<8x8xf32> to vector<8xf32>
    %635 = vector.shape_cast %634 : vector<8xf32> to vector<8x1xf32>
    %636 = tpu.reciprocal %635 {approx = true} : vector<8x1xf32> -> vector<8x1xf32>
    %637 = vector.broadcast %636 : vector<8x1xf32> to vector<8x8xf32>
    %638 = arith.mulf %633, %637 : vector<8x8xf32>
    %cst_462 = arith.constant dense<0.000000e+00> : vector<8x8xf32>
    %639 = tpu.matmul %638, %624, %cst_462 {dimension_numbers = #tpu.dot_dimension_numbers<[1], [0], [0], [1], [0, 0, 1, 1], [], []>} : vector<8x8xf32>, vector<8x8xf32>, vector<8x8xf32> -> vector<8x8xf32>
    %c2_463 = arith.constant 2 : index
    %c1_464 = arith.constant 1 : index
    %c0_465 = arith.constant 0 : index
    %c0_466 = arith.constant 0 : index
    %640 = vector.load %arg10[%c2_463, %c1_464, %c0_465, %c0_466] : memref<4x4x8x32xbf16, #tpu.memory_space<vmem>>, vector<1x1x8x32xbf16>
    %641 = vector.shape_cast %640 : vector<1x1x8x32xbf16> to vector<8x32xbf16>
    %642 = arith.truncf %639 : vector<8x8xf32> to vector<8x8xbf16>
    %cst_467 = arith.constant dense<0.000000e+00> : vector<8x32xf32>
    %643 = tpu.matmul %642, %641, %cst_467 {dimension_numbers = #tpu.dot_dimension_numbers<[1], [0], [0], [1], [0, 0, 1, 1], [], []>} : vector<8x8xbf16>, vector<8x32xbf16>, vector<8x32xf32> -> vector<8x32xf32>
    %644 = arith.addf %600, %643 : vector<8x32xf32>
    %c2_468 = arith.constant 2 : index
    %c2_469 = arith.constant 2 : index
    %c0_470 = arith.constant 0 : index
    %c0_471 = arith.constant 0 : index
    %645 = vector.load %arg4[%c2_468, %c2_469, %c0_470, %c0_471] : memref<4x4x32x8xbf16, #tpu.memory_space<vmem>>, vector<1x1x32x8xbf16>
    %646 = vector.shape_cast %645 : vector<1x1x32x8xbf16> to vector<32x8xbf16>
    %647 = arith.truncf %555 : vector<8x32xf32> to vector<8x32xbf16>
    %cst_472 = arith.constant dense<0.000000e+00> : vector<8x8xf32>
    %648 = tpu.matmul %647, %646, %cst_472 {dimension_numbers = #tpu.dot_dimension_numbers<[1], [0], [0], [1], [0, 0, 1, 1], [], []>} : vector<8x32xbf16>, vector<32x8xbf16>, vector<8x8xf32> -> vector<8x8xf32>
    %c2_473 = arith.constant 2 : index
    %c2_474 = arith.constant 2 : index
    %c0_475 = arith.constant 0 : index
    %c0_476 = arith.constant 0 : index
    %649 = vector.load %arg5[%c2_473, %c2_474, %c0_475, %c0_476] : memref<4x4x1x8xf32, #tpu.memory_space<vmem>>, vector<1x1x1x8xf32>
    %650 = vector.shape_cast %649 : vector<1x1x1x8xf32> to vector<1x8xf32>
    %651 = vector.broadcast %650 : vector<1x8xf32> to vector<8x8xf32>
    %652 = arith.addf %648, %651 : vector<8x8xf32>
    %c2_477 = arith.constant 2 : index
    %c2_478 = arith.constant 2 : index
    %c0_479 = arith.constant 0 : index
    %c0_480 = arith.constant 0 : index
    %653 = vector.load %arg6[%c2_477, %c2_478, %c0_479, %c0_480] : memref<4x4x32x8xbf16, #tpu.memory_space<vmem>>, vector<1x1x32x8xbf16>
    %654 = vector.shape_cast %653 : vector<1x1x32x8xbf16> to vector<32x8xbf16>
    %655 = arith.truncf %555 : vector<8x32xf32> to vector<8x32xbf16>
    %cst_481 = arith.constant dense<0.000000e+00> : vector<8x8xf32>
    %656 = tpu.matmul %655, %654, %cst_481 {dimension_numbers = #tpu.dot_dimension_numbers<[1], [0], [0], [1], [0, 0, 1, 1], [], []>} : vector<8x32xbf16>, vector<32x8xbf16>, vector<8x8xf32> -> vector<8x8xf32>
    %c2_482 = arith.constant 2 : index
    %c2_483 = arith.constant 2 : index
    %c0_484 = arith.constant 0 : index
    %c0_485 = arith.constant 0 : index
    %657 = vector.load %arg7[%c2_482, %c2_483, %c0_484, %c0_485] : memref<4x4x1x8xf32, #tpu.memory_space<vmem>>, vector<1x1x1x8xf32>
    %658 = vector.shape_cast %657 : vector<1x1x1x8xf32> to vector<1x8xf32>
    %659 = vector.broadcast %658 : vector<1x8xf32> to vector<8x8xf32>
    %660 = arith.addf %656, %659 : vector<8x8xf32>
    %c2_486 = arith.constant 2 : index
    %c2_487 = arith.constant 2 : index
    %c0_488 = arith.constant 0 : index
    %c0_489 = arith.constant 0 : index
    %661 = vector.load %arg8[%c2_486, %c2_487, %c0_488, %c0_489] : memref<4x4x32x8xbf16, #tpu.memory_space<vmem>>, vector<1x1x32x8xbf16>
    %662 = vector.shape_cast %661 : vector<1x1x32x8xbf16> to vector<32x8xbf16>
    %663 = arith.truncf %555 : vector<8x32xf32> to vector<8x32xbf16>
    %cst_490 = arith.constant dense<0.000000e+00> : vector<8x8xf32>
    %664 = tpu.matmul %663, %662, %cst_490 {dimension_numbers = #tpu.dot_dimension_numbers<[1], [0], [0], [1], [0, 0, 1, 1], [], []>} : vector<8x32xbf16>, vector<32x8xbf16>, vector<8x8xf32> -> vector<8x8xf32>
    %c2_491 = arith.constant 2 : index
    %c2_492 = arith.constant 2 : index
    %c0_493 = arith.constant 0 : index
    %c0_494 = arith.constant 0 : index
    %665 = vector.load %arg9[%c2_491, %c2_492, %c0_493, %c0_494] : memref<4x4x1x8xf32, #tpu.memory_space<vmem>>, vector<1x1x1x8xf32>
    %666 = vector.shape_cast %665 : vector<1x1x1x8xf32> to vector<1x8xf32>
    %667 = vector.broadcast %666 : vector<1x8xf32> to vector<8x8xf32>
    %668 = arith.addf %664, %667 : vector<8x8xf32>
    %669 = tpu.transpose %660, [1, 0] : vector<8x8xf32> -> vector<8x8xf32>
    %cst_495 = arith.constant dense<0.000000e+00> : vector<8x8xf32>
    %670 = tpu.matmul %652, %669, %cst_495 {dimension_numbers = #tpu.dot_dimension_numbers<[1], [0], [0], [1], [0, 0, 1, 1], [], []>} : vector<8x8xf32>, vector<8x8xf32>, vector<8x8xf32> -> vector<8x8xf32>
    %cst_496 = arith.constant 0.353553385 : f32
    %671 = vector.broadcast %cst_496 : f32 to vector<8x8xf32>
    %672 = arith.mulf %670, %671 : vector<8x8xf32>
    %cst_497 = arith.constant dense<0xFF800000> : vector<8xf32>
    %673 = vector.multi_reduction <maximumf>, %672, %cst_497 [1] : vector<8x8xf32> to vector<8xf32>
    %674 = vector.shape_cast %673 : vector<8xf32> to vector<8x1xf32>
    %675 = vector.broadcast %674 : vector<8x1xf32> to vector<8x8xf32>
    %676 = arith.subf %672, %675 : vector<8x8xf32>
    %677 = math.exp %676 : vector<8x8xf32>
    %cst_498 = arith.constant dense<0.000000e+00> : vector<8xf32>
    %678 = vector.multi_reduction <add>, %677, %cst_498 [1] : vector<8x8xf32> to vector<8xf32>
    %679 = vector.shape_cast %678 : vector<8xf32> to vector<8x1xf32>
    %680 = tpu.reciprocal %679 {approx = true} : vector<8x1xf32> -> vector<8x1xf32>
    %681 = vector.broadcast %680 : vector<8x1xf32> to vector<8x8xf32>
    %682 = arith.mulf %677, %681 : vector<8x8xf32>
    %cst_499 = arith.constant dense<0.000000e+00> : vector<8x8xf32>
    %683 = tpu.matmul %682, %668, %cst_499 {dimension_numbers = #tpu.dot_dimension_numbers<[1], [0], [0], [1], [0, 0, 1, 1], [], []>} : vector<8x8xf32>, vector<8x8xf32>, vector<8x8xf32> -> vector<8x8xf32>
    %c2_500 = arith.constant 2 : index
    %c2_501 = arith.constant 2 : index
    %c0_502 = arith.constant 0 : index
    %c0_503 = arith.constant 0 : index
    %684 = vector.load %arg10[%c2_500, %c2_501, %c0_502, %c0_503] : memref<4x4x8x32xbf16, #tpu.memory_space<vmem>>, vector<1x1x8x32xbf16>
    %685 = vector.shape_cast %684 : vector<1x1x8x32xbf16> to vector<8x32xbf16>
    %686 = arith.truncf %683 : vector<8x8xf32> to vector<8x8xbf16>
    %cst_504 = arith.constant dense<0.000000e+00> : vector<8x32xf32>
    %687 = tpu.matmul %686, %685, %cst_504 {dimension_numbers = #tpu.dot_dimension_numbers<[1], [0], [0], [1], [0, 0, 1, 1], [], []>} : vector<8x8xbf16>, vector<8x32xbf16>, vector<8x32xf32> -> vector<8x32xf32>
    %688 = arith.addf %644, %687 : vector<8x32xf32>
    %c2_505 = arith.constant 2 : index
    %c3_506 = arith.constant 3 : index
    %c0_507 = arith.constant 0 : index
    %c0_508 = arith.constant 0 : index
    %689 = vector.load %arg4[%c2_505, %c3_506, %c0_507, %c0_508] : memref<4x4x32x8xbf16, #tpu.memory_space<vmem>>, vector<1x1x32x8xbf16>
    %690 = vector.shape_cast %689 : vector<1x1x32x8xbf16> to vector<32x8xbf16>
    %691 = arith.truncf %555 : vector<8x32xf32> to vector<8x32xbf16>
    %cst_509 = arith.constant dense<0.000000e+00> : vector<8x8xf32>
    %692 = tpu.matmul %691, %690, %cst_509 {dimension_numbers = #tpu.dot_dimension_numbers<[1], [0], [0], [1], [0, 0, 1, 1], [], []>} : vector<8x32xbf16>, vector<32x8xbf16>, vector<8x8xf32> -> vector<8x8xf32>
    %c2_510 = arith.constant 2 : index
    %c3_511 = arith.constant 3 : index
    %c0_512 = arith.constant 0 : index
    %c0_513 = arith.constant 0 : index
    %693 = vector.load %arg5[%c2_510, %c3_511, %c0_512, %c0_513] : memref<4x4x1x8xf32, #tpu.memory_space<vmem>>, vector<1x1x1x8xf32>
    %694 = vector.shape_cast %693 : vector<1x1x1x8xf32> to vector<1x8xf32>
    %695 = vector.broadcast %694 : vector<1x8xf32> to vector<8x8xf32>
    %696 = arith.addf %692, %695 : vector<8x8xf32>
    %c2_514 = arith.constant 2 : index
    %c3_515 = arith.constant 3 : index
    %c0_516 = arith.constant 0 : index
    %c0_517 = arith.constant 0 : index
    %697 = vector.load %arg6[%c2_514, %c3_515, %c0_516, %c0_517] : memref<4x4x32x8xbf16, #tpu.memory_space<vmem>>, vector<1x1x32x8xbf16>
    %698 = vector.shape_cast %697 : vector<1x1x32x8xbf16> to vector<32x8xbf16>
    %699 = arith.truncf %555 : vector<8x32xf32> to vector<8x32xbf16>
    %cst_518 = arith.constant dense<0.000000e+00> : vector<8x8xf32>
    %700 = tpu.matmul %699, %698, %cst_518 {dimension_numbers = #tpu.dot_dimension_numbers<[1], [0], [0], [1], [0, 0, 1, 1], [], []>} : vector<8x32xbf16>, vector<32x8xbf16>, vector<8x8xf32> -> vector<8x8xf32>
    %c2_519 = arith.constant 2 : index
    %c3_520 = arith.constant 3 : index
    %c0_521 = arith.constant 0 : index
    %c0_522 = arith.constant 0 : index
    %701 = vector.load %arg7[%c2_519, %c3_520, %c0_521, %c0_522] : memref<4x4x1x8xf32, #tpu.memory_space<vmem>>, vector<1x1x1x8xf32>
    %702 = vector.shape_cast %701 : vector<1x1x1x8xf32> to vector<1x8xf32>
    %703 = vector.broadcast %702 : vector<1x8xf32> to vector<8x8xf32>
    %704 = arith.addf %700, %703 : vector<8x8xf32>
    %c2_523 = arith.constant 2 : index
    %c3_524 = arith.constant 3 : index
    %c0_525 = arith.constant 0 : index
    %c0_526 = arith.constant 0 : index
    %705 = vector.load %arg8[%c2_523, %c3_524, %c0_525, %c0_526] : memref<4x4x32x8xbf16, #tpu.memory_space<vmem>>, vector<1x1x32x8xbf16>
    %706 = vector.shape_cast %705 : vector<1x1x32x8xbf16> to vector<32x8xbf16>
    %707 = arith.truncf %555 : vector<8x32xf32> to vector<8x32xbf16>
    %cst_527 = arith.constant dense<0.000000e+00> : vector<8x8xf32>
    %708 = tpu.matmul %707, %706, %cst_527 {dimension_numbers = #tpu.dot_dimension_numbers<[1], [0], [0], [1], [0, 0, 1, 1], [], []>} : vector<8x32xbf16>, vector<32x8xbf16>, vector<8x8xf32> -> vector<8x8xf32>
    %c2_528 = arith.constant 2 : index
    %c3_529 = arith.constant 3 : index
    %c0_530 = arith.constant 0 : index
    %c0_531 = arith.constant 0 : index
    %709 = vector.load %arg9[%c2_528, %c3_529, %c0_530, %c0_531] : memref<4x4x1x8xf32, #tpu.memory_space<vmem>>, vector<1x1x1x8xf32>
    %710 = vector.shape_cast %709 : vector<1x1x1x8xf32> to vector<1x8xf32>
    %711 = vector.broadcast %710 : vector<1x8xf32> to vector<8x8xf32>
    %712 = arith.addf %708, %711 : vector<8x8xf32>
    %713 = tpu.transpose %704, [1, 0] : vector<8x8xf32> -> vector<8x8xf32>
    %cst_532 = arith.constant dense<0.000000e+00> : vector<8x8xf32>
    %714 = tpu.matmul %696, %713, %cst_532 {dimension_numbers = #tpu.dot_dimension_numbers<[1], [0], [0], [1], [0, 0, 1, 1], [], []>} : vector<8x8xf32>, vector<8x8xf32>, vector<8x8xf32> -> vector<8x8xf32>
    %cst_533 = arith.constant 0.353553385 : f32
    %715 = vector.broadcast %cst_533 : f32 to vector<8x8xf32>
    %716 = arith.mulf %714, %715 : vector<8x8xf32>
    %cst_534 = arith.constant dense<0xFF800000> : vector<8xf32>
    %717 = vector.multi_reduction <maximumf>, %716, %cst_534 [1] : vector<8x8xf32> to vector<8xf32>
    %718 = vector.shape_cast %717 : vector<8xf32> to vector<8x1xf32>
    %719 = vector.broadcast %718 : vector<8x1xf32> to vector<8x8xf32>
    %720 = arith.subf %716, %719 : vector<8x8xf32>
    %721 = math.exp %720 : vector<8x8xf32>
    %cst_535 = arith.constant dense<0.000000e+00> : vector<8xf32>
    %722 = vector.multi_reduction <add>, %721, %cst_535 [1] : vector<8x8xf32> to vector<8xf32>
    %723 = vector.shape_cast %722 : vector<8xf32> to vector<8x1xf32>
    %724 = tpu.reciprocal %723 {approx = true} : vector<8x1xf32> -> vector<8x1xf32>
    %725 = vector.broadcast %724 : vector<8x1xf32> to vector<8x8xf32>
    %726 = arith.mulf %721, %725 : vector<8x8xf32>
    %cst_536 = arith.constant dense<0.000000e+00> : vector<8x8xf32>
    %727 = tpu.matmul %726, %712, %cst_536 {dimension_numbers = #tpu.dot_dimension_numbers<[1], [0], [0], [1], [0, 0, 1, 1], [], []>} : vector<8x8xf32>, vector<8x8xf32>, vector<8x8xf32> -> vector<8x8xf32>
    %c2_537 = arith.constant 2 : index
    %c3_538 = arith.constant 3 : index
    %c0_539 = arith.constant 0 : index
    %c0_540 = arith.constant 0 : index
    %728 = vector.load %arg10[%c2_537, %c3_538, %c0_539, %c0_540] : memref<4x4x8x32xbf16, #tpu.memory_space<vmem>>, vector<1x1x8x32xbf16>
    %729 = vector.shape_cast %728 : vector<1x1x8x32xbf16> to vector<8x32xbf16>
    %730 = arith.truncf %727 : vector<8x8xf32> to vector<8x8xbf16>
    %cst_541 = arith.constant dense<0.000000e+00> : vector<8x32xf32>
    %731 = tpu.matmul %730, %729, %cst_541 {dimension_numbers = #tpu.dot_dimension_numbers<[1], [0], [0], [1], [0, 0, 1, 1], [], []>} : vector<8x8xbf16>, vector<8x32xbf16>, vector<8x32xf32> -> vector<8x32xf32>
    %732 = arith.addf %688, %731 : vector<8x32xf32>
    %733 = arith.addf %529, %732 : vector<8x32xf32>
    %c2_542 = arith.constant 2 : index
    %c0_543 = arith.constant 0 : index
    %c0_544 = arith.constant 0 : index
    %734 = vector.load %arg11[%c2_542, %c0_543, %c0_544] : memref<4x1x32xf32, #tpu.memory_space<vmem>>, vector<1x1x32xf32>
    %735 = vector.shape_cast %734 : vector<1x1x32xf32> to vector<1x32xf32>
    %736 = vector.broadcast %735 : vector<1x32xf32> to vector<8x32xf32>
    %737 = arith.addf %733, %736 : vector<8x32xf32>
    %c2_545 = arith.constant 2 : index
    %c0_546 = arith.constant 0 : index
    %c0_547 = arith.constant 0 : index
    %738 = vector.load %arg12[%c2_545, %c0_546, %c0_547] : memref<4x1x32xf32, #tpu.memory_space<vmem>>, vector<1x1x32xf32>
    %739 = vector.shape_cast %738 : vector<1x1x32xf32> to vector<1x32xf32>
    %c2_548 = arith.constant 2 : index
    %c0_549 = arith.constant 0 : index
    %c0_550 = arith.constant 0 : index
    %740 = vector.load %arg13[%c2_548, %c0_549, %c0_550] : memref<4x1x32xf32, #tpu.memory_space<vmem>>, vector<1x1x32xf32>
    %741 = vector.shape_cast %740 : vector<1x1x32xf32> to vector<1x32xf32>
    %cst_551 = arith.constant dense<0.000000e+00> : vector<8xf32>
    %742 = vector.multi_reduction <add>, %737, %cst_551 [1] : vector<8x32xf32> to vector<8xf32>
    %743 = vector.shape_cast %742 : vector<8xf32> to vector<8x1xf32>
    %cst_552 = arith.constant 3.200000e+01 : f32
    %744 = vector.broadcast %cst_552 : f32 to vector<8x1xf32>
    %745 = arith.divf %743, %744 : vector<8x1xf32>
    %746 = vector.broadcast %745 : vector<8x1xf32> to vector<8x32xf32>
    %747 = arith.subf %737, %746 : vector<8x32xf32>
    %748 = arith.mulf %747, %747 : vector<8x32xf32>
    %cst_553 = arith.constant dense<0.000000e+00> : vector<8xf32>
    %749 = vector.multi_reduction <add>, %748, %cst_553 [1] : vector<8x32xf32> to vector<8xf32>
    %750 = vector.shape_cast %749 : vector<8xf32> to vector<8x1xf32>
    %cst_554 = arith.constant 3.200000e+01 : f32
    %751 = vector.broadcast %cst_554 : f32 to vector<8x1xf32>
    %752 = arith.divf %750, %751 : vector<8x1xf32>
    %753 = vector.broadcast %745 : vector<8x1xf32> to vector<8x32xf32>
    %754 = arith.subf %737, %753 : vector<8x32xf32>
    %cst_555 = arith.constant 9.99999974E-6 : f32
    %755 = vector.broadcast %cst_555 : f32 to vector<8x1xf32>
    %756 = arith.addf %752, %755 : vector<8x1xf32>
    %757 = math.rsqrt %756 : vector<8x1xf32>
    %758 = vector.broadcast %757 : vector<8x1xf32> to vector<8x32xf32>
    %759 = arith.mulf %754, %758 : vector<8x32xf32>
    %760 = vector.broadcast %739 : vector<1x32xf32> to vector<8x32xf32>
    %761 = arith.mulf %759, %760 : vector<8x32xf32>
    %762 = vector.broadcast %741 : vector<1x32xf32> to vector<8x32xf32>
    %763 = arith.addf %761, %762 : vector<8x32xf32>
    %c2_556 = arith.constant 2 : index
    %c0_557 = arith.constant 0 : index
    %c0_558 = arith.constant 0 : index
    %764 = vector.load %arg14[%c2_556, %c0_557, %c0_558] : memref<4x32x64xbf16, #tpu.memory_space<vmem>>, vector<1x32x64xbf16>
    %765 = vector.shape_cast %764 : vector<1x32x64xbf16> to vector<32x64xbf16>
    %766 = arith.truncf %763 : vector<8x32xf32> to vector<8x32xbf16>
    %cst_559 = arith.constant dense<0.000000e+00> : vector<8x64xf32>
    %767 = tpu.matmul %766, %765, %cst_559 {dimension_numbers = #tpu.dot_dimension_numbers<[1], [0], [0], [1], [0, 0, 1, 1], [], []>} : vector<8x32xbf16>, vector<32x64xbf16>, vector<8x64xf32> -> vector<8x64xf32>
    %c2_560 = arith.constant 2 : index
    %c0_561 = arith.constant 0 : index
    %c0_562 = arith.constant 0 : index
    %768 = vector.load %arg15[%c2_560, %c0_561, %c0_562] : memref<4x1x64xf32, #tpu.memory_space<vmem>>, vector<1x1x64xf32>
    %769 = vector.shape_cast %768 : vector<1x1x64xf32> to vector<1x64xf32>
    %770 = vector.broadcast %769 : vector<1x64xf32> to vector<8x64xf32>
    %771 = arith.addf %767, %770 : vector<8x64xf32>
    %772 = arith.mulf %771, %771 : vector<8x64xf32>
    %773 = arith.mulf %771, %772 : vector<8x64xf32>
    %cst_563 = arith.constant 4.471500e-02 : f32
    %774 = vector.broadcast %cst_563 : f32 to vector<8x64xf32>
    %775 = arith.mulf %774, %773 : vector<8x64xf32>
    %776 = arith.addf %771, %775 : vector<8x64xf32>
    %cst_564 = arith.constant 0.797884583 : f32
    %777 = vector.broadcast %cst_564 : f32 to vector<8x64xf32>
    %778 = arith.mulf %777, %776 : vector<8x64xf32>
    %779 = math.tanh %778 : vector<8x64xf32>
    %cst_565 = arith.constant 1.000000e+00 : f32
    %780 = vector.broadcast %cst_565 : f32 to vector<8x64xf32>
    %781 = arith.addf %780, %779 : vector<8x64xf32>
    %cst_566 = arith.constant 5.000000e-01 : f32
    %782 = vector.broadcast %cst_566 : f32 to vector<8x64xf32>
    %783 = arith.mulf %782, %781 : vector<8x64xf32>
    %784 = arith.mulf %771, %783 : vector<8x64xf32>
    %c2_567 = arith.constant 2 : index
    %c0_568 = arith.constant 0 : index
    %c0_569 = arith.constant 0 : index
    %785 = vector.load %arg16[%c2_567, %c0_568, %c0_569] : memref<4x64x32xbf16, #tpu.memory_space<vmem>>, vector<1x64x32xbf16>
    %786 = vector.shape_cast %785 : vector<1x64x32xbf16> to vector<64x32xbf16>
    %787 = arith.truncf %784 : vector<8x64xf32> to vector<8x64xbf16>
    %cst_570 = arith.constant dense<0.000000e+00> : vector<8x32xf32>
    %788 = tpu.matmul %787, %786, %cst_570 {dimension_numbers = #tpu.dot_dimension_numbers<[1], [0], [0], [1], [0, 0, 1, 1], [], []>} : vector<8x64xbf16>, vector<64x32xbf16>, vector<8x32xf32> -> vector<8x32xf32>
    %c2_571 = arith.constant 2 : index
    %c0_572 = arith.constant 0 : index
    %c0_573 = arith.constant 0 : index
    %789 = vector.load %arg17[%c2_571, %c0_572, %c0_573] : memref<4x1x32xf32, #tpu.memory_space<vmem>>, vector<1x1x32xf32>
    %790 = vector.shape_cast %789 : vector<1x1x32xf32> to vector<1x32xf32>
    %791 = vector.broadcast %790 : vector<1x32xf32> to vector<8x32xf32>
    %792 = arith.addf %788, %791 : vector<8x32xf32>
    %793 = arith.addf %737, %792 : vector<8x32xf32>
    %c3_574 = arith.constant 3 : index
    %c0_575 = arith.constant 0 : index
    %c0_576 = arith.constant 0 : index
    %794 = vector.load %arg2[%c3_574, %c0_575, %c0_576] : memref<4x1x32xf32, #tpu.memory_space<vmem>>, vector<1x1x32xf32>
    %795 = vector.shape_cast %794 : vector<1x1x32xf32> to vector<1x32xf32>
    %c3_577 = arith.constant 3 : index
    %c0_578 = arith.constant 0 : index
    %c0_579 = arith.constant 0 : index
    %796 = vector.load %arg3[%c3_577, %c0_578, %c0_579] : memref<4x1x32xf32, #tpu.memory_space<vmem>>, vector<1x1x32xf32>
    %797 = vector.shape_cast %796 : vector<1x1x32xf32> to vector<1x32xf32>
    %cst_580 = arith.constant dense<0.000000e+00> : vector<8xf32>
    %798 = vector.multi_reduction <add>, %793, %cst_580 [1] : vector<8x32xf32> to vector<8xf32>
    %799 = vector.shape_cast %798 : vector<8xf32> to vector<8x1xf32>
    %cst_581 = arith.constant 3.200000e+01 : f32
    %800 = vector.broadcast %cst_581 : f32 to vector<8x1xf32>
    %801 = arith.divf %799, %800 : vector<8x1xf32>
    %802 = vector.broadcast %801 : vector<8x1xf32> to vector<8x32xf32>
    %803 = arith.subf %793, %802 : vector<8x32xf32>
    %804 = arith.mulf %803, %803 : vector<8x32xf32>
    %cst_582 = arith.constant dense<0.000000e+00> : vector<8xf32>
    %805 = vector.multi_reduction <add>, %804, %cst_582 [1] : vector<8x32xf32> to vector<8xf32>
    %806 = vector.shape_cast %805 : vector<8xf32> to vector<8x1xf32>
    %cst_583 = arith.constant 3.200000e+01 : f32
    %807 = vector.broadcast %cst_583 : f32 to vector<8x1xf32>
    %808 = arith.divf %806, %807 : vector<8x1xf32>
    %809 = vector.broadcast %801 : vector<8x1xf32> to vector<8x32xf32>
    %810 = arith.subf %793, %809 : vector<8x32xf32>
    %cst_584 = arith.constant 9.99999974E-6 : f32
    %811 = vector.broadcast %cst_584 : f32 to vector<8x1xf32>
    %812 = arith.addf %808, %811 : vector<8x1xf32>
    %813 = math.rsqrt %812 : vector<8x1xf32>
    %814 = vector.broadcast %813 : vector<8x1xf32> to vector<8x32xf32>
    %815 = arith.mulf %810, %814 : vector<8x32xf32>
    %816 = vector.broadcast %795 : vector<1x32xf32> to vector<8x32xf32>
    %817 = arith.mulf %815, %816 : vector<8x32xf32>
    %818 = vector.broadcast %797 : vector<1x32xf32> to vector<8x32xf32>
    %819 = arith.addf %817, %818 : vector<8x32xf32>
    %cst_585 = arith.constant 0.000000e+00 : f32
    %820 = vector.broadcast %cst_585 : f32 to vector<8x32xf32>
    %c3_586 = arith.constant 3 : index
    %c0_587 = arith.constant 0 : index
    %c0_588 = arith.constant 0 : index
    %c0_589 = arith.constant 0 : index
    %821 = vector.load %arg4[%c3_586, %c0_587, %c0_588, %c0_589] : memref<4x4x32x8xbf16, #tpu.memory_space<vmem>>, vector<1x1x32x8xbf16>
    %822 = vector.shape_cast %821 : vector<1x1x32x8xbf16> to vector<32x8xbf16>
    %823 = arith.truncf %819 : vector<8x32xf32> to vector<8x32xbf16>
    %cst_590 = arith.constant dense<0.000000e+00> : vector<8x8xf32>
    %824 = tpu.matmul %823, %822, %cst_590 {dimension_numbers = #tpu.dot_dimension_numbers<[1], [0], [0], [1], [0, 0, 1, 1], [], []>} : vector<8x32xbf16>, vector<32x8xbf16>, vector<8x8xf32> -> vector<8x8xf32>
    %c3_591 = arith.constant 3 : index
    %c0_592 = arith.constant 0 : index
    %c0_593 = arith.constant 0 : index
    %c0_594 = arith.constant 0 : index
    %825 = vector.load %arg5[%c3_591, %c0_592, %c0_593, %c0_594] : memref<4x4x1x8xf32, #tpu.memory_space<vmem>>, vector<1x1x1x8xf32>
    %826 = vector.shape_cast %825 : vector<1x1x1x8xf32> to vector<1x8xf32>
    %827 = vector.broadcast %826 : vector<1x8xf32> to vector<8x8xf32>
    %828 = arith.addf %824, %827 : vector<8x8xf32>
    %c3_595 = arith.constant 3 : index
    %c0_596 = arith.constant 0 : index
    %c0_597 = arith.constant 0 : index
    %c0_598 = arith.constant 0 : index
    %829 = vector.load %arg6[%c3_595, %c0_596, %c0_597, %c0_598] : memref<4x4x32x8xbf16, #tpu.memory_space<vmem>>, vector<1x1x32x8xbf16>
    %830 = vector.shape_cast %829 : vector<1x1x32x8xbf16> to vector<32x8xbf16>
    %831 = arith.truncf %819 : vector<8x32xf32> to vector<8x32xbf16>
    %cst_599 = arith.constant dense<0.000000e+00> : vector<8x8xf32>
    %832 = tpu.matmul %831, %830, %cst_599 {dimension_numbers = #tpu.dot_dimension_numbers<[1], [0], [0], [1], [0, 0, 1, 1], [], []>} : vector<8x32xbf16>, vector<32x8xbf16>, vector<8x8xf32> -> vector<8x8xf32>
    %c3_600 = arith.constant 3 : index
    %c0_601 = arith.constant 0 : index
    %c0_602 = arith.constant 0 : index
    %c0_603 = arith.constant 0 : index
    %833 = vector.load %arg7[%c3_600, %c0_601, %c0_602, %c0_603] : memref<4x4x1x8xf32, #tpu.memory_space<vmem>>, vector<1x1x1x8xf32>
    %834 = vector.shape_cast %833 : vector<1x1x1x8xf32> to vector<1x8xf32>
    %835 = vector.broadcast %834 : vector<1x8xf32> to vector<8x8xf32>
    %836 = arith.addf %832, %835 : vector<8x8xf32>
    %c3_604 = arith.constant 3 : index
    %c0_605 = arith.constant 0 : index
    %c0_606 = arith.constant 0 : index
    %c0_607 = arith.constant 0 : index
    %837 = vector.load %arg8[%c3_604, %c0_605, %c0_606, %c0_607] : memref<4x4x32x8xbf16, #tpu.memory_space<vmem>>, vector<1x1x32x8xbf16>
    %838 = vector.shape_cast %837 : vector<1x1x32x8xbf16> to vector<32x8xbf16>
    %839 = arith.truncf %819 : vector<8x32xf32> to vector<8x32xbf16>
    %cst_608 = arith.constant dense<0.000000e+00> : vector<8x8xf32>
    %840 = tpu.matmul %839, %838, %cst_608 {dimension_numbers = #tpu.dot_dimension_numbers<[1], [0], [0], [1], [0, 0, 1, 1], [], []>} : vector<8x32xbf16>, vector<32x8xbf16>, vector<8x8xf32> -> vector<8x8xf32>
    %c3_609 = arith.constant 3 : index
    %c0_610 = arith.constant 0 : index
    %c0_611 = arith.constant 0 : index
    %c0_612 = arith.constant 0 : index
    %841 = vector.load %arg9[%c3_609, %c0_610, %c0_611, %c0_612] : memref<4x4x1x8xf32, #tpu.memory_space<vmem>>, vector<1x1x1x8xf32>
    %842 = vector.shape_cast %841 : vector<1x1x1x8xf32> to vector<1x8xf32>
    %843 = vector.broadcast %842 : vector<1x8xf32> to vector<8x8xf32>
    %844 = arith.addf %840, %843 : vector<8x8xf32>
    %845 = tpu.transpose %836, [1, 0] : vector<8x8xf32> -> vector<8x8xf32>
    %cst_613 = arith.constant dense<0.000000e+00> : vector<8x8xf32>
    %846 = tpu.matmul %828, %845, %cst_613 {dimension_numbers = #tpu.dot_dimension_numbers<[1], [0], [0], [1], [0, 0, 1, 1], [], []>} : vector<8x8xf32>, vector<8x8xf32>, vector<8x8xf32> -> vector<8x8xf32>
    %cst_614 = arith.constant 0.353553385 : f32
    %847 = vector.broadcast %cst_614 : f32 to vector<8x8xf32>
    %848 = arith.mulf %846, %847 : vector<8x8xf32>
    %cst_615 = arith.constant dense<0xFF800000> : vector<8xf32>
    %849 = vector.multi_reduction <maximumf>, %848, %cst_615 [1] : vector<8x8xf32> to vector<8xf32>
    %850 = vector.shape_cast %849 : vector<8xf32> to vector<8x1xf32>
    %851 = vector.broadcast %850 : vector<8x1xf32> to vector<8x8xf32>
    %852 = arith.subf %848, %851 : vector<8x8xf32>
    %853 = math.exp %852 : vector<8x8xf32>
    %cst_616 = arith.constant dense<0.000000e+00> : vector<8xf32>
    %854 = vector.multi_reduction <add>, %853, %cst_616 [1] : vector<8x8xf32> to vector<8xf32>
    %855 = vector.shape_cast %854 : vector<8xf32> to vector<8x1xf32>
    %856 = tpu.reciprocal %855 {approx = true} : vector<8x1xf32> -> vector<8x1xf32>
    %857 = vector.broadcast %856 : vector<8x1xf32> to vector<8x8xf32>
    %858 = arith.mulf %853, %857 : vector<8x8xf32>
    %cst_617 = arith.constant dense<0.000000e+00> : vector<8x8xf32>
    %859 = tpu.matmul %858, %844, %cst_617 {dimension_numbers = #tpu.dot_dimension_numbers<[1], [0], [0], [1], [0, 0, 1, 1], [], []>} : vector<8x8xf32>, vector<8x8xf32>, vector<8x8xf32> -> vector<8x8xf32>
    %c3_618 = arith.constant 3 : index
    %c0_619 = arith.constant 0 : index
    %c0_620 = arith.constant 0 : index
    %c0_621 = arith.constant 0 : index
    %860 = vector.load %arg10[%c3_618, %c0_619, %c0_620, %c0_621] : memref<4x4x8x32xbf16, #tpu.memory_space<vmem>>, vector<1x1x8x32xbf16>
    %861 = vector.shape_cast %860 : vector<1x1x8x32xbf16> to vector<8x32xbf16>
    %862 = arith.truncf %859 : vector<8x8xf32> to vector<8x8xbf16>
    %cst_622 = arith.constant dense<0.000000e+00> : vector<8x32xf32>
    %863 = tpu.matmul %862, %861, %cst_622 {dimension_numbers = #tpu.dot_dimension_numbers<[1], [0], [0], [1], [0, 0, 1, 1], [], []>} : vector<8x8xbf16>, vector<8x32xbf16>, vector<8x32xf32> -> vector<8x32xf32>
    %864 = arith.addf %820, %863 : vector<8x32xf32>
    %c3_623 = arith.constant 3 : index
    %c1_624 = arith.constant 1 : index
    %c0_625 = arith.constant 0 : index
    %c0_626 = arith.constant 0 : index
    %865 = vector.load %arg4[%c3_623, %c1_624, %c0_625, %c0_626] : memref<4x4x32x8xbf16, #tpu.memory_space<vmem>>, vector<1x1x32x8xbf16>
    %866 = vector.shape_cast %865 : vector<1x1x32x8xbf16> to vector<32x8xbf16>
    %867 = arith.truncf %819 : vector<8x32xf32> to vector<8x32xbf16>
    %cst_627 = arith.constant dense<0.000000e+00> : vector<8x8xf32>
    %868 = tpu.matmul %867, %866, %cst_627 {dimension_numbers = #tpu.dot_dimension_numbers<[1], [0], [0], [1], [0, 0, 1, 1], [], []>} : vector<8x32xbf16>, vector<32x8xbf16>, vector<8x8xf32> -> vector<8x8xf32>
    %c3_628 = arith.constant 3 : index
    %c1_629 = arith.constant 1 : index
    %c0_630 = arith.constant 0 : index
    %c0_631 = arith.constant 0 : index
    %869 = vector.load %arg5[%c3_628, %c1_629, %c0_630, %c0_631] : memref<4x4x1x8xf32, #tpu.memory_space<vmem>>, vector<1x1x1x8xf32>
    %870 = vector.shape_cast %869 : vector<1x1x1x8xf32> to vector<1x8xf32>
    %871 = vector.broadcast %870 : vector<1x8xf32> to vector<8x8xf32>
    %872 = arith.addf %868, %871 : vector<8x8xf32>
    %c3_632 = arith.constant 3 : index
    %c1_633 = arith.constant 1 : index
    %c0_634 = arith.constant 0 : index
    %c0_635 = arith.constant 0 : index
    %873 = vector.load %arg6[%c3_632, %c1_633, %c0_634, %c0_635] : memref<4x4x32x8xbf16, #tpu.memory_space<vmem>>, vector<1x1x32x8xbf16>
    %874 = vector.shape_cast %873 : vector<1x1x32x8xbf16> to vector<32x8xbf16>
    %875 = arith.truncf %819 : vector<8x32xf32> to vector<8x32xbf16>
    %cst_636 = arith.constant dense<0.000000e+00> : vector<8x8xf32>
    %876 = tpu.matmul %875, %874, %cst_636 {dimension_numbers = #tpu.dot_dimension_numbers<[1], [0], [0], [1], [0, 0, 1, 1], [], []>} : vector<8x32xbf16>, vector<32x8xbf16>, vector<8x8xf32> -> vector<8x8xf32>
    %c3_637 = arith.constant 3 : index
    %c1_638 = arith.constant 1 : index
    %c0_639 = arith.constant 0 : index
    %c0_640 = arith.constant 0 : index
    %877 = vector.load %arg7[%c3_637, %c1_638, %c0_639, %c0_640] : memref<4x4x1x8xf32, #tpu.memory_space<vmem>>, vector<1x1x1x8xf32>
    %878 = vector.shape_cast %877 : vector<1x1x1x8xf32> to vector<1x8xf32>
    %879 = vector.broadcast %878 : vector<1x8xf32> to vector<8x8xf32>
    %880 = arith.addf %876, %879 : vector<8x8xf32>
    %c3_641 = arith.constant 3 : index
    %c1_642 = arith.constant 1 : index
    %c0_643 = arith.constant 0 : index
    %c0_644 = arith.constant 0 : index
    %881 = vector.load %arg8[%c3_641, %c1_642, %c0_643, %c0_644] : memref<4x4x32x8xbf16, #tpu.memory_space<vmem>>, vector<1x1x32x8xbf16>
    %882 = vector.shape_cast %881 : vector<1x1x32x8xbf16> to vector<32x8xbf16>
    %883 = arith.truncf %819 : vector<8x32xf32> to vector<8x32xbf16>
    %cst_645 = arith.constant dense<0.000000e+00> : vector<8x8xf32>
    %884 = tpu.matmul %883, %882, %cst_645 {dimension_numbers = #tpu.dot_dimension_numbers<[1], [0], [0], [1], [0, 0, 1, 1], [], []>} : vector<8x32xbf16>, vector<32x8xbf16>, vector<8x8xf32> -> vector<8x8xf32>
    %c3_646 = arith.constant 3 : index
    %c1_647 = arith.constant 1 : index
    %c0_648 = arith.constant 0 : index
    %c0_649 = arith.constant 0 : index
    %885 = vector.load %arg9[%c3_646, %c1_647, %c0_648, %c0_649] : memref<4x4x1x8xf32, #tpu.memory_space<vmem>>, vector<1x1x1x8xf32>
    %886 = vector.shape_cast %885 : vector<1x1x1x8xf32> to vector<1x8xf32>
    %887 = vector.broadcast %886 : vector<1x8xf32> to vector<8x8xf32>
    %888 = arith.addf %884, %887 : vector<8x8xf32>
    %889 = tpu.transpose %880, [1, 0] : vector<8x8xf32> -> vector<8x8xf32>
    %cst_650 = arith.constant dense<0.000000e+00> : vector<8x8xf32>
    %890 = tpu.matmul %872, %889, %cst_650 {dimension_numbers = #tpu.dot_dimension_numbers<[1], [0], [0], [1], [0, 0, 1, 1], [], []>} : vector<8x8xf32>, vector<8x8xf32>, vector<8x8xf32> -> vector<8x8xf32>
    %cst_651 = arith.constant 0.353553385 : f32
    %891 = vector.broadcast %cst_651 : f32 to vector<8x8xf32>
    %892 = arith.mulf %890, %891 : vector<8x8xf32>
    %cst_652 = arith.constant dense<0xFF800000> : vector<8xf32>
    %893 = vector.multi_reduction <maximumf>, %892, %cst_652 [1] : vector<8x8xf32> to vector<8xf32>
    %894 = vector.shape_cast %893 : vector<8xf32> to vector<8x1xf32>
    %895 = vector.broadcast %894 : vector<8x1xf32> to vector<8x8xf32>
    %896 = arith.subf %892, %895 : vector<8x8xf32>
    %897 = math.exp %896 : vector<8x8xf32>
    %cst_653 = arith.constant dense<0.000000e+00> : vector<8xf32>
    %898 = vector.multi_reduction <add>, %897, %cst_653 [1] : vector<8x8xf32> to vector<8xf32>
    %899 = vector.shape_cast %898 : vector<8xf32> to vector<8x1xf32>
    %900 = tpu.reciprocal %899 {approx = true} : vector<8x1xf32> -> vector<8x1xf32>
    %901 = vector.broadcast %900 : vector<8x1xf32> to vector<8x8xf32>
    %902 = arith.mulf %897, %901 : vector<8x8xf32>
    %cst_654 = arith.constant dense<0.000000e+00> : vector<8x8xf32>
    %903 = tpu.matmul %902, %888, %cst_654 {dimension_numbers = #tpu.dot_dimension_numbers<[1], [0], [0], [1], [0, 0, 1, 1], [], []>} : vector<8x8xf32>, vector<8x8xf32>, vector<8x8xf32> -> vector<8x8xf32>
    %c3_655 = arith.constant 3 : index
    %c1_656 = arith.constant 1 : index
    %c0_657 = arith.constant 0 : index
    %c0_658 = arith.constant 0 : index
    %904 = vector.load %arg10[%c3_655, %c1_656, %c0_657, %c0_658] : memref<4x4x8x32xbf16, #tpu.memory_space<vmem>>, vector<1x1x8x32xbf16>
    %905 = vector.shape_cast %904 : vector<1x1x8x32xbf16> to vector<8x32xbf16>
    %906 = arith.truncf %903 : vector<8x8xf32> to vector<8x8xbf16>
    %cst_659 = arith.constant dense<0.000000e+00> : vector<8x32xf32>
    %907 = tpu.matmul %906, %905, %cst_659 {dimension_numbers = #tpu.dot_dimension_numbers<[1], [0], [0], [1], [0, 0, 1, 1], [], []>} : vector<8x8xbf16>, vector<8x32xbf16>, vector<8x32xf32> -> vector<8x32xf32>
    %908 = arith.addf %864, %907 : vector<8x32xf32>
    %c3_660 = arith.constant 3 : index
    %c2_661 = arith.constant 2 : index
    %c0_662 = arith.constant 0 : index
    %c0_663 = arith.constant 0 : index
    %909 = vector.load %arg4[%c3_660, %c2_661, %c0_662, %c0_663] : memref<4x4x32x8xbf16, #tpu.memory_space<vmem>>, vector<1x1x32x8xbf16>
    %910 = vector.shape_cast %909 : vector<1x1x32x8xbf16> to vector<32x8xbf16>
    %911 = arith.truncf %819 : vector<8x32xf32> to vector<8x32xbf16>
    %cst_664 = arith.constant dense<0.000000e+00> : vector<8x8xf32>
    %912 = tpu.matmul %911, %910, %cst_664 {dimension_numbers = #tpu.dot_dimension_numbers<[1], [0], [0], [1], [0, 0, 1, 1], [], []>} : vector<8x32xbf16>, vector<32x8xbf16>, vector<8x8xf32> -> vector<8x8xf32>
    %c3_665 = arith.constant 3 : index
    %c2_666 = arith.constant 2 : index
    %c0_667 = arith.constant 0 : index
    %c0_668 = arith.constant 0 : index
    %913 = vector.load %arg5[%c3_665, %c2_666, %c0_667, %c0_668] : memref<4x4x1x8xf32, #tpu.memory_space<vmem>>, vector<1x1x1x8xf32>
    %914 = vector.shape_cast %913 : vector<1x1x1x8xf32> to vector<1x8xf32>
    %915 = vector.broadcast %914 : vector<1x8xf32> to vector<8x8xf32>
    %916 = arith.addf %912, %915 : vector<8x8xf32>
    %c3_669 = arith.constant 3 : index
    %c2_670 = arith.constant 2 : index
    %c0_671 = arith.constant 0 : index
    %c0_672 = arith.constant 0 : index
    %917 = vector.load %arg6[%c3_669, %c2_670, %c0_671, %c0_672] : memref<4x4x32x8xbf16, #tpu.memory_space<vmem>>, vector<1x1x32x8xbf16>
    %918 = vector.shape_cast %917 : vector<1x1x32x8xbf16> to vector<32x8xbf16>
    %919 = arith.truncf %819 : vector<8x32xf32> to vector<8x32xbf16>
    %cst_673 = arith.constant dense<0.000000e+00> : vector<8x8xf32>
    %920 = tpu.matmul %919, %918, %cst_673 {dimension_numbers = #tpu.dot_dimension_numbers<[1], [0], [0], [1], [0, 0, 1, 1], [], []>} : vector<8x32xbf16>, vector<32x8xbf16>, vector<8x8xf32> -> vector<8x8xf32>
    %c3_674 = arith.constant 3 : index
    %c2_675 = arith.constant 2 : index
    %c0_676 = arith.constant 0 : index
    %c0_677 = arith.constant 0 : index
    %921 = vector.load %arg7[%c3_674, %c2_675, %c0_676, %c0_677] : memref<4x4x1x8xf32, #tpu.memory_space<vmem>>, vector<1x1x1x8xf32>
    %922 = vector.shape_cast %921 : vector<1x1x1x8xf32> to vector<1x8xf32>
    %923 = vector.broadcast %922 : vector<1x8xf32> to vector<8x8xf32>
    %924 = arith.addf %920, %923 : vector<8x8xf32>
    %c3_678 = arith.constant 3 : index
    %c2_679 = arith.constant 2 : index
    %c0_680 = arith.constant 0 : index
    %c0_681 = arith.constant 0 : index
    %925 = vector.load %arg8[%c3_678, %c2_679, %c0_680, %c0_681] : memref<4x4x32x8xbf16, #tpu.memory_space<vmem>>, vector<1x1x32x8xbf16>
    %926 = vector.shape_cast %925 : vector<1x1x32x8xbf16> to vector<32x8xbf16>
    %927 = arith.truncf %819 : vector<8x32xf32> to vector<8x32xbf16>
    %cst_682 = arith.constant dense<0.000000e+00> : vector<8x8xf32>
    %928 = tpu.matmul %927, %926, %cst_682 {dimension_numbers = #tpu.dot_dimension_numbers<[1], [0], [0], [1], [0, 0, 1, 1], [], []>} : vector<8x32xbf16>, vector<32x8xbf16>, vector<8x8xf32> -> vector<8x8xf32>
    %c3_683 = arith.constant 3 : index
    %c2_684 = arith.constant 2 : index
    %c0_685 = arith.constant 0 : index
    %c0_686 = arith.constant 0 : index
    %929 = vector.load %arg9[%c3_683, %c2_684, %c0_685, %c0_686] : memref<4x4x1x8xf32, #tpu.memory_space<vmem>>, vector<1x1x1x8xf32>
    %930 = vector.shape_cast %929 : vector<1x1x1x8xf32> to vector<1x8xf32>
    %931 = vector.broadcast %930 : vector<1x8xf32> to vector<8x8xf32>
    %932 = arith.addf %928, %931 : vector<8x8xf32>
    %933 = tpu.transpose %924, [1, 0] : vector<8x8xf32> -> vector<8x8xf32>
    %cst_687 = arith.constant dense<0.000000e+00> : vector<8x8xf32>
    %934 = tpu.matmul %916, %933, %cst_687 {dimension_numbers = #tpu.dot_dimension_numbers<[1], [0], [0], [1], [0, 0, 1, 1], [], []>} : vector<8x8xf32>, vector<8x8xf32>, vector<8x8xf32> -> vector<8x8xf32>
    %cst_688 = arith.constant 0.353553385 : f32
    %935 = vector.broadcast %cst_688 : f32 to vector<8x8xf32>
    %936 = arith.mulf %934, %935 : vector<8x8xf32>
    %cst_689 = arith.constant dense<0xFF800000> : vector<8xf32>
    %937 = vector.multi_reduction <maximumf>, %936, %cst_689 [1] : vector<8x8xf32> to vector<8xf32>
    %938 = vector.shape_cast %937 : vector<8xf32> to vector<8x1xf32>
    %939 = vector.broadcast %938 : vector<8x1xf32> to vector<8x8xf32>
    %940 = arith.subf %936, %939 : vector<8x8xf32>
    %941 = math.exp %940 : vector<8x8xf32>
    %cst_690 = arith.constant dense<0.000000e+00> : vector<8xf32>
    %942 = vector.multi_reduction <add>, %941, %cst_690 [1] : vector<8x8xf32> to vector<8xf32>
    %943 = vector.shape_cast %942 : vector<8xf32> to vector<8x1xf32>
    %944 = tpu.reciprocal %943 {approx = true} : vector<8x1xf32> -> vector<8x1xf32>
    %945 = vector.broadcast %944 : vector<8x1xf32> to vector<8x8xf32>
    %946 = arith.mulf %941, %945 : vector<8x8xf32>
    %cst_691 = arith.constant dense<0.000000e+00> : vector<8x8xf32>
    %947 = tpu.matmul %946, %932, %cst_691 {dimension_numbers = #tpu.dot_dimension_numbers<[1], [0], [0], [1], [0, 0, 1, 1], [], []>} : vector<8x8xf32>, vector<8x8xf32>, vector<8x8xf32> -> vector<8x8xf32>
    %c3_692 = arith.constant 3 : index
    %c2_693 = arith.constant 2 : index
    %c0_694 = arith.constant 0 : index
    %c0_695 = arith.constant 0 : index
    %948 = vector.load %arg10[%c3_692, %c2_693, %c0_694, %c0_695] : memref<4x4x8x32xbf16, #tpu.memory_space<vmem>>, vector<1x1x8x32xbf16>
    %949 = vector.shape_cast %948 : vector<1x1x8x32xbf16> to vector<8x32xbf16>
    %950 = arith.truncf %947 : vector<8x8xf32> to vector<8x8xbf16>
    %cst_696 = arith.constant dense<0.000000e+00> : vector<8x32xf32>
    %951 = tpu.matmul %950, %949, %cst_696 {dimension_numbers = #tpu.dot_dimension_numbers<[1], [0], [0], [1], [0, 0, 1, 1], [], []>} : vector<8x8xbf16>, vector<8x32xbf16>, vector<8x32xf32> -> vector<8x32xf32>
    %952 = arith.addf %908, %951 : vector<8x32xf32>
    %c3_697 = arith.constant 3 : index
    %c3_698 = arith.constant 3 : index
    %c0_699 = arith.constant 0 : index
    %c0_700 = arith.constant 0 : index
    %953 = vector.load %arg4[%c3_697, %c3_698, %c0_699, %c0_700] : memref<4x4x32x8xbf16, #tpu.memory_space<vmem>>, vector<1x1x32x8xbf16>
    %954 = vector.shape_cast %953 : vector<1x1x32x8xbf16> to vector<32x8xbf16>
    %955 = arith.truncf %819 : vector<8x32xf32> to vector<8x32xbf16>
    %cst_701 = arith.constant dense<0.000000e+00> : vector<8x8xf32>
    %956 = tpu.matmul %955, %954, %cst_701 {dimension_numbers = #tpu.dot_dimension_numbers<[1], [0], [0], [1], [0, 0, 1, 1], [], []>} : vector<8x32xbf16>, vector<32x8xbf16>, vector<8x8xf32> -> vector<8x8xf32>
    %c3_702 = arith.constant 3 : index
    %c3_703 = arith.constant 3 : index
    %c0_704 = arith.constant 0 : index
    %c0_705 = arith.constant 0 : index
    %957 = vector.load %arg5[%c3_702, %c3_703, %c0_704, %c0_705] : memref<4x4x1x8xf32, #tpu.memory_space<vmem>>, vector<1x1x1x8xf32>
    %958 = vector.shape_cast %957 : vector<1x1x1x8xf32> to vector<1x8xf32>
    %959 = vector.broadcast %958 : vector<1x8xf32> to vector<8x8xf32>
    %960 = arith.addf %956, %959 : vector<8x8xf32>
    %c3_706 = arith.constant 3 : index
    %c3_707 = arith.constant 3 : index
    %c0_708 = arith.constant 0 : index
    %c0_709 = arith.constant 0 : index
    %961 = vector.load %arg6[%c3_706, %c3_707, %c0_708, %c0_709] : memref<4x4x32x8xbf16, #tpu.memory_space<vmem>>, vector<1x1x32x8xbf16>
    %962 = vector.shape_cast %961 : vector<1x1x32x8xbf16> to vector<32x8xbf16>
    %963 = arith.truncf %819 : vector<8x32xf32> to vector<8x32xbf16>
    %cst_710 = arith.constant dense<0.000000e+00> : vector<8x8xf32>
    %964 = tpu.matmul %963, %962, %cst_710 {dimension_numbers = #tpu.dot_dimension_numbers<[1], [0], [0], [1], [0, 0, 1, 1], [], []>} : vector<8x32xbf16>, vector<32x8xbf16>, vector<8x8xf32> -> vector<8x8xf32>
    %c3_711 = arith.constant 3 : index
    %c3_712 = arith.constant 3 : index
    %c0_713 = arith.constant 0 : index
    %c0_714 = arith.constant 0 : index
    %965 = vector.load %arg7[%c3_711, %c3_712, %c0_713, %c0_714] : memref<4x4x1x8xf32, #tpu.memory_space<vmem>>, vector<1x1x1x8xf32>
    %966 = vector.shape_cast %965 : vector<1x1x1x8xf32> to vector<1x8xf32>
    %967 = vector.broadcast %966 : vector<1x8xf32> to vector<8x8xf32>
    %968 = arith.addf %964, %967 : vector<8x8xf32>
    %c3_715 = arith.constant 3 : index
    %c3_716 = arith.constant 3 : index
    %c0_717 = arith.constant 0 : index
    %c0_718 = arith.constant 0 : index
    %969 = vector.load %arg8[%c3_715, %c3_716, %c0_717, %c0_718] : memref<4x4x32x8xbf16, #tpu.memory_space<vmem>>, vector<1x1x32x8xbf16>
    %970 = vector.shape_cast %969 : vector<1x1x32x8xbf16> to vector<32x8xbf16>
    %971 = arith.truncf %819 : vector<8x32xf32> to vector<8x32xbf16>
    %cst_719 = arith.constant dense<0.000000e+00> : vector<8x8xf32>
    %972 = tpu.matmul %971, %970, %cst_719 {dimension_numbers = #tpu.dot_dimension_numbers<[1], [0], [0], [1], [0, 0, 1, 1], [], []>} : vector<8x32xbf16>, vector<32x8xbf16>, vector<8x8xf32> -> vector<8x8xf32>
    %c3_720 = arith.constant 3 : index
    %c3_721 = arith.constant 3 : index
    %c0_722 = arith.constant 0 : index
    %c0_723 = arith.constant 0 : index
    %973 = vector.load %arg9[%c3_720, %c3_721, %c0_722, %c0_723] : memref<4x4x1x8xf32, #tpu.memory_space<vmem>>, vector<1x1x1x8xf32>
    %974 = vector.shape_cast %973 : vector<1x1x1x8xf32> to vector<1x8xf32>
    %975 = vector.broadcast %974 : vector<1x8xf32> to vector<8x8xf32>
    %976 = arith.addf %972, %975 : vector<8x8xf32>
    %977 = tpu.transpose %968, [1, 0] : vector<8x8xf32> -> vector<8x8xf32>
    %cst_724 = arith.constant dense<0.000000e+00> : vector<8x8xf32>
    %978 = tpu.matmul %960, %977, %cst_724 {dimension_numbers = #tpu.dot_dimension_numbers<[1], [0], [0], [1], [0, 0, 1, 1], [], []>} : vector<8x8xf32>, vector<8x8xf32>, vector<8x8xf32> -> vector<8x8xf32>
    %cst_725 = arith.constant 0.353553385 : f32
    %979 = vector.broadcast %cst_725 : f32 to vector<8x8xf32>
    %980 = arith.mulf %978, %979 : vector<8x8xf32>
    %cst_726 = arith.constant dense<0xFF800000> : vector<8xf32>
    %981 = vector.multi_reduction <maximumf>, %980, %cst_726 [1] : vector<8x8xf32> to vector<8xf32>
    %982 = vector.shape_cast %981 : vector<8xf32> to vector<8x1xf32>
    %983 = vector.broadcast %982 : vector<8x1xf32> to vector<8x8xf32>
    %984 = arith.subf %980, %983 : vector<8x8xf32>
    %985 = math.exp %984 : vector<8x8xf32>
    %cst_727 = arith.constant dense<0.000000e+00> : vector<8xf32>
    %986 = vector.multi_reduction <add>, %985, %cst_727 [1] : vector<8x8xf32> to vector<8xf32>
    %987 = vector.shape_cast %986 : vector<8xf32> to vector<8x1xf32>
    %988 = tpu.reciprocal %987 {approx = true} : vector<8x1xf32> -> vector<8x1xf32>
    %989 = vector.broadcast %988 : vector<8x1xf32> to vector<8x8xf32>
    %990 = arith.mulf %985, %989 : vector<8x8xf32>
    %cst_728 = arith.constant dense<0.000000e+00> : vector<8x8xf32>
    %991 = tpu.matmul %990, %976, %cst_728 {dimension_numbers = #tpu.dot_dimension_numbers<[1], [0], [0], [1], [0, 0, 1, 1], [], []>} : vector<8x8xf32>, vector<8x8xf32>, vector<8x8xf32> -> vector<8x8xf32>
    %c3_729 = arith.constant 3 : index
    %c3_730 = arith.constant 3 : index
    %c0_731 = arith.constant 0 : index
    %c0_732 = arith.constant 0 : index
    %992 = vector.load %arg10[%c3_729, %c3_730, %c0_731, %c0_732] : memref<4x4x8x32xbf16, #tpu.memory_space<vmem>>, vector<1x1x8x32xbf16>
    %993 = vector.shape_cast %992 : vector<1x1x8x32xbf16> to vector<8x32xbf16>
    %994 = arith.truncf %991 : vector<8x8xf32> to vector<8x8xbf16>
    %cst_733 = arith.constant dense<0.000000e+00> : vector<8x32xf32>
    %995 = tpu.matmul %994, %993, %cst_733 {dimension_numbers = #tpu.dot_dimension_numbers<[1], [0], [0], [1], [0, 0, 1, 1], [], []>} : vector<8x8xbf16>, vector<8x32xbf16>, vector<8x32xf32> -> vector<8x32xf32>
    %996 = arith.addf %952, %995 : vector<8x32xf32>
    %997 = arith.addf %793, %996 : vector<8x32xf32>
    %c3_734 = arith.constant 3 : index
    %c0_735 = arith.constant 0 : index
    %c0_736 = arith.constant 0 : index
    %998 = vector.load %arg11[%c3_734, %c0_735, %c0_736] : memref<4x1x32xf32, #tpu.memory_space<vmem>>, vector<1x1x32xf32>
    %999 = vector.shape_cast %998 : vector<1x1x32xf32> to vector<1x32xf32>
    %1000 = vector.broadcast %999 : vector<1x32xf32> to vector<8x32xf32>
    %1001 = arith.addf %997, %1000 : vector<8x32xf32>
    %c3_737 = arith.constant 3 : index
    %c0_738 = arith.constant 0 : index
    %c0_739 = arith.constant 0 : index
    %1002 = vector.load %arg12[%c3_737, %c0_738, %c0_739] : memref<4x1x32xf32, #tpu.memory_space<vmem>>, vector<1x1x32xf32>
    %1003 = vector.shape_cast %1002 : vector<1x1x32xf32> to vector<1x32xf32>
    %c3_740 = arith.constant 3 : index
    %c0_741 = arith.constant 0 : index
    %c0_742 = arith.constant 0 : index
    %1004 = vector.load %arg13[%c3_740, %c0_741, %c0_742] : memref<4x1x32xf32, #tpu.memory_space<vmem>>, vector<1x1x32xf32>
    %1005 = vector.shape_cast %1004 : vector<1x1x32xf32> to vector<1x32xf32>
    %cst_743 = arith.constant dense<0.000000e+00> : vector<8xf32>
    %1006 = vector.multi_reduction <add>, %1001, %cst_743 [1] : vector<8x32xf32> to vector<8xf32>
    %1007 = vector.shape_cast %1006 : vector<8xf32> to vector<8x1xf32>
    %cst_744 = arith.constant 3.200000e+01 : f32
    %1008 = vector.broadcast %cst_744 : f32 to vector<8x1xf32>
    %1009 = arith.divf %1007, %1008 : vector<8x1xf32>
    %1010 = vector.broadcast %1009 : vector<8x1xf32> to vector<8x32xf32>
    %1011 = arith.subf %1001, %1010 : vector<8x32xf32>
    %1012 = arith.mulf %1011, %1011 : vector<8x32xf32>
    %cst_745 = arith.constant dense<0.000000e+00> : vector<8xf32>
    %1013 = vector.multi_reduction <add>, %1012, %cst_745 [1] : vector<8x32xf32> to vector<8xf32>
    %1014 = vector.shape_cast %1013 : vector<8xf32> to vector<8x1xf32>
    %cst_746 = arith.constant 3.200000e+01 : f32
    %1015 = vector.broadcast %cst_746 : f32 to vector<8x1xf32>
    %1016 = arith.divf %1014, %1015 : vector<8x1xf32>
    %1017 = vector.broadcast %1009 : vector<8x1xf32> to vector<8x32xf32>
    %1018 = arith.subf %1001, %1017 : vector<8x32xf32>
    %cst_747 = arith.constant 9.99999974E-6 : f32
    %1019 = vector.broadcast %cst_747 : f32 to vector<8x1xf32>
    %1020 = arith.addf %1016, %1019 : vector<8x1xf32>
    %1021 = math.rsqrt %1020 : vector<8x1xf32>
    %1022 = vector.broadcast %1021 : vector<8x1xf32> to vector<8x32xf32>
    %1023 = arith.mulf %1018, %1022 : vector<8x32xf32>
    %1024 = vector.broadcast %1003 : vector<1x32xf32> to vector<8x32xf32>
    %1025 = arith.mulf %1023, %1024 : vector<8x32xf32>
    %1026 = vector.broadcast %1005 : vector<1x32xf32> to vector<8x32xf32>
    %1027 = arith.addf %1025, %1026 : vector<8x32xf32>
    %c3_748 = arith.constant 3 : index
    %c0_749 = arith.constant 0 : index
    %c0_750 = arith.constant 0 : index
    %1028 = vector.load %arg14[%c3_748, %c0_749, %c0_750] : memref<4x32x64xbf16, #tpu.memory_space<vmem>>, vector<1x32x64xbf16>
    %1029 = vector.shape_cast %1028 : vector<1x32x64xbf16> to vector<32x64xbf16>
    %1030 = arith.truncf %1027 : vector<8x32xf32> to vector<8x32xbf16>
    %cst_751 = arith.constant dense<0.000000e+00> : vector<8x64xf32>
    %1031 = tpu.matmul %1030, %1029, %cst_751 {dimension_numbers = #tpu.dot_dimension_numbers<[1], [0], [0], [1], [0, 0, 1, 1], [], []>} : vector<8x32xbf16>, vector<32x64xbf16>, vector<8x64xf32> -> vector<8x64xf32>
    %c3_752 = arith.constant 3 : index
    %c0_753 = arith.constant 0 : index
    %c0_754 = arith.constant 0 : index
    %1032 = vector.load %arg15[%c3_752, %c0_753, %c0_754] : memref<4x1x64xf32, #tpu.memory_space<vmem>>, vector<1x1x64xf32>
    %1033 = vector.shape_cast %1032 : vector<1x1x64xf32> to vector<1x64xf32>
    %1034 = vector.broadcast %1033 : vector<1x64xf32> to vector<8x64xf32>
    %1035 = arith.addf %1031, %1034 : vector<8x64xf32>
    %1036 = arith.mulf %1035, %1035 : vector<8x64xf32>
    %1037 = arith.mulf %1035, %1036 : vector<8x64xf32>
    %cst_755 = arith.constant 4.471500e-02 : f32
    %1038 = vector.broadcast %cst_755 : f32 to vector<8x64xf32>
    %1039 = arith.mulf %1038, %1037 : vector<8x64xf32>
    %1040 = arith.addf %1035, %1039 : vector<8x64xf32>
    %cst_756 = arith.constant 0.797884583 : f32
    %1041 = vector.broadcast %cst_756 : f32 to vector<8x64xf32>
    %1042 = arith.mulf %1041, %1040 : vector<8x64xf32>
    %1043 = math.tanh %1042 : vector<8x64xf32>
    %cst_757 = arith.constant 1.000000e+00 : f32
    %1044 = vector.broadcast %cst_757 : f32 to vector<8x64xf32>
    %1045 = arith.addf %1044, %1043 : vector<8x64xf32>
    %cst_758 = arith.constant 5.000000e-01 : f32
    %1046 = vector.broadcast %cst_758 : f32 to vector<8x64xf32>
    %1047 = arith.mulf %1046, %1045 : vector<8x64xf32>
    %1048 = arith.mulf %1035, %1047 : vector<8x64xf32>
    %c3_759 = arith.constant 3 : index
    %c0_760 = arith.constant 0 : index
    %c0_761 = arith.constant 0 : index
    %1049 = vector.load %arg16[%c3_759, %c0_760, %c0_761] : memref<4x64x32xbf16, #tpu.memory_space<vmem>>, vector<1x64x32xbf16>
    %1050 = vector.shape_cast %1049 : vector<1x64x32xbf16> to vector<64x32xbf16>
    %1051 = arith.truncf %1048 : vector<8x64xf32> to vector<8x64xbf16>
    %cst_762 = arith.constant dense<0.000000e+00> : vector<8x32xf32>
    %1052 = tpu.matmul %1051, %1050, %cst_762 {dimension_numbers = #tpu.dot_dimension_numbers<[1], [0], [0], [1], [0, 0, 1, 1], [], []>} : vector<8x64xbf16>, vector<64x32xbf16>, vector<8x32xf32> -> vector<8x32xf32>
    %c3_763 = arith.constant 3 : index
    %c0_764 = arith.constant 0 : index
    %c0_765 = arith.constant 0 : index
    %1053 = vector.load %arg17[%c3_763, %c0_764, %c0_765] : memref<4x1x32xf32, #tpu.memory_space<vmem>>, vector<1x1x32xf32>
    %1054 = vector.shape_cast %1053 : vector<1x1x32xf32> to vector<1x32xf32>
    %1055 = vector.broadcast %1054 : vector<1x32xf32> to vector<8x32xf32>
    %1056 = arith.addf %1052, %1055 : vector<8x32xf32>
    %1057 = arith.addf %1001, %1056 : vector<8x32xf32>
    %c0_766 = arith.constant 0 : index
    %c0_767 = arith.constant 0 : index
    %1058 = vector.load %arg18[%c0_766, %c0_767] : memref<32x16xbf16, #tpu.memory_space<vmem>>, vector<32x16xbf16>
    %1059 = arith.truncf %1057 : vector<8x32xf32> to vector<8x32xbf16>
    %cst_768 = arith.constant dense<0.000000e+00> : vector<8x16xf32>
    %1060 = tpu.matmul %1059, %1058, %cst_768 {dimension_numbers = #tpu.dot_dimension_numbers<[1], [0], [0], [1], [0, 0, 1, 1], [], []>} : vector<8x32xbf16>, vector<32x16xbf16>, vector<8x16xf32> -> vector<8x16xf32>
    %c0_769 = arith.constant 0 : index
    %c0_770 = arith.constant 0 : index
    %1061 = vector.load %arg19[%c0_769, %c0_770] : memref<1x16xf32, #tpu.memory_space<vmem>>, vector<1x16xf32>
    %1062 = vector.broadcast %1061 : vector<1x16xf32> to vector<8x16xf32>
    %1063 = arith.addf %1060, %1062 : vector<8x16xf32>
    %c0_771 = arith.constant 0 : index
    %c0_772 = arith.constant 0 : index
    %c0_773 = arith.constant 0 : index
    %1064 = vector.load %arg20[%c0_771, %c0_772, %c0_773] : memref<1x8x16xf32, #tpu.memory_space<vmem>>, vector<1x8x16xf32>
    %1065 = vector.shape_cast %1064 : vector<1x8x16xf32> to vector<8x16xf32>
    %1066 = vector.shape_cast %1063 : vector<8x16xf32> to vector<1x8x16xf32>
    tpu.vector_store %arg20[%c0_771, %c0_772, %c0_773], %1066 {strides = array<i32>} : memref<1x8x16xf32, #tpu.memory_space<vmem>>, vector<1x8x16xf32>,
    return
  }
  func.func @transform_0(%arg0: i32) -> (i32, i32, i32) {
    %c0_i32 = arith.constant 0 : i32
    %c0_i32_0 = arith.constant 0 : i32
    %c0_i32_1 = arith.constant 0 : i32
    return %arg0, %c0_i32, %c0_i32_0 : i32, i32, i32
  }
  func.func @transform_1(%arg0: i32) -> (i32, i32, i32) {
    %c0_i32 = arith.constant 0 : i32
    %c0_i32_0 = arith.constant 0 : i32
    %c0_i32_1 = arith.constant 0 : i32
    %c0_i32_2 = arith.constant 0 : i32
    return %c0_i32, %c0_i32_0, %c0_i32_1 : i32, i32, i32
  }
  func.func @transform_2(%arg0: i32) -> (i32, i32, i32) {
    %c0_i32 = arith.constant 0 : i32
    %c0_i32_0 = arith.constant 0 : i32
    %c0_i32_1 = arith.constant 0 : i32
    %c0_i32_2 = arith.constant 0 : i32
    return %c0_i32, %c0_i32_0, %c0_i32_1 : i32, i32, i32
  }
  func.func @transform_3(%arg0: i32) -> (i32, i32, i32, i32) {
    %c0_i32 = arith.constant 0 : i32
    %c0_i32_0 = arith.constant 0 : i32
    %c0_i32_1 = arith.constant 0 : i32
    %c0_i32_2 = arith.constant 0 : i32
    %c0_i32_3 = arith.constant 0 : i32
    return %c0_i32, %c0_i32_0, %c0_i32_1, %c0_i32_2 : i32, i32, i32, i32
  }
  func.func @transform_4(%arg0: i32) -> (i32, i32, i32, i32) {
    %c0_i32 = arith.constant 0 : i32
    %c0_i32_0 = arith.constant 0 : i32
    %c0_i32_1 = arith.constant 0 : i32
    %c0_i32_2 = arith.constant 0 : i32
    %c0_i32_3 = arith.constant 0 : i32
    return %c0_i32, %c0_i32_0, %c0_i32_1, %c0_i32_2 : i32, i32, i32, i32
  }
  func.func @transform_5(%arg0: i32) -> (i32, i32, i32, i32) {
    %c0_i32 = arith.constant 0 : i32
    %c0_i32_0 = arith.constant 0 : i32
    %c0_i32_1 = arith.constant 0 : i32
    %c0_i32_2 = arith.constant 0 : i32
    %c0_i32_3 = arith.constant 0 : i32
    return %c0_i32, %c0_i32_0, %c0_i32_1, %c0_i32_2 : i32, i32, i32, i32
  }
  func.func @transform_6(%arg0: i32) -> (i32, i32, i32, i32) {
    %c0_i32 = arith.constant 0 : i32
    %c0_i32_0 = arith.constant 0 : i32
    %c0_i32_1 = arith.constant 0 : i32
    %c0_i32_2 = arith.constant 0 : i32
    %c0_i32_3 = arith.constant 0 : i32
    return %c0_i32, %c0_i32_0, %c0_i32_1, %c0_i32_2 : i32, i32, i32, i32
  }
  func.func @transform_7(%arg0: i32) -> (i32, i32, i32, i32) {
    %c0_i32 = arith.constant 0 : i32
    %c0_i32_0 = arith.constant 0 : i32
    %c0_i32_1 = arith.constant 0 : i32
    %c0_i32_2 = arith.constant 0 : i32
    %c0_i32_3 = arith.constant 0 : i32
    return %c0_i32, %c0_i32_0, %c0_i32_1, %c0_i32_2 : i32, i32, i32, i32
  }
  func.func @transform_8(%arg0: i32) -> (i32, i32, i32, i32) {
    %c0_i32 = arith.constant 0 : i32
    %c0_i32_0 = arith.constant 0 : i32
    %c0_i32_1 = arith.constant 0 : i32
    %c0_i32_2 = arith.constant 0 : i32
    %c0_i32_3 = arith.constant 0 : i32
    return %c0_i32, %c0_i32_0, %c0_i32_1, %c0_i32_2 : i32, i32, i32, i32
  }
  func.func @transform_9(%arg0: i32) -> (i32, i32, i32, i32) {
    %c0_i32 = arith.constant 0 : i32
    %c0_i32_0 = arith.constant 0 : i32
    %c0_i32_1 = arith.constant 0 : i32
    %c0_i32_2 = arith.constant 0 : i32
    %c0_i32_3 = arith.constant 0 : i32
    return %c0_i32, %c0_i32_0, %c0_i32_1, %c0_i32_2 : i32, i32, i32, i32
  }
  func.func @transform_10(%arg0: i32) -> (i32, i32, i32) {
    %c0_i32 = arith.constant 0 : i32
    %c0_i32_0 = arith.constant 0 : i32
    %c0_i32_1 = arith.constant 0 : i32
    %c0_i32_2 = arith.constant 0 : i32
    return %c0_i32, %c0_i32_0, %c0_i32_1 : i32, i32, i32
  }
  func.func @transform_11(%arg0: i32) -> (i32, i32, i32) {
    %c0_i32 = arith.constant 0 : i32
    %c0_i32_0 = arith.constant 0 : i32
    %c0_i32_1 = arith.constant 0 : i32
    %c0_i32_2 = arith.constant 0 : i32
    return %c0_i32, %c0_i32_0, %c0_i32_1 : i32, i32, i32
  }
  func.func @transform_12(%arg0: i32) -> (i32, i32, i32) {
    %c0_i32 = arith.constant 0 : i32
    %c0_i32_0 = arith.constant 0 : i32
    %c0_i32_1 = arith.constant 0 : i32
    %c0_i32_2 = arith.constant 0 : i32
    return %c0_i32, %c0_i32_0, %c0_i32_1 : i32, i32, i32
  }
  func.func @transform_13(%arg0: i32) -> (i32, i32, i32) {
    %c0_i32 = arith.constant 0 : i32
    %c0_i32_0 = arith.constant 0 : i32
    %c0_i32_1 = arith.constant 0 : i32
    %c0_i32_2 = arith.constant 0 : i32
    return %c0_i32, %c0_i32_0, %c0_i32_1 : i32, i32, i32
  }
  func.func @transform_14(%arg0: i32) -> (i32, i32, i32) {
    %c0_i32 = arith.constant 0 : i32
    %c0_i32_0 = arith.constant 0 : i32
    %c0_i32_1 = arith.constant 0 : i32
    %c0_i32_2 = arith.constant 0 : i32
    return %c0_i32, %c0_i32_0, %c0_i32_1 : i32, i32, i32
  }
  func.func @transform_15(%arg0: i32) -> (i32, i32, i32) {
    %c0_i32 = arith.constant 0 : i32
    %c0_i32_0 = arith.constant 0 : i32
    %c0_i32_1 = arith.constant 0 : i32
    %c0_i32_2 = arith.constant 0 : i32
    return %c0_i32, %c0_i32_0, %c0_i32_1 : i32, i32, i32
  }
  func.func @transform_16(%arg0: i32) -> (i32, i32, i32) {
    %c0_i32 = arith.constant 0 : i32
    %c0_i32_0 = arith.constant 0 : i32
    %c0_i32_1 = arith.constant 0 : i32
    %c0_i32_2 = arith.constant 0 : i32
    return %c0_i32, %c0_i32_0, %c0_i32_1 : i32, i32, i32
  }
  func.func @transform_17(%arg0: i32) -> (i32, i32) {
    %c0_i32 = arith.constant 0 : i32
    %c0_i32_0 = arith.constant 0 : i32
    %c0_i32_1 = arith.constant 0 : i32
    return %c0_i32, %c0_i32_0 : i32, i32
  }
  func.func @transform_18(%arg0: i32) -> (i32, i32) {
    %c0_i32 = arith.constant 0 : i32
    %c0_i32_0 = arith.constant 0 : i32
    %c0_i32_1 = arith.constant 0 : i32
    return %c0_i32, %c0_i32_0 : i32, i32
  }
  func.func @transform_19(%arg0: i32) -> (i32, i32, i32) {
    %c0_i32 = arith.constant 0 : i32
    %c0_i32_0 = arith.constant 0 : i32
    %c0_i32_1 = arith.constant 0 : i32
    return %arg0, %c0_i32, %c0_i32_0 : i32, i32, i32
  }
}

</mosaic_0001>

<bundles_post_ra>
// kernel: tpu_custom_call.1
= control target key start
LH: loop header
LB: loop body
LE: loop exit
PB: predicated region body
PF: predicated region fallthrough
CT: control target
= control target key end

     0   :  { %s11654_s0 = inlined_call_operand.vmem [shape: f32[2,8,32], index: 0, kind: input, shape index: {}]   ;;  %s11655_s1 = inlined_call_operand.vmem [shape: f32[4,1,32], index: 1, kind: input, shape index: {}]   ;;  %s11656_s2 = inlined_call_operand.vmem [shape: f32[4,1,32], index: 2, kind: input, shape index: {}]   ;;  %s11657_s3 = inlined_call_operand.vmem [shape: bf16[4,4,32,8], index: 3, kind: input, shape index: {}]   ;;  %s11658_s4 = inlined_call_operand.vmem [shape: f32[4,4,1,8], index: 4, kind: input, shape index: {}]   ;;  %s11659_s5 = inlined_call_operand.vmem [shape: bf16[4,4,32,8], index: 5, kind: input, shape index: {}]   ;;  %s11660_s6 = inlined_call_operand.vmem [shape: f32[4,4,1,8], index: 6, kind: input, shape index: {}]   ;;  %s11661_s7 = inlined_call_operand.vmem [shape: bf16[4,4,32,8], index: 7, kind: input, shape index: {}]   ;;  %s11662_s8 = inlined_call_operand.vmem [shape: f32[4,4,1,8], index: 8, kind: input, shape index: {}]   ;;  %s11663_s9 = inlined_call_operand.vmem [shape: bf16[4,4,8,32], index: 9, kind: input, shape index: {}]   ;;  %s11664_s10 = inlined_call_operand.vmem [shape: f32[4,1,32], index: 10, kind: input, shape index: {}]   ;;  %s11665_s11 = inlined_call_operand.vmem [shape: f32[4,1,32], index: 11, kind: input, shape index: {}]   ;;  %s11666_s12 = inlined_call_operand.vmem [shape: f32[4,1,32], index: 12, kind: input, shape index: {}]   ;;  %s11667_s13 = inlined_call_operand.vmem [shape: bf16[4,32,64], index: 13, kind: input, shape index: {}]   ;;  %s11668_s14 = inlined_call_operand.vmem [shape: f32[4,1,64], index: 14, kind: input, shape index: {}]   ;;  %s11669_s15 = inlined_call_operand.vmem [shape: bf16[4,64,32], index: 15, kind: input, shape index: {}]   ;;  %s11670_s16 = inlined_call_operand.vmem [shape: f32[4,1,32], index: 16, kind: input, shape index: {}]   ;;  %s11671_s17 = inlined_call_operand.vmem [shape: bf16[32,16], index: 17, kind: input, shape index: {}]   ;;  %s11672_s18 = inlined_call_operand.vmem [shape: f32[1,16], index: 18, kind: input, shape index: {}]   ;;  %s11673_s19 = inlined_call_operand.hbm [shape: f32[2,8,16], index: 19, kind: output, shape index: {}]  }
   0x1   :  { %11683 = sst [smem:[#allocation10_spill]] %s11654_s0 }
   0x2   :  { %11684 = sst [smem:[#allocation11_spill]] %s11655_s1 }
   0x3   :  { %11685 = sst [smem:[#allocation12_spill]] %s11656_s2 }
   0x4   :  { %11686 = sst [smem:[#allocation13_spill]] %s11657_s3 }
   0x5   :  { %11687 = sst [smem:[#allocation14_spill]] %s11658_s4 }
   0x6   :  { %11688 = sst [smem:[#allocation15_spill]] %s11659_s5 }
   0x7   :  { %24 = vsyncpa [#allocation3], 0 }
   0x8   :  { %26 = vsyncpa [#allocation3 + $0x1], 0  ;;  %s10226_s0 = smov 0   ;;  %s10228_s30 = smov 0  }
   0x9   :  { %s10230_s20 = smov 0   ;;  %s10232_s21 = smov 0  }
   0xa LB: > { %11689 = sst [smem:[#allocation5_spill]] %s10109_s0  ;;  %s10247_s1 = sadd.s32 4294967295, %s10121_s21   ;;  %s10121_s21 = sphi %s10232_s21, %s11705_s21   ;;  %s10117_s20 = sphi %s10230_s20, %s11707_s20   ;;  %s10113_s30 = sphi %s10228_s30, %s11709_s30   ;;  %s10109_s0 = sphi %s10226_s0, %s11708_s0  }
   0xb   : > { %11690 = sst [smem:[#allocation6_spill]] %s10117_s20  ;;  %s8179_s22 = sadd.s32 4294967294, %s10121_s21  }
   0xc   : > { %s10251_s2 = sadd.s32 1, %s10121_s21   ;;  %s443_s23 = sadd.s32 1, %s10117_s20 }
   0xd   : > { %11691 = sst [smem:[#allocation7_spill]] %s10251_s2  ;;  %s440_s24 = ssub.s32 %s10121_s21, %s10251_s2 }
   0xe   : > { %p453_p0 = scmp.ne.s32.totalorder %s10117_s20, %s10113_s30  ;;  %p441_p1 = scmp.eq.s32.totalorder %s440_s24, 0 }
   0xf   : > { %p454_p2 = scmp.eq.s32.totalorder %s10247_s1, 1  ;;  %p459_p3 = scmp.ne.s32.totalorder %s10113_s30, %s10109_s0 }
  0x10   : > { %p460_p4 = scmp.eq.s32.totalorder %s8179_s22, 1  ;;  %p8182_p7 = scmp.ge.s32.totalorder %s10121_s21, 1 }
  0x11   : > { %s10262_s25 = scalar_select %p441_p1, %s10117_s20, %s443_s23  }
  0x12   : > { %p10264_p5 = por %p454_p2, %p453_p0  ;;  %p10268_p6 = por %p460_p4, %p459_p3 }
  0x13   : > { %11692 = sst [smem:[#allocation8_spill]] %s10262_s25  ;;  %p539_p8 = scmp.lt.s32.totalorder %s10121_s21, 3 }
  0x14   : > { %s11694_s26 = scalar_select %p10268_p6, 1, 0 }
  0x15   : > { %p540_p9 = pnand %p8182_p7, %p539_p8 }
  0x16   : > { %11695 = sst [smem:[#allocation9_spill]] %s11694_s26  ;;  %p594_p10 = scmp.lt.s32.totalorder (!%p540_p9), %s10247_s1, 1 }
  0x17   : > { %543 = sbr.rel (%p540_p9) target bundleno = 18944 (0x4a00), region = 96  ;;  %s11696_s23 = sld [smem:[#allocation10_spill]] (!%p540_p9) }
  0x18   : > { %s11697_s20 = sld [smem:[#allocation13_spill]] (!%p540_p9) }
  0x19   : > { %s11699_s5 = sld [smem:[#allocation15_spill]] (!%p540_p9) }
  0x1a   : > { %s11701_s22 = sld [smem:[#allocation12_spill]] (!%p540_p9) }
  0x1b   : > { %s11702_s4 = sld [smem:[#allocation14_spill]] (!%p540_p9) }
  0x1c   : > { %s595_s27 = scalar_select %p594_p10, %s10247_s1, 1  ;;  %vm602_vm0 = vcmask 261120   ;;  %v10123_v9 = vmov 0.0   ;;  %vm10124_vm1 = vmmov 0   ;;  %v9854_v21 = vld [vmem:[%s11661_s7 + $0x8] sm:$0xff]   ;;  %v9855_v23 = vld [vmem:[%s11661_s7] sm:$0xff]  }
  0x1d   : > { %9081 = vmatprep.subr.bf16.mxu0 %v10123_v9  ;;  %9089 = vmatprep.subr.bf16.mxu1 %v10123_v9  ;;  %v9858_v26 = vld [vmem:[%s11661_s7 + $0x18] sm:$0xff]   ;;  %v9859_v27 = vld [vmem:[%s11661_s7 + $0x10] sm:$0xff]   ;;  %v8191_v28 = vld [vmem:[%s11660_s6] ss:$0 sm:$0xff]  ;;  %vm824_vm2 = vcmask 64512   ;;  %vm1350_vm3 = vcmask 1043456  }
  0x1e   : > { %s8184_s28 = sshll.u32 %s595_s27, 3  ;;  %s11698_s2 = smov %s11697_s20  ;;  %v9850_v7 = vld [vmem:[%s11697_s20 + $0x8] sm:$0xff]   ;;  %9085 = vmatprep.mubr.msk.bf16.mxu0 %vm10124_vm1, %v10123_v9  ;;  %9093 = vmatprep.mubr.msk.bf16.mxu1 %vm10124_vm1, %v10123_v9  ;;  %v8195_v40 = vld [vmem:[%s11662_s8] ss:$0 sm:$0xff]  ;;  %v8225_v50 = vld [vmem:[%s11662_s8 + $0x1] ss:$0 sm:$0xff] }
  0x1f   : > { %s10279_s24 = scalar_lea.vmem %s11696_s23, %s8184_s28  ;;  %v9851_v8 = vld [vmem:[%s11699_s5 + $0x8] sm:$0xff]   ;;  %9082 = vmatpush3.bf16.msra.mxu0 %v9850_v7  ;;  %v9852_v10 = vld [vmem:[%s11698_s2] sm:$0xff]   ;;  %s11700_s27 = sld [smem:[#allocation11_spill]]  ;;  %v9856_v24 = vld [vmem:[%s11698_s2 + $0x18] sm:$0xff]   ;;  %vm2406_vm4 = vcmask 523264   ;;  %vm8104_vm5 = vcmask 130048  }
  0x20   : > { %v599_v0 = vld [vmem:[%s10279_s24] sm:$0xff]  ;;  %9090 = vmatpush3.bf16.msra.mxu1 %v9851_v8  ;;  %9083 = vmatprep.subr.bf16.mxu0 %v10123_v9  ;;  %v9857_v25 = vld [vmem:[%s11698_s2 + $0x10] sm:$0xff]   ;;  %s591_s23 = sand.u32 1, %s10113_s30   ;;  %s8803_s28 = sshll.u32 %s10247_s1, 7 }
  0x21   : > { %v603_v1 = vsel %vm602_vm0, %v599_v0, 0.0  ;;  %9091 = vmatprep.subr.bf16.mxu1 %v10123_v9  ;;  %v9853_v11 = vld [vmem:[%s11699_s5] sm:$0xff]   ;;  %s8107_s0 = scalar_lea.sflag [#allocation3], %s591_s23 }
  0x22   : > { %604 = vadd.xlane.f32.xlu0 %v603_v1  ;;  %v8186_v18 = vld [vmem:[%s11701_s22] ss:$0 sm:$0xff]  ;;  %v8216_v8 = vld [vmem:[%s11660_s6 + $0x1] ss:$0 sm:$0xff] }
  0x23   : > { %9084 = vmatpush3.bf16.msra.mxu0 %v9852_v10  ;;  %v8187_v31 = vld [vmem:[%s11702_s4] ss:$0 sm:$0xff] }
  0x24   : > { %9092 = vmatpush3.bf16.msra.mxu1 %v9853_v11  ;;  %9097 = vmatprep.subr.bf16.mxu0 %v10123_v9  ;;  %v8207_v11 = vld [vmem:[%s11702_s4 + $0x1] ss:$0 sm:$0xff] }
  0x25   : > { %9105 = vmatprep.subr.mxu1 %v10123_v9  ;;  %v8185_v16 = vld [vmem:[%s11700_s27] ss:$0 sm:$0xff] }
  0xab   : > { %v605_v2 = vpop.xlane.xlu0 %604 }
  0xac   : > { %v607_v3 = vmul.f32 0.03125, %v605_v2 }
  0xae   : > { %v608_v4 = vsub.f32 %v599_v0, %v607_v3  ;;  %v9860_v3 = vld [vmem:[%s11699_s5 + $0x18] sm:$0xff]  }
  0xb0   : > { %v609_v5 = vmul.f32 %v608_v4, %v608_v4 }
  0xb2   : > { %v610_v6 = vsel %vm602_vm0, %v609_v5, 0.0  ;;  %v9861_v5 = vld [vmem:[%s11699_s5 + $0x10] sm:$0xff]  }
  0xb3   : > { %611 = vadd.xlane.f32.xlu0 %v610_v6 }
 0x13c   : > { %v612_v12 = vpop.xlane.xlu0 %611 }
 0x13d   : > { %v613_v13 = vmul.f32 0.03125, %v612_v12 }
 0x13f   : > { %v614_v14 = vadd.f32 1e-05, %v613_v13 }
 0x141   : > { %9972 = vrsqrt.f32 %v614_v14 }
 0x14e   : > { %v9973_v15 = vpop.eup %9972 }
 0x14f   : > { %v616_v17 = vmul.f32 %v9973_v15, %v608_v4 }
 0x151   : > { %v623_v19 = vmul.f32 %v8185_v16, %v616_v17 }
 0x153   : > { %v630_v20 = vadd.f32 %v8186_v18, %v623_v19 }
 0x155   : > { %v10315_v22 = vpack.c.bf16 %v630_v20, %v630_v20 }
 0x157   : > { %9086 = vmatmul.mubr.msk.bf16.vlgmr.msra.gmra.mxu0 %vm602_vm0, %v10315_v22  ;;  %9094 = vmatmul.mubr.msk.bf16.vlgmr.msra.gmra.mxu1 %vm602_vm0, %v10315_v22 }
 0x158   : > { %9098 = vmatpush3.bf16.msra.mxu0 %v9854_v21  ;;  %9101 = vmatprep.mubr.msk.bf16.mxu0 %vm10124_vm1, %v10123_v9 }
 0x159   : > { %9099 = vmatprep.subr.bf16.mxu0 %v10123_v9  ;;  %9107 = vmatprep.mubr.msk.f32.mxu1 %vm10124_vm1, %v10123_v9 }
 0x15c   : > { %9100 = vmatpush3.bf16.msra.mxu0 %v9855_v23 }
 0x15d   : > { %9115 = vmatprep.subr.bf16.mxu0 %v10123_v9 }
 0x15f   : > { %9102 = vmatmul.mubr.msk.bf16.vlgmr.msra.gmra.mxu0 %vm602_vm0, %v10315_v22 }
 0x160   : > { %9116 = vmatpush3.bf16.msra.mxu0 %v9856_v24  ;;  %9119 = vmatprep.mubr.msk.bf16.mxu0 %vm10124_vm1, %v10123_v9 }
 0x161   : > { %9117 = vmatprep.subr.bf16.mxu0 %v10123_v9 }
 0x164   : > { %9118 = vmatpush3.bf16.msra.mxu0 %v9857_v25 }
 0x165   : > { %9131 = vmatprep.subr.bf16.mxu0 %v10123_v9 }
 0x167   : > { %9120 = vmatmul.mubr.msk.bf16.vlgmr.msra.gmra.mxu0 %vm602_vm0, %v10315_v22 }
 0x168   : > { %9132 = vmatpush3.bf16.msra.mxu0 %v9858_v26  ;;  %9135 = vmatprep.mubr.msk.bf16.mxu0 %vm10124_vm1, %v10123_v9 }
 0x169   : > { %9133 = vmatprep.subr.bf16.mxu0 %v10123_v9 }
 0x16c   : > { %9134 = vmatpush3.bf16.msra.mxu0 %v9859_v27 }
 0x16d   : > { %9144 = vmatprep.subr.mxu0 %v10123_v9 }
 0x16f   : > { %9136 = vmatmul.mubr.msk.bf16.vlgmr.msra.gmra.mxu0 %vm602_vm0, %v10315_v22 }
 0x170   : > { %9146 = vmatprep.mubr.msk.f32.mxu0 %vm10124_vm1, %v10123_v9 }
 0x217   : > { %v692_v29 = vpop.f32.mrf.mxu0  ;;  %v755_v30 = vpop.f32.mrf.mxu1 }
 0x218   : > { %v756_v32 = vadd.f32 %v8191_v28, %v755_v30  ;;  %v693_v35 = vadd.f32 %v8187_v31, %v692_v29  ;;  %v986_v28 = vld [vmem:[%s11663_s9] sm:$0xf] }
 0x219   : > { %v9087_v33 = vpop.f32.mrf.mxu0  ;;  %v9095_v34 = vpop.f32.mrf.mxu1  ;;  %v1398_v31 = vsel %vm1350_vm3, %v986_v28, 0 }
 0x21a   : > { %9106 = vmatpush3.xpose.msk.msra.mxu1 %vm824_vm2, %v756_v32  ;;  %v9862_v32 = vld [vmem:[%s11699_s5 + $0x28] sm:$0xff]   ;;  %v9863_v34 = vld [vmem:[%s11699_s5 + $0x20] sm:$0xff]  }
 0x21b   : > { %v695_v36 = vpop.f32.mrf.mxu0  ;;  %v758_v37 = vpop.f32.mrf.mxu1  ;;  %9110 = vmatprep.subr.mxu1 %v10123_v9 }
 0x21d   : > { %v9088_v38 = vpop.f32.mrf.mxu0  ;;  %v9096_v39 = vpop.f32.mrf.mxu1  ;;  %9108 = vmatmul.mubr.msk.f32.vlgmr.msra.gmra.mxu1 %vm824_vm2, %v693_v35  ;;  %v8232_v35 = vld [vmem:[%s11663_s9 + $0x4] sm:$0xf] }
 0x21e   : > { %9112 = vmatprep.mubr.msk.f32.mxu1 %vm10124_vm1, %v10123_v9  ;;  %v1352_v36 = vsel %vm1350_vm3, %v8232_v35, 0  ;;  %v9864_v38 = vld [vmem:[%s11698_s2 + $0x28] sm:$0xff]  }
 0x21f   : > { %v818_v41 = vpop.f32.mrf.mxu0 }
 0x220   : > { %v819_v42 = vadd.f32 %v8195_v40, %v818_v41 }
 0x221   : > { %v9103_v43 = vpop.f32.mrf.mxu0 }
 0x222   : > { %9111 = vmatpush3.msra.mxu1 %v819_v42  ;;  %v9865_v42 = vld [vmem:[%s11698_s2 + $0x20] sm:$0xff]  }
 0x223   : > { %v821_v44 = vpop.f32.mrf.mxu0  ;;  %9123 = vmatprep.subr.bf16.mxu1 %v10123_v9 }
 0x225   : > { %v9104_v45 = vpop.f32.mrf.mxu0 }
 0x226   : > { %v9866_v45 = vld [vmem:[%s11661_s7 + $0x28] sm:$0xff]  }
 0x227   : > { %v1047_v46 = vpop.f32.mrf.mxu0 }
 0x228   : > { %v1048_v14 = vadd.f32 %v8207_v11, %v1047_v46 }
 0x229   : > { %v9121_v47 = vpop.f32.mrf.mxu0 }
 0x22a   : > { %v8249_v47 = vld [vmem:[%s11660_s6 + $0x2] ss:$0 sm:$0xff] }
 0x22b   : > { %v1050_v48 = vpop.f32.mrf.mxu0 }
 0x22d   : > { %v9122_v49 = vpop.f32.mrf.mxu0 }
 0x22e   : > { %v9867_v49 = vld [vmem:[%s11661_s7 + $0x20] sm:$0xff]  }
 0x22f   : > { %v1177_v51 = vpop.f32.mrf.mxu0 }
 0x230   : > { %v1178_v52 = vadd.f32 %v8225_v50, %v1177_v51 }
 0x231   : > { %v9137_v53 = vpop.f32.mrf.mxu0 }
 0x232   : > { %9145 = vmatpush3.msra.mxu0 %v1178_v52 }
 0x233   : > { %v1180_v54 = vpop.f32.mrf.mxu0  ;;  %9155 = vmatprep.subr.bf16.mxu0 %v10123_v9 }
 0x235   : > { %v9138_v55 = vpop.f32.mrf.mxu0 }
 0x2dd   : > { %v897_v56 = vpop.f32.mrf.mxu1 }
 0x2de   : > { %v901_v57 = vmul.f32 0.35355338, %v897_v56 }
 0x2df   : > { %v9109_v58 = vpop.f32.mrf.mxu1 }
 0x2e0   : > { %v902_v59 = vsel %vm824_vm2, %v901_v57, -inf  ;;  %v8240_v58 = vld [vmem:[%s11702_s4 + $0x2] ss:$0 sm:$0xff] }
 0x2e1   : > { %903 = vmax.xlane.f32.xlu1 %v902_v59 }
 0x36a   : > { %v904_v60 = vpop.xlane.xlu1 %903 }
 0x36b   : > { %v905_v61 = vsub.f32 %v901_v57, %v904_v60 }
 0x36d   : > { %v906_v62 = vmul.f32 1.442695, %v905_v61 }
 0x36f   : > { %9974 = vpow2.f32 %v906_v62 }
 0x37c   : > { %v9975_v63 = vpop.eup %9974 }
 0x37d   : > { %v908_v0 = vsel %vm824_vm2, %v9975_v63, 0.0 }
 0x37e   : > { %909 = vadd.xlane.f32.xlu1 %v908_v0  ;;  %v8258_v0 = vld [vmem:[%s11662_s8 + $0x2] ss:$0 sm:$0xff] }
 0x407   : > { %v910_v1 = vpop.xlane.xlu1 %909 }
 0x408   : > { %9976 = vrcp.f32 %v910_v1 }
 0x415   : > { %v9977_v2 = vpop.eup %9976 }
 0x416   : > { %v912_v4 = vmul.f32 %v9977_v2, %v9975_v63 }
 0x418   : > { %9113 = vmatmul.mubr.msk.f32.vlgmr.msra.gmra.mxu1 %vm824_vm2, %v912_v4 }
 0x419   : > { %9124 = vmatpush3.bf16.msra.mxu1 %v9860_v3  ;;  %9127 = vmatprep.mubr.msk.bf16.mxu1 %vm10124_vm1, %v10123_v9 }
 0x41a   : > { %9125 = vmatprep.subr.bf16.mxu1 %v10123_v9 }
 0x41d   : > { %9126 = vmatpush3.bf16.msra.mxu1 %v9861_v5 }
 0x41e   : > { %9139 = vmatprep.subr.mxu1 %v10123_v9 }
 0x420   : > { %9128 = vmatmul.mubr.msk.bf16.vlgmr.msra.gmra.mxu1 %vm602_vm0, %v10315_v22 }
 0x421   : > { %9141 = vmatprep.mubr.msk.f32.mxu1 %vm10124_vm1, %v10123_v9 }
 0x4d8   : > { %v982_v6 = vpop.f32.mrf.mxu1 }
 0x4d9   : > { %v987_v33 = vpack.c.bf16 %v982_v6, %v982_v6 }
 0x4da   : > { %v9114_v7 = vpop.f32.mrf.mxu1 }
 0x4e0   : > { %v1112_v10 = vpop.f32.mrf.mxu1 }
 0x4e1   : > { %v1113_v12 = vadd.f32 %v8216_v8, %v1112_v10 }
 0x4e2   : > { %v9129_v13 = vpop.f32.mrf.mxu1 }
 0x4e3   : > { %9140 = vmatpush3.xpose.msk.msra.mxu1 %vm824_vm2, %v1113_v12 }
 0x4e4   : > { %v1115_v15 = vpop.f32.mrf.mxu1  ;;  %9149 = vmatprep.subr.bf16.mxu1 %v10123_v9 }
 0x4e6   : > { %v9130_v16 = vpop.f32.mrf.mxu1  ;;  %9142 = vmatmul.mubr.msk.f32.vlgmr.msra.gmra.mxu1 %vm824_vm2, %v1048_v14 }
 0x4e7   : > { %9151 = vmatprep.mubr.msk.bf16.mxu1 %vm10124_vm1, %v10123_v9  ;;  %9150 = vmatpush3.bf16.msra.mxu1 %v1352_v36 }
 0x4e8   : > { %9161 = vmatprep.subr.bf16.mxu1 %v10123_v9 }
 0x5a6   : > { %v1255_v17 = vpop.f32.mrf.mxu1 }
 0x5a7   : > { %v1259_v18 = vmul.f32 0.35355338, %v1255_v17 }
 0x5a8   : > { %v9143_v19 = vpop.f32.mrf.mxu1 }
 0x5a9   : > { %v1260_v20 = vsel %vm824_vm2, %v1259_v18, -inf }
 0x5aa   : > { %1261 = vmax.xlane.f32.xlu0 %v1260_v20  ;;  %v9869_v20 = vld [vmem:[%s11698_s2 + $0x30] sm:$0xff]  }
 0x633   : > { %v1262_v21 = vpop.xlane.xlu0 %1261 }
 0x634   : > { %v1263_v23 = vsub.f32 %v1259_v18, %v1262_v21  ;;  %v9868_v18 = vld [vmem:[%s11698_s2 + $0x38] sm:$0xff]  }
 0x635   : > { %v9870_v21 = vld [vmem:[%s11661_s7 + $0x38] sm:$0xff]  }
 0x636   : > { %v1264_v24 = vmul.f32 1.442695, %v1263_v23  ;;  %v9871_v23 = vld [vmem:[%s11661_s7 + $0x30] sm:$0xff]  }
 0x638   : > { %9978 = vpow2.f32 %v1264_v24  ;;  %v8265_v24 = vld [vmem:[%s11663_s9 + $0x8] sm:$0xf] }
 0x645   : > { %v9979_v25 = vpop.eup %9978 }
 0x646   : > { %v1266_v26 = vsel %vm824_vm2, %v9979_v25, 0.0 }
 0x647   : > { %1267 = vadd.xlane.f32.xlu1 %v1266_v26 }
 0x6d0   : > { %v1268_v27 = vpop.xlane.xlu1 %1267 }
 0x6d1   : > { %9980 = vrcp.f32 %v1268_v27  ;;  %v9872_v27 = vld [vmem:[%s11699_s5 + $0x38] sm:$0xff]  }
 0x6de   : > { %v9981_v29 = vpop.eup %9980 }
 0x6df   : > { %v1270_v30 = vmul.f32 %v9981_v29, %v9979_v25  ;;  %v1803_v25 = vsel %vm1350_vm3, %v8265_v24, 0  ;;  %v9874_v24 = vld [vmem:[%s11667_s13 + $0x8] sm:$0xff]  }
 0x6e1   : > { %9147 = vmatmul.mubr.msk.f32.vlgmr.msra.gmra.mxu0 %vm824_vm2, %v1270_v30  ;;  %v9873_v30 = vld [vmem:[%s11699_s5 + $0x30] sm:$0xff]  }
 0x6e2   : > { %9156 = vmatpush3.bf16.msra.mxu0 %v1398_v31  ;;  %9157 = vmatprep.mubr.msk.bf16.mxu0 %vm10124_vm1, %v10123_v9 }
 0x6e3   : > { %9169 = vmatprep.subr.bf16.mxu0 %v10123_v9 }
 0x6e5   : > { %9158 = vmatmul.mubr.msk.bf16.vlgmr.msra.gmra.mxu0 %vm824_vm2, %v987_v33 }
 0x6e6   : > { %9170 = vmatpush3.bf16.msra.mxu0 %v9862_v32  ;;  %9173 = vmatprep.mubr.msk.bf16.mxu0 %vm10124_vm1, %v10123_v9 }
 0x6e7   : > { %9171 = vmatprep.subr.bf16.mxu0 %v10123_v9 }
 0x6ea   : > { %9172 = vmatpush3.bf16.msra.mxu0 %v9863_v34 }
 0x6eb   : > { %9185 = vmatprep.subr.mxu0 %v10123_v9 }
 0x6ed   : > { %9174 = vmatmul.mubr.msk.bf16.vlgmr.msra.gmra.mxu0 %vm602_vm0, %v10315_v22 }
 0x6ee   : > { %9187 = vmatprep.mubr.msk.f32.mxu0 %vm10124_vm1, %v10123_v9 }
 0x7a1   : > { %v1340_v37 = vpop.f32.mrf.mxu0 }
 0x7a2   : > { %v1346_v39 = vpack.c.bf16 %v1340_v37, %v1340_v37 }
 0x7a3   : > { %v9148_v40 = vpop.f32.mrf.mxu0 }
 0x7a4   : > { %9152 = vmatmul.mubr.msk.bf16.vlgmr.msra.gmra.mxu1 %vm824_vm2, %v1346_v39 }
 0x7a5   : > { %v10439_v41 = vpop.f32.mrf.mxu0  ;;  %9162 = vmatpush3.bf16.msra.mxu1 %v9864_v38  ;;  %9165 = vmatprep.mubr.msk.bf16.mxu1 %vm10124_vm1, %v10123_v9 }
 0x7a6   : > { %9163 = vmatprep.subr.bf16.mxu1 %v10123_v9 }
 0x7a7   : > { %v9159_v43 = vpop.f32.mrf.mxu0 }
 0x7a9   : > { %v1437_v44 = vpop.f32.mrf.mxu0  ;;  %9164 = vmatpush3.bf16.msra.mxu1 %v9865_v42 }
 0x7aa   : > { %9177 = vmatprep.subr.bf16.mxu1 %v10123_v9 }
 0x7ab   : > { %v9160_v46 = vpop.f32.mrf.mxu0 }
 0x7ac   : > { %9166 = vmatmul.mubr.msk.bf16.vlgmr.msra.gmra.mxu1 %vm602_vm0, %v10315_v22 }
 0x7ad   : > { %v1564_v48 = vpop.f32.mrf.mxu0  ;;  %9178 = vmatpush3.bf16.msra.mxu1 %v9866_v45  ;;  %9181 = vmatprep.mubr.msk.bf16.mxu1 %vm10124_vm1, %v10123_v9 }
 0x7ae   : > { %v1565_v50 = vadd.f32 %v8249_v47, %v1564_v48  ;;  %9179 = vmatprep.subr.bf16.mxu1 %v10123_v9  ;;  %v8272_v47 = vld [vmem:[%s11702_s4 + $0x3] ss:$0 sm:$0xff] }
 0x7af   : > { %v9175_v51 = vpop.f32.mrf.mxu0 }
 0x7b0   : > { %9186 = vmatpush3.xpose.msk.msra.mxu0 %vm824_vm2, %v1565_v50 }
 0x7b1   : > { %v1567_v52 = vpop.f32.mrf.mxu0  ;;  %9180 = vmatpush3.bf16.msra.mxu1 %v9867_v49  ;;  %9190 = vmatprep.subr.mxu0 %v10123_v9  ;;  %v8290_v49 = vld [vmem:[%s11662_s8 + $0x3] ss:$0 sm:$0xff] }
 0x7b2   : > { %9195 = vmatprep.subr.bf16.mxu1 %v10123_v9 }
 0x7b3   : > { %v9176_v53 = vpop.f32.mrf.mxu0 }
 0x7b4   : > { %9182 = vmatmul.mubr.msk.bf16.vlgmr.msra.gmra.mxu1 %vm602_vm0, %v10315_v22 }
 0x7b5   : > { %9197 = vmatprep.mubr.msk.bf16.mxu1 %vm10124_vm1, %v10123_v9  ;;  %9196 = vmatpush3.bf16.msra.mxu1 %v1803_v25  ;;  %v9875_v25 = vld [vmem:[%s11667_s13] sm:$0xff]  }
 0x7b6   : > { %9209 = vmatprep.subr.bf16.mxu1 %v10123_v9 }
 0x864   : > { %v10469_v54 = vpop.f32.mrf.mxu1 }
 0x865   : > { %v1435_v39 = vadd.f32 %v10439_v41, %v10469_v54 }
 0x866   : > { %v9153_v55 = vpop.f32.mrf.mxu1 }
 0x868   : > { %v1391_v56 = vpop.f32.mrf.mxu1 }
 0x86a   : > { %v9154_v57 = vpop.f32.mrf.mxu1 }
 0x86c   : > { %v1499_v59 = vpop.f32.mrf.mxu1 }
 0x86d   : > { %v1500_v60 = vadd.f32 %v8240_v58, %v1499_v59 }
 0x86e   : > { %v9167_v61 = vpop.f32.mrf.mxu1 }
 0x86f   : > { %9188 = vmatmul.mubr.msk.f32.vlgmr.msra.gmra.mxu0 %vm824_vm2, %v1500_v60 }
 0x870   : > { %v1502_v62 = vpop.f32.mrf.mxu1  ;;  %9192 = vmatprep.mubr.msk.f32.mxu0 %vm10124_vm1, %v10123_v9 }
 0x872   : > { %v9168_v63 = vpop.f32.mrf.mxu1 }
 0x874   : > { %v1629_v1 = vpop.f32.mrf.mxu1 }
 0x875   : > { %v1630_v2 = vadd.f32 %v8258_v0, %v1629_v1 }
 0x876   : > { %v9183_v3 = vpop.f32.mrf.mxu1 }
 0x877   : > { %9191 = vmatpush3.msra.mxu0 %v1630_v2  ;;  %v8297_v2 = vld [vmem:[%s11663_s9 + $0xc] sm:$0xf] }
 0x878   : > { %v1632_v4 = vpop.f32.mrf.mxu1  ;;  %9201 = vmatprep.subr.bf16.mxu0 %v10123_v9  ;;  %v2209_v3 = vsel %vm1350_vm3, %v8297_v2, 0 }
 0x87a   : > { %v9184_v5 = vpop.f32.mrf.mxu1 }
 0x92f   : > { %v1707_v6 = vpop.f32.mrf.mxu0 }
 0x930   : > { %v1711_v7 = vmul.f32 0.35355338, %v1707_v6 }
 0x931   : > { %v9189_v8 = vpop.f32.mrf.mxu0 }
 0x932   : > { %v1712_v10 = vsel %vm824_vm2, %v1711_v7, -inf }
 0x933   : > { %1713 = vmax.xlane.f32.xlu0 %v1712_v10  ;;  %v8299_v10 = vld [vmem:[%s11664_s10] ss:$0 sm:$0xff] }
 0x9bc   : > { %v1714_v11 = vpop.xlane.xlu0 %1713 }
 0x9bd   : > { %v1715_v12 = vsub.f32 %v1711_v7, %v1714_v11 }
 0x9bf   : > { %v1716_v13 = vmul.f32 1.442695, %v1715_v12  ;;  %v10060_v12 = vld [vmem:[%s10279_s24] sm:$0xff]  ;;  %s8183_s24 = sshll.u32 %s591_s23, 3 }
 0x9c0   : > { %s593_s20 = scalar_lea.vmem [#allocation2], %s8183_s24  ;;  %s10125_s24 = smov [#allocation2]  }
 0x9c1   : > { %9982 = vpow2.f32 %v1716_v13  ;;  %s8120_s25 = sshll.u32 %s593_s20, 4  ;;  %s10065_s29 = sshll.u32 %s10125_s24, 4  ;;  %s11615_s25 = int_to_ptr.vmem [resolvable:$true] %s8120_s25  ;;  %s10066_s29 = int_to_ptr.vmem [resolvable:$false] %s10065_s29 }
 0x9c2   : > { %s10061_s1 = scalar_lea.vmem %s11615_s25, 128  ;;  %p10068_p0 = scmp.lt.s32.totalorder %s11615_s25, %s10066_s29 }
 0x9c3   : > { %p10062_p11 = scmp.ne.s32.totalorder %s11615_s25, %s10061_s1 }
 0x9c5   : > { %p10063_p12 = pnand %p10062_p11, %p10264_p5 }
 0x9c7   : > { %p10064_p13 = pneg %p10063_p12 }
 0x9ce   : > { %v9983_v14 = vpop.eup %9982 }
 0x9cf   : > { %v1718_v15 = vsel %vm824_vm2, %v9983_v14, 0.0 }
 0x9d0   : > { %1719 = vadd.xlane.f32.xlu1 %v1718_v15 }
 0xa59   : > { %v1720_v16 = vpop.xlane.xlu1 %1719 }
 0xa5a   : > { %9984 = vrcp.f32 %v1720_v16 }
 0xa67   : > { %v9985_v17 = vpop.eup %9984 }
 0xa68   : > { %v1722_v19 = vmul.f32 %v9985_v17, %v9983_v14 }
 0xa6a   : > { %9193 = vmatmul.mubr.msk.f32.vlgmr.msra.gmra.mxu0 %vm824_vm2, %v1722_v19 }
 0xa6b   : > { %9202 = vmatpush3.bf16.msra.mxu0 %v9868_v18  ;;  %9205 = vmatprep.mubr.msk.bf16.mxu0 %vm10124_vm1, %v10123_v9 }
 0xa6c   : > { %9203 = vmatprep.subr.bf16.mxu0 %v10123_v9 }
 0xa6f   : > { %9204 = vmatpush3.bf16.msra.mxu0 %v9869_v20 }
 0xa70   : > { %9217 = vmatprep.subr.bf16.mxu0 %v10123_v9 }
 0xa72   : > { %9206 = vmatmul.mubr.msk.bf16.vlgmr.msra.gmra.mxu0 %vm602_vm0, %v10315_v22 }
 0xa73   : > { %9218 = vmatpush3.bf16.msra.mxu0 %v9870_v21  ;;  %9221 = vmatprep.mubr.msk.bf16.mxu0 %vm10124_vm1, %v10123_v9 }
 0xa74   : > { %9219 = vmatprep.subr.bf16.mxu0 %v10123_v9 }
 0xa77   : > { %9220 = vmatpush3.bf16.msra.mxu0 %v9871_v23 }
 0xa78   : > { %9235 = vmatprep.subr.bf16.mxu0 %v10123_v9 }
 0xa7a   : > { %9222 = vmatmul.mubr.msk.bf16.vlgmr.msra.gmra.mxu0 %vm602_vm0, %v10315_v22 }
 0xa7b   : > { %9237 = vmatprep.mubr.msk.bf16.mxu0 %vm10124_vm1, %v10123_v9  ;;  %9236 = vmatpush3.bf16.msra.mxu0 %v2209_v3 }
 0xa7c   : > { %9249 = vmatprep.subr.bf16.mxu0 %v10123_v9 }
 0xb2a   : > { %v1792_v26 = vpop.f32.mrf.mxu0 }
 0xb2b   : > { %v1798_v28 = vpack.c.bf16 %v1792_v26, %v1792_v26 }
 0xb2c   : > { %v9194_v29 = vpop.f32.mrf.mxu0 }
 0xb2d   : > { %9198 = vmatmul.mubr.msk.bf16.vlgmr.msra.gmra.mxu1 %vm824_vm2, %v1798_v28 }
 0xb2e   : > { %9210 = vmatpush3.bf16.msra.mxu1 %v9872_v27  ;;  %9213 = vmatprep.mubr.msk.bf16.mxu1 %vm10124_vm1, %v10123_v9 }
 0xb2f   : > { %9211 = vmatprep.subr.bf16.mxu1 %v10123_v9 }
 0xb32   : > { %v1905_v31 = vpop.f32.mrf.mxu0  ;;  %9212 = vmatpush3.bf16.msra.mxu1 %v9873_v30  ;;  %v8300_v30 = vld [vmem:[%s11665_s11] ss:$0 sm:$0xff] }
 0xb33   : > { %9225 = vmatprep.subr.mxu1 %v10123_v9  ;;  %v1906_v50 = vadd.f32 %v8272_v47, %v1905_v31 }
 0xb34   : > { %v9207_v32 = vpop.f32.mrf.mxu0 }
 0xb35   : > { %9214 = vmatmul.mubr.msk.bf16.vlgmr.msra.gmra.mxu1 %vm602_vm0, %v10315_v22  ;;  %v8281_v22 = vld [vmem:[%s11660_s6 + $0x3] ss:$0 sm:$0xff]  ;;  %v8301_v32 = vld [vmem:[%s11666_s12] ss:$0 sm:$0xff] }
 0xb36   : > { %v1908_v33 = vpop.f32.mrf.mxu0  ;;  %9227 = vmatprep.mubr.msk.f32.mxu1 %vm10124_vm1, %v10123_v9 }
 0xb38   : > { %v9208_v34 = vpop.f32.mrf.mxu0 }
 0xb3a   : > { %v2035_v35 = vpop.f32.mrf.mxu0 }
 0xb3b   : > { %v2036_v52 = vadd.f32 %v8290_v49, %v2035_v35 }
 0xb3c   : > { %v9223_v36 = vpop.f32.mrf.mxu0 }
 0xb3d   : > { %v9876_v36 = vld [vmem:[%s11669_s15 + $0x18] sm:$0xff]  }
 0xb3e   : > { %v2038_v37 = vpop.f32.mrf.mxu0 }
 0xb3f   : > { %v9877_v37 = vld [vmem:[%s11669_s15 + $0x10] sm:$0xff]  }
 0xb40   : > { %v9224_v38 = vpop.f32.mrf.mxu0 }
 0xb41   : > { %v9878_v38 = vld [vmem:[%s11669_s15 + $0x8] sm:$0xff]  }
 0xbed   : > { %v1839_v40 = vpop.f32.mrf.mxu1 }
 0xbee   : > { %v1845_v42 = vadd.f32 %v1839_v40, %v1435_v39  ;;  %v9879_v39 = vld [vmem:[%s11669_s15] sm:$0xff]  }
 0xbef   : > { %v9199_v43 = vpop.f32.mrf.mxu1  ;;  %v8302_v40 = vld [vmem:[%s11668_s14] ss:$0 sm:$0xff] }
 0xbf1   : > { %v1842_v44 = vpop.f32.mrf.mxu1 }
 0xbf3   : > { %v9200_v45 = vpop.f32.mrf.mxu1 }
 0xbf5   : > { %v1970_v46 = vpop.f32.mrf.mxu1 }
 0xbf6   : > { %v1971_v48 = vadd.f32 %v8281_v22, %v1970_v46 }
 0xbf7   : > { %v9215_v41 = vpop.f32.mrf.mxu1 }
 0xbf8   : > { %9226 = vmatpush3.xpose.msk.msra.mxu1 %vm824_vm2, %v1971_v48 }
 0xbf9   : > { %v1973_v51 = vpop.f32.mrf.mxu1  ;;  %9230 = vmatprep.subr.mxu1 %v10123_v9 }
 0xbfb   : > { %v9216_v53 = vpop.f32.mrf.mxu1  ;;  %9228 = vmatmul.mubr.msk.f32.vlgmr.msra.gmra.mxu1 %vm824_vm2, %v1906_v50 }
 0xbfc   : > { %9231 = vmatpush3.msra.mxu1 %v2036_v52  ;;  %9232 = vmatprep.mubr.msk.f32.mxu1 %vm10124_vm1, %v10123_v9 }
 0xbfd   : > { %9241 = vmatprep.subr.bf16.mxu1 %v10123_v9 }
 0xcbb   : > { %v2113_v54 = vpop.f32.mrf.mxu1 }
 0xcbc   : > { %v2117_v55 = vmul.f32 0.35355338, %v2113_v54 }
 0xcbd   : > { %v9229_v56 = vpop.f32.mrf.mxu1 }
 0xcbe   : > { %v2118_v57 = vsel %vm824_vm2, %v2117_v55, -inf }
 0xcbf   : > { %2119 = vmax.xlane.f32.xlu0 %v2118_v57 }
 0xd48   : > { %v2120_v58 = vpop.xlane.xlu0 %2119 }
 0xd49   : > { %v2121_v59 = vsub.f32 %v2117_v55, %v2120_v58  ;;  %v8306_v55 = vld [vmem:[%s11670_s16] ss:$0 sm:$0xff] }
 0xd4b   : > { %v2122_v60 = vmul.f32 1.442695, %v2121_v59 }
 0xd4d   : > { %9986 = vpow2.f32 %v2122_v60 }
 0xd5a   : > { %v9987_v61 = vpop.eup %9986 }
 0xd5b   : > { %v2124_v62 = vsel %vm824_vm2, %v9987_v61, 0.0 }
 0xd5c   : > { %2125 = vadd.xlane.f32.xlu1 %v2124_v62 }
 0xde5   : > { %v2126_v63 = vpop.xlane.xlu1 %2125 }
 0xde6   : > { %9988 = vrcp.f32 %v2126_v63 }
 0xdf3   : > { %v9989_v0 = vpop.eup %9988 }
 0xdf4   : > { %v2128_v1 = vmul.f32 %v9989_v0, %v9987_v61 }
 0xdf6   : > { %9233 = vmatmul.mubr.msk.f32.vlgmr.msra.gmra.mxu1 %vm824_vm2, %v2128_v1 }
 0xdf7   : > { %9245 = vmatprep.mubr.msk.bf16.mxu1 %vm10124_vm1, %v10123_v9  ;;  %9242 = vmatpush3.bf16.msra.mxu1 %v9874_v24 }
 0xdf8   : > { %9243 = vmatprep.subr.bf16.mxu1 %v10123_v9 }
 0xdfb   : > { %9244 = vmatpush3.bf16.msra.mxu1 %v9875_v25 }
 0xdfc   : > { %9261 = vmatprep.subr.bf16.mxu1 %v10123_v9 }
 0xeb6   : > { %v2198_v4 = vpop.f32.mrf.mxu1 }
 0xeb7   : > { %v2204_v5 = vpack.c.bf16 %v2198_v4, %v2198_v4  ;;  %v9880_v4 = vld [vmem:[%s11698_s2 + $0x48] sm:$0xff]  }
 0xeb8   : > { %v9234_v6 = vpop.f32.mrf.mxu1 }
 0xeb9   : > { %9238 = vmatmul.mubr.msk.bf16.vlgmr.msra.gmra.mxu0 %vm824_vm2, %v2204_v5  ;;  %v9881_v5 = vld [vmem:[%s11661_s7 + $0x48] sm:$0xff]   ;;  %v9882_v6 = vld [vmem:[%s11698_s2 + $0x40] sm:$0xff]  }
 0xeba   : > { %9257 = vmatprep.mubr.msk.bf16.mxu0 %vm10124_vm1, %v10123_v9  ;;  %9250 = vmatpush3.bf16.msra.mxu0 %v9876_v36 }
 0xebb   : > { %9251 = vmatprep.subr.bf16.mxu0 %v10123_v9 }
 0xebe   : > { %9252 = vmatpush3.bf16.msra.mxu0 %v9877_v37  ;;  %v9886_v37 = vld [vmem:[%s11698_s2 + $0x58] sm:$0xff]  }
 0xebf   : > { %9253 = vmatprep.subr.bf16.mxu0 %v10123_v9 }
 0xec2   : > { %9254 = vmatpush3.bf16.msra.mxu0 %v9878_v38 }
 0xec3   : > { %9255 = vmatprep.subr.bf16.mxu0 %v10123_v9 }
 0xec6   : > { %9256 = vmatpush3.bf16.msra.mxu0 %v9879_v39 }
 0xec7   : > { %9277 = vmatprep.subr.bf16.mxu0 %v10123_v9 }
 0xf79   : > { %v2245_v7 = vpop.f32.mrf.mxu0 }
 0xf7a   : > { %v2251_v8 = vadd.f32 %v2245_v7, %v1845_v42  ;;  %v9883_v7 = vld [vmem:[%s11661_s7 + $0x40] sm:$0xff]  }
 0xf7b   : > { %v9239_v11 = vpop.f32.mrf.mxu0 }
 0xf7c   : > { %v2252_v13 = vadd.f32 %v10060_v12, %v2251_v8 }
 0xf7d   : > { %v2248_v14 = vpop.f32.mrf.mxu0 }
 0xf7e   : > { %v10564_v15 = vadd.f32 %v8299_v10, %v2252_v13  ;;  %v8314_v13 = vld [vmem:[%s11700_s27 + $0x1] ss:$0 sm:$0xff] }
 0xf7f   : > { %v9240_v16 = vpop.f32.mrf.mxu0 }
 0xf80   : > { %v2263_v17 = vsel %vm602_vm0, %v10564_v15, 0.0 }
 0xf81   : > { %2264 = vadd.xlane.f32.xlu0 %v2263_v17 }
0x100a   : > { %v2265_v18 = vpop.xlane.xlu0 %2264 }
0x100b   : > { %v2266_v19 = vmul.f32 0.03125, %v2265_v18  ;;  %v9884_v18 = vld [vmem:[%s11699_s5 + $0x48] sm:$0xff]  }
0x100d   : > { %v2267_v20 = vsub.f32 %v10564_v15, %v2266_v19 }
0x100f   : > { %v2268_v21 = vmul.f32 %v2267_v20, %v2267_v20 }
0x1011   : > { %v2269_v23 = vsel %vm602_vm0, %v2268_v21, 0.0  ;;  %v8339_v21 = vld [vmem:[%s11662_s8 + $0x4] ss:$0 sm:$0xff] }
0x1012   : > { %2270 = vadd.xlane.f32.xlu1 %v2269_v23 }
0x109b   : > { %v2271_v26 = vpop.xlane.xlu1 %2270 }
0x109c   : > { %v2272_v27 = vmul.f32 0.03125, %v2271_v26 }
0x109e   : > { %v2273_v28 = vadd.f32 1e-05, %v2272_v27 }
0x10a0   : > { %9990 = vrsqrt.f32 %v2273_v28 }
0x10ad   : > { %v9991_v29 = vpop.eup %9990 }
0x10ae   : > { %v2275_v31 = vmul.f32 %v9991_v29, %v2267_v20  ;;  %v9885_v20 = vld [vmem:[%s11699_s5 + $0x40] sm:$0xff]  }
0x10b0   : > { %v2282_v33 = vmul.f32 %v8300_v30, %v2275_v31 }
0x10b2   : > { %v2289_v34 = vadd.f32 %v8301_v32, %v2282_v33  ;;  %v8330_v32 = vld [vmem:[%s11660_s6 + $0x4] ss:$0 sm:$0xff] }
0x10b4   : > { %v2294_v35 = vpack.c.bf16 %v2289_v34, %v2289_v34  ;;  %v8321_v34 = vld [vmem:[%s11702_s4 + $0x4] ss:$0 sm:$0xff] }
0x10b6   : > { %9246 = vmatmul.mubr.msk.bf16.vlgmr.msra.gmra.mxu1 %vm602_vm0, %v2294_v35 }
0x10b7   : > { %9265 = vmatprep.mubr.msk.bf16.mxu1 %vm10124_vm1, %v10123_v9  ;;  %9262 = vmatpush3.bf16.msra.mxu1 %v9880_v4  ;;  %v8361_v4 = vld [vmem:[%s11660_s6 + $0x5] ss:$0 sm:$0xff] }
0x10b8   : > { %9263 = vmatprep.subr.bf16.mxu1 %v10123_v9 }
0x10bb   : > { %9264 = vmatpush3.bf16.msra.mxu1 %v9882_v6  ;;  %v8352_v6 = vld [vmem:[%s11702_s4 + $0x5] ss:$0 sm:$0xff] }
0x10bc   : > { %9269 = vmatprep.subr.bf16.mxu1 %v10123_v9 }
0x1176   : > { %v2351_v42 = vpop.f32.mrf.mxu1 }
0x1177   : > { %v2352_v43 = vadd.f32 %v8302_v40, %v2351_v42  ;;  %v9887_v42 = vld [vmem:[%s11698_s2 + $0x50] sm:$0xff]  }
0x1178   : > { %v9247_v44 = vpop.f32.mrf.mxu1 }
0x1179   : > { %v2357_v45 = vmul.f32 %v2352_v43, %v2352_v43  ;;  %v9889_v44 = vld [vmem:[%s11661_s7 + $0x50] sm:$0xff]  }
0x117a   : > { %v2354_v22 = vpop.f32.mrf.mxu1 }
0x117b   : > { %v2358_v46 = vmul.f32 %v2357_v45, %v2352_v43 }
0x117c   : > { %v9248_v47 = vpop.f32.mrf.mxu1 }
0x117d   : > { %v2359_v48 = vmul.f32 0.044715, %v2358_v46 }
0x117f   : > { %v2360_v49 = vadd.f32 %v2359_v48, %v2352_v43 }
0x1181   : > { %v2361_v41 = vmul.f32 0.7978846, %v2360_v49 }
0x1183   : > { %9992 = vtanh.f32 %v2361_v41 }
0x1190   : > { %v9993_v50 = vpop.eup %9992 }
0x1191   : > { %v2363_v51 = vadd.f32 1.0, %v9993_v50 }
0x1193   : > { %v2364_v52 = vmul.f32 0.5, %v2363_v51 }
0x1195   : > { %v2365_v53 = vmul.f32 %v2364_v52, %v2352_v43  ;;  %v9888_v43 = vld [vmem:[%s11661_s7 + $0x58] sm:$0xff]  }
0x1197   : > { %v2374_v54 = vpack.c.bf16 %v2365_v53, %v2365_v53 }
0x1199   : > { %9258 = vmatmul.mubr.msk.bf16.vlgmr.msra.gmra.mxu0 %vm2406_vm4, %v2374_v54 }
0x119a   : > { %9281 = vmatprep.mubr.msk.bf16.mxu0 %vm10124_vm1, %v10123_v9  ;;  %9278 = vmatpush3.bf16.msra.mxu0 %v9881_v5 }
0x119b   : > { %9279 = vmatprep.subr.bf16.mxu0 %v10123_v9 }
0x119e   : > { %9280 = vmatpush3.bf16.msra.mxu0 %v9883_v7 }
0x119f   : > { %9290 = vmatprep.subr.mxu0 %v10123_v9 }
0x1259   : > { %v2444_v56 = vpop.f32.mrf.mxu0 }
0x125a   : > { %v2445_v57 = vadd.f32 %v8306_v55, %v2444_v56 }
0x125b   : > { %v9259_v58 = vpop.f32.mrf.mxu0 }
0x125c   : > { %v10613_v59 = vadd.f32 %v2445_v57, %v10564_v15  ;;  %v8315_v15 = vld [vmem:[%s11701_s22 + $0x1] ss:$0 sm:$0xff] }
0x125d   : > { %v2447_v60 = vpop.f32.mrf.mxu0 }
0x125e   : > { %v2455_v61 = vsel %vm602_vm0, %v10613_v59, 0.0 }
0x125f   : > { %2456 = vadd.xlane.f32.xlu0 %v2455_v61  ;;  %v9260_v62 = vpop.f32.mrf.mxu0 }
0x12e8   : > { %v2457_v63 = vpop.xlane.xlu0 %2456 }
0x12e9   : > { %v2458_v0 = vmul.f32 0.03125, %v2457_v63  ;;  %v9890_v63 = vld [vmem:[%s11699_s5 + $0x58] sm:$0xff]  }
0x12eb   : > { %v2459_v1 = vsub.f32 %v10613_v59, %v2458_v0 }
0x12ed   : > { %v2460_v2 = vmul.f32 %v2459_v1, %v2459_v1 }
0x12ef   : > { %v2461_v3 = vsel %vm602_vm0, %v2460_v2, 0.0 }
0x12f0   : > { %2462 = vadd.xlane.f32.xlu1 %v2461_v3 }
0x1379   : > { %v2463_v8 = vpop.xlane.xlu1 %2462 }
0x137a   : > { %v2464_v10 = vmul.f32 0.03125, %v2463_v8  ;;  %v8370_v8 = vld [vmem:[%s11662_s8 + $0x5] ss:$0 sm:$0xff] }
0x137c   : > { %v2465_v11 = vadd.f32 1e-05, %v2464_v10 }
0x137e   : > { %9994 = vrsqrt.f32 %v2465_v11 }
0x138b   : > { %v9995_v12 = vpop.eup %9994 }
0x138c   : > { %v2467_v14 = vmul.f32 %v9995_v12, %v2459_v1  ;;  %v9891_v1 = vld [vmem:[%s11699_s5 + $0x50] sm:$0xff]  }
0x138e   : > { %v2474_v16 = vmul.f32 %v8314_v13, %v2467_v14 }
0x1390   : > { %v2481_v17 = vadd.f32 %v8315_v15, %v2474_v16 }
0x1392   : > { %v10644_v19 = vpack.c.bf16 %v2481_v17, %v2481_v17 }
0x1394   : > { %9266 = vmatmul.mubr.msk.bf16.vlgmr.msra.gmra.mxu1 %vm602_vm0, %v10644_v19  ;;  %9282 = vmatmul.mubr.msk.bf16.vlgmr.msra.gmra.mxu0 %vm602_vm0, %v10644_v19 }
0x1395   : > { %9270 = vmatpush3.bf16.msra.mxu1 %v9884_v18  ;;  %9273 = vmatprep.mubr.msk.bf16.mxu1 %vm10124_vm1, %v10123_v9 }
0x1396   : > { %9271 = vmatprep.subr.bf16.mxu1 %v10123_v9  ;;  %9292 = vmatprep.mubr.msk.f32.mxu0 %vm10124_vm1, %v10123_v9 }
0x1399   : > { %9272 = vmatpush3.bf16.msra.mxu1 %v9885_v20 }
0x139a   : > { %9285 = vmatprep.subr.mxu1 %v10123_v9 }
0x139c   : > { %9274 = vmatmul.mubr.msk.bf16.vlgmr.msra.gmra.mxu1 %vm602_vm0, %v10644_v19 }
0x139d   : > { %9287 = vmatprep.mubr.msk.f32.mxu1 %vm10124_vm1, %v10123_v9 }
0x1454   : > { %v2545_v23 = vpop.f32.mrf.mxu1  ;;  %v2675_v24 = vpop.f32.mrf.mxu0 }
0x1455   : > { %v2676_v25 = vadd.f32 %v8339_v21, %v2675_v24  ;;  %v2546_v38 = vadd.f32 %v8321_v34, %v2545_v23  ;;  %v8377_v34 = vld [vmem:[%s11663_s9 + $0x14] sm:$0xf] }
0x1456   : > { %v9267_v26 = vpop.f32.mrf.mxu1  ;;  %v9283_v27 = vpop.f32.mrf.mxu0 }
0x1457   : > { %9291 = vmatpush3.msra.mxu0 %v2676_v25  ;;  %v8346_v27 = vld [vmem:[%s11663_s9 + $0x10] sm:$0xf] }
0x1458   : > { %v2548_v28 = vpop.f32.mrf.mxu1  ;;  %v2678_v29 = vpop.f32.mrf.mxu0  ;;  %9303 = vmatprep.subr.bf16.mxu0 %v10123_v9 }
0x145a   : > { %v9268_v30 = vpop.f32.mrf.mxu1  ;;  %v9284_v31 = vpop.f32.mrf.mxu0 }
0x145b   : > { %v3254_v30 = vsel %vm1350_vm3, %v8346_v27, 0  ;;  %v9892_v31 = vld [vmem:[%s11699_s5 + $0x68] sm:$0xff]   ;;  %v9902_v27 = vld [vmem:[%s11699_s5 + $0x78] sm:$0xff]  }
0x145c   : > { %v2610_v33 = vpop.f32.mrf.mxu1 }
0x145d   : > { %v2611_v35 = vadd.f32 %v8330_v32, %v2610_v33  ;;  %v9893_v33 = vld [vmem:[%s11699_s5 + $0x60] sm:$0xff]  }
0x145e   : > { %v9275_v36 = vpop.f32.mrf.mxu1 }
0x145f   : > { %9286 = vmatpush3.xpose.msk.msra.mxu1 %vm824_vm2, %v2611_v35  ;;  %v3208_v35 = vsel %vm1350_vm3, %v8377_v34, 0 }
0x1460   : > { %v2613_v39 = vpop.f32.mrf.mxu1  ;;  %9295 = vmatprep.subr.bf16.mxu1 %v10123_v9 }
0x1462   : > { %v9276_v40 = vpop.f32.mrf.mxu1  ;;  %9288 = vmatmul.mubr.msk.f32.vlgmr.msra.gmra.mxu1 %vm824_vm2, %v2546_v38 }
0x1463   : > { %9296 = vmatpush3.bf16.msra.mxu1 %v9886_v37  ;;  %9299 = vmatprep.mubr.msk.bf16.mxu1 %vm10124_vm1, %v10123_v9  ;;  %v9894_v37 = vld [vmem:[%s11698_s2 + $0x68] sm:$0xff]  }
0x1464   : > { %9297 = vmatprep.subr.bf16.mxu1 %v10123_v9 }
0x1467   : > { %9298 = vmatpush3.bf16.msra.mxu1 %v9887_v42  ;;  %v9895_v42 = vld [vmem:[%s11698_s2 + $0x60] sm:$0xff]  }
0x1468   : > { %9311 = vmatprep.subr.bf16.mxu1 %v10123_v9 }
0x146a   : > { %9300 = vmatmul.mubr.msk.bf16.vlgmr.msra.gmra.mxu1 %vm602_vm0, %v10644_v19 }
0x146b   : > { %9312 = vmatpush3.bf16.msra.mxu1 %v9888_v43  ;;  %9315 = vmatprep.mubr.msk.bf16.mxu1 %vm10124_vm1, %v10123_v9 }
0x146c   : > { %9313 = vmatprep.subr.bf16.mxu1 %v10123_v9 }
0x146f   : > { %9314 = vmatpush3.bf16.msra.mxu1 %v9889_v44 }
0x1470   : > { %9329 = vmatprep.subr.bf16.mxu1 %v10123_v9 }
0x1472   : > { %9316 = vmatmul.mubr.msk.bf16.vlgmr.msra.gmra.mxu1 %vm602_vm0, %v10644_v19 }
0x1473   : > { %9331 = vmatprep.mubr.msk.bf16.mxu1 %vm10124_vm1, %v10123_v9  ;;  %9330 = vmatpush3.bf16.msra.mxu1 %v3208_v35 }
0x1474   : > { %9341 = vmatprep.subr.bf16.mxu1 %v10123_v9 }
0x1522   : > { %v2753_v45 = vpop.f32.mrf.mxu1 }
0x1523   : > { %v2757_v22 = vmul.f32 0.35355338, %v2753_v45  ;;  %v9896_v45 = vld [vmem:[%s11661_s7 + $0x68] sm:$0xff]  }
0x1524   : > { %v9289_v46 = vpop.f32.mrf.mxu1 }
0x1525   : > { %v2758_v47 = vsel %vm824_vm2, %v2757_v22, -inf  ;;  %v8394_v46 = vld [vmem:[%s11660_s6 + $0x6] ss:$0 sm:$0xff] }
0x1526   : > { %2759 = vmax.xlane.f32.xlu0 %v2758_v47 }
0x152a   : > { %v2904_v48 = vpop.f32.mrf.mxu1 }
0x152b   : > { %v2905_v11 = vadd.f32 %v8352_v6, %v2904_v48  ;;  %v9897_v48 = vld [vmem:[%s11661_s7 + $0x60] sm:$0xff]  }
0x152c   : > { %v9301_v49 = vpop.f32.mrf.mxu1 }
0x152e   : > { %v2907_v41 = vpop.f32.mrf.mxu1 }
0x1530   : > { %v9302_v50 = vpop.f32.mrf.mxu1 }
0x1532   : > { %v3034_v51 = vpop.f32.mrf.mxu1 }
0x1533   : > { %v3035_v13 = vadd.f32 %v8370_v8, %v3034_v51 }
0x1534   : > { %v9317_v52 = vpop.f32.mrf.mxu1 }
0x1536   : > { %v3037_v53 = vpop.f32.mrf.mxu1 }
0x1538   : > { %v9318_v54 = vpop.f32.mrf.mxu1 }
0x15af   : > { %v2760_v55 = vpop.xlane.xlu0 %2759 }
0x15b0   : > { %v2761_v56 = vsub.f32 %v2757_v22, %v2760_v55 }
0x15b2   : > { %v2762_v57 = vmul.f32 1.442695, %v2761_v56  ;;  %v8385_v56 = vld [vmem:[%s11702_s4 + $0x6] ss:$0 sm:$0xff] }
0x15b4   : > { %9996 = vpow2.f32 %v2762_v57 }
0x15c1   : > { %v9997_v58 = vpop.eup %9996 }
0x15c2   : > { %v2764_v60 = vsel %vm824_vm2, %v9997_v58, 0.0 }
0x15c3   : > { %2765 = vadd.xlane.f32.xlu1 %v2764_v60 }
0x164c   : > { %v2766_v61 = vpop.xlane.xlu1 %2765 }
0x164d   : > { %9998 = vrcp.f32 %v2766_v61 }
0x165a   : > { %v9999_v62 = vpop.eup %9998 }
0x165b   : > { %v2768_v0 = vmul.f32 %v9999_v62, %v9997_v58 }
0x165d   : > { %9293 = vmatmul.mubr.msk.f32.vlgmr.msra.gmra.mxu0 %vm824_vm2, %v2768_v0 }
0x165e   : > { %9304 = vmatpush3.bf16.msra.mxu0 %v9890_v63  ;;  %9307 = vmatprep.mubr.msk.bf16.mxu0 %vm10124_vm1, %v10123_v9  ;;  %v8403_v63 = vld [vmem:[%s11662_s8 + $0x6] ss:$0 sm:$0xff] }
0x165f   : > { %9305 = vmatprep.subr.bf16.mxu0 %v10123_v9 }
0x1662   : > { %9306 = vmatpush3.bf16.msra.mxu0 %v9891_v1 }
0x1663   : > { %9319 = vmatprep.subr.mxu0 %v10123_v9 }
0x1665   : > { %9308 = vmatmul.mubr.msk.bf16.vlgmr.msra.gmra.mxu0 %vm602_vm0, %v10644_v19 }
0x1666   : > { %9321 = vmatprep.mubr.msk.f32.mxu0 %vm10124_vm1, %v10123_v9 }
0x171d   : > { %v2838_v2 = vpop.f32.mrf.mxu0 }
0x171e   : > { %v2844_v32 = vpack.c.bf16 %v2838_v2, %v2838_v2 }
0x171f   : > { %v9294_v3 = vpop.f32.mrf.mxu0 }
0x1725   : > { %v2969_v5 = vpop.f32.mrf.mxu0 }
0x1726   : > { %v2970_v7 = vadd.f32 %v8361_v4, %v2969_v5 }
0x1727   : > { %v9309_v10 = vpop.f32.mrf.mxu0 }
0x1728   : > { %9320 = vmatpush3.xpose.msk.msra.mxu0 %vm824_vm2, %v2970_v7 }
0x1729   : > { %v2972_v12 = vpop.f32.mrf.mxu0  ;;  %9324 = vmatprep.subr.mxu0 %v10123_v9 }
0x172b   : > { %v9310_v14 = vpop.f32.mrf.mxu0  ;;  %9322 = vmatmul.mubr.msk.f32.vlgmr.msra.gmra.mxu0 %vm824_vm2, %v2905_v11 }
0x172c   : > { %9325 = vmatpush3.msra.mxu0 %v3035_v13  ;;  %9326 = vmatprep.mubr.msk.f32.mxu0 %vm10124_vm1, %v10123_v9 }
0x172d   : > { %9335 = vmatprep.subr.bf16.mxu0 %v10123_v9 }
0x17eb   : > { %v3112_v15 = vpop.f32.mrf.mxu0 }
0x17ec   : > { %v3116_v16 = vmul.f32 0.35355338, %v3112_v15 }
0x17ed   : > { %v9323_v17 = vpop.f32.mrf.mxu0 }
0x17ee   : > { %v3117_v18 = vsel %vm824_vm2, %v3116_v16, -inf  ;;  %v9898_v17 = vld [vmem:[%s11698_s2 + $0x78] sm:$0xff]  }
0x17ef   : > { %3118 = vmax.xlane.f32.xlu0 %v3117_v18 }
0x1878   : > { %v3119_v20 = vpop.xlane.xlu0 %3118 }
0x1879   : > { %v3120_v21 = vsub.f32 %v3116_v16, %v3119_v20  ;;  %v9899_v20 = vld [vmem:[%s11698_s2 + $0x70] sm:$0xff]  }
0x187b   : > { %v3121_v23 = vmul.f32 1.442695, %v3120_v21  ;;  %v9900_v21 = vld [vmem:[%s11661_s7 + $0x78] sm:$0xff]  }
0x187d   : > { %10000 = vpow2.f32 %v3121_v23  ;;  %v9901_v23 = vld [vmem:[%s11661_s7 + $0x70] sm:$0xff]  }
0x188a   : > { %v10001_v24 = vpop.eup %10000 }
0x188b   : > { %v3123_v25 = vsel %vm824_vm2, %v10001_v24, 0.0 }
0x188c   : > { %3124 = vadd.xlane.f32.xlu1 %v3123_v25 }
0x1915   : > { %v3125_v26 = vpop.xlane.xlu1 %3124 }
0x1916   : > { %10002 = vrcp.f32 %v3125_v26 }
0x1923   : > { %v10003_v28 = vpop.eup %10002 }
0x1924   : > { %v3127_v29 = vmul.f32 %v10003_v28, %v10001_v24  ;;  %v8410_v24 = vld [vmem:[%s11663_s9 + $0x18] sm:$0xf] }
0x1925   : > { %v3659_v25 = vsel %vm1350_vm3, %v8410_v24, 0  ;;  %v9905_v24 = vld [vmem:[%s11667_s13 + $0x10] sm:$0xff]  }
0x1926   : > { %9327 = vmatmul.mubr.msk.f32.vlgmr.msra.gmra.mxu0 %vm824_vm2, %v3127_v29 }
0x1927   : > { %9336 = vmatpush3.bf16.msra.mxu0 %v3254_v30  ;;  %9337 = vmatprep.mubr.msk.bf16.mxu0 %vm10124_vm1, %v10123_v9  ;;  %v9903_v30 = vld [vmem:[%s11699_s5 + $0x70] sm:$0xff]  }
0x1928   : > { %9349 = vmatprep.subr.bf16.mxu0 %v10123_v9 }
0x192a   : > { %9338 = vmatmul.mubr.msk.bf16.vlgmr.msra.gmra.mxu0 %vm824_vm2, %v2844_v32 }
0x192b   : > { %9350 = vmatpush3.bf16.msra.mxu0 %v9892_v31  ;;  %9353 = vmatprep.mubr.msk.bf16.mxu0 %vm10124_vm1, %v10123_v9 }
0x192c   : > { %9351 = vmatprep.subr.bf16.mxu0 %v10123_v9 }
0x192f   : > { %9352 = vmatpush3.bf16.msra.mxu0 %v9893_v33 }
0x1930   : > { %9365 = vmatprep.subr.mxu0 %v10123_v9 }
0x1932   : > { %9354 = vmatmul.mubr.msk.bf16.vlgmr.msra.gmra.mxu0 %vm602_vm0, %v10644_v19 }
0x1933   : > { %9367 = vmatprep.mubr.msk.f32.mxu0 %vm10124_vm1, %v10123_v9 }
0x19e6   : > { %v3197_v36 = vpop.f32.mrf.mxu0 }
0x19e7   : > { %v3203_v38 = vpack.c.bf16 %v3197_v36, %v3197_v36 }
0x19e8   : > { %v9328_v39 = vpop.f32.mrf.mxu0 }
0x19e9   : > { %9332 = vmatmul.mubr.msk.bf16.vlgmr.msra.gmra.mxu1 %vm824_vm2, %v3203_v38 }
0x19ea   : > { %v10768_v40 = vpop.f32.mrf.mxu0  ;;  %9342 = vmatpush3.bf16.msra.mxu1 %v9894_v37  ;;  %9345 = vmatprep.mubr.msk.bf16.mxu1 %vm10124_vm1, %v10123_v9 }
0x19eb   : > { %9343 = vmatprep.subr.bf16.mxu1 %v10123_v9 }
0x19ec   : > { %v9339_v43 = vpop.f32.mrf.mxu0 }
0x19ee   : > { %v3293_v44 = vpop.f32.mrf.mxu0  ;;  %9344 = vmatpush3.bf16.msra.mxu1 %v9895_v42 }
0x19ef   : > { %9357 = vmatprep.subr.bf16.mxu1 %v10123_v9 }
0x19f0   : > { %v9340_v22 = vpop.f32.mrf.mxu0 }
0x19f1   : > { %9346 = vmatmul.mubr.msk.bf16.vlgmr.msra.gmra.mxu1 %vm602_vm0, %v10644_v19 }
0x19f2   : > { %v3420_v47 = vpop.f32.mrf.mxu0  ;;  %9358 = vmatpush3.bf16.msra.mxu1 %v9896_v45  ;;  %9361 = vmatprep.mubr.msk.bf16.mxu1 %vm10124_vm1, %v10123_v9 }
0x19f3   : > { %v3421_v49 = vadd.f32 %v8394_v46, %v3420_v47  ;;  %9359 = vmatprep.subr.bf16.mxu1 %v10123_v9  ;;  %v8417_v47 = vld [vmem:[%s11702_s4 + $0x7] ss:$0 sm:$0xff] }
0x19f4   : > { %v9355_v41 = vpop.f32.mrf.mxu0 }
0x19f5   : > { %9366 = vmatpush3.xpose.msk.msra.mxu0 %vm824_vm2, %v3421_v49  ;;  %v8435_v49 = vld [vmem:[%s11662_s8 + $0x7] ss:$0 sm:$0xff] }
0x19f6   : > { %v3423_v50 = vpop.f32.mrf.mxu0  ;;  %9360 = vmatpush3.bf16.msra.mxu1 %v9897_v48  ;;  %9370 = vmatprep.subr.mxu0 %v10123_v9 }
0x19f7   : > { %9375 = vmatprep.subr.bf16.mxu1 %v10123_v9 }
0x19f8   : > { %v9356_v51 = vpop.f32.mrf.mxu0 }
0x19f9   : > { %9362 = vmatmul.mubr.msk.bf16.vlgmr.msra.gmra.mxu1 %vm602_vm0, %v10644_v19 }
0x19fa   : > { %9377 = vmatprep.mubr.msk.bf16.mxu1 %vm10124_vm1, %v10123_v9  ;;  %9376 = vmatpush3.bf16.msra.mxu1 %v3659_v25 }
0x19fb   : > { %9389 = vmatprep.subr.bf16.mxu1 %v10123_v9 }
0x1aa9   : > { %v10798_v52 = vpop.f32.mrf.mxu1 }
0x1aaa   : > { %v3291_v39 = vadd.f32 %v10768_v40, %v10798_v52 }
0x1aab   : > { %v9333_v53 = vpop.f32.mrf.mxu1 }
0x1aad   : > { %v3247_v54 = vpop.f32.mrf.mxu1 }
0x1aaf   : > { %v9334_v55 = vpop.f32.mrf.mxu1 }
0x1ab1   : > { %v3355_v57 = vpop.f32.mrf.mxu1 }
0x1ab2   : > { %v3356_v58 = vadd.f32 %v8385_v56, %v3355_v57 }
0x1ab3   : > { %v9347_v60 = vpop.f32.mrf.mxu1 }
0x1ab4   : > { %9368 = vmatmul.mubr.msk.f32.vlgmr.msra.gmra.mxu0 %vm824_vm2, %v3356_v58 }
0x1ab5   : > { %v3358_v61 = vpop.f32.mrf.mxu1  ;;  %9372 = vmatprep.mubr.msk.f32.mxu0 %vm10124_vm1, %v10123_v9 }
0x1ab7   : > { %v9348_v62 = vpop.f32.mrf.mxu1 }
0x1ab9   : > { %v3485_v0 = vpop.f32.mrf.mxu1 }
0x1aba   : > { %v3486_v1 = vadd.f32 %v8403_v63, %v3485_v0 }
0x1abb   : > { %v9363_v2 = vpop.f32.mrf.mxu1 }
0x1abc   : > { %9371 = vmatpush3.msra.mxu0 %v3486_v1  ;;  %v8442_v2 = vld [vmem:[%s11663_s9 + $0x1c] sm:$0xf] }
0x1abd   : > { %v3488_v3 = vpop.f32.mrf.mxu1  ;;  %9381 = vmatprep.subr.bf16.mxu0 %v10123_v9 }
0x1abe   : > { %v4065_v3 = vsel %vm1350_vm3, %v8442_v2, 0 }
0x1abf   : > { %v9364_v4 = vpop.f32.mrf.mxu1 }
0x1b74   : > { %v3563_v5 = vpop.f32.mrf.mxu0 }
0x1b75   : > { %v3567_v6 = vmul.f32 0.35355338, %v3563_v5 }
0x1b76   : > { %v9369_v7 = vpop.f32.mrf.mxu0 }
0x1b77   : > { %v3568_v8 = vsel %vm824_vm2, %v3567_v6, -inf }
0x1b78   : > { %3569 = vmax.xlane.f32.xlu0 %v3568_v8 }
0x1c01   : > { %v3570_v10 = vpop.xlane.xlu0 %3569 }
0x1c02   : > { %v3571_v11 = vsub.f32 %v3567_v6, %v3570_v10  ;;  %v8445_v10 = vld [vmem:[%s11664_s10 + $0x1] ss:$0 sm:$0xff] }
0x1c04   : > { %v3572_v12 = vmul.f32 1.442695, %v3571_v11 }
0x1c06   : > { %10004 = vpow2.f32 %v3572_v12 }
0x1c13   : > { %v10005_v13 = vpop.eup %10004 }
0x1c14   : > { %v3574_v14 = vsel %vm824_vm2, %v10005_v13, 0.0 }
0x1c15   : > { %3575 = vadd.xlane.f32.xlu1 %v3574_v14 }
0x1c9e   : > { %v3576_v15 = vpop.xlane.xlu1 %3575 }
0x1c9f   : > { %10006 = vrcp.f32 %v3576_v15 }
0x1cac   : > { %v10007_v16 = vpop.eup %10006 }
0x1cad   : > { %v3578_v18 = vmul.f32 %v10007_v16, %v10005_v13 }
0x1caf   : > { %9373 = vmatmul.mubr.msk.f32.vlgmr.msra.gmra.mxu0 %vm824_vm2, %v3578_v18 }
0x1cb0   : > { %9382 = vmatpush3.bf16.msra.mxu0 %v9898_v17  ;;  %9385 = vmatprep.mubr.msk.bf16.mxu0 %vm10124_vm1, %v10123_v9 }
0x1cb1   : > { %9383 = vmatprep.subr.bf16.mxu0 %v10123_v9 }
0x1cb4   : > { %9384 = vmatpush3.bf16.msra.mxu0 %v9899_v20 }
0x1cb5   : > { %9397 = vmatprep.subr.bf16.mxu0 %v10123_v9 }
0x1cb7   : > { %9386 = vmatmul.mubr.msk.bf16.vlgmr.msra.gmra.mxu0 %vm602_vm0, %v10644_v19 }
0x1cb8   : > { %9398 = vmatpush3.bf16.msra.mxu0 %v9900_v21  ;;  %9401 = vmatprep.mubr.msk.bf16.mxu0 %vm10124_vm1, %v10123_v9 }
0x1cb9   : > { %9399 = vmatprep.subr.bf16.mxu0 %v10123_v9 }
0x1cbc   : > { %9400 = vmatpush3.bf16.msra.mxu0 %v9901_v23 }
0x1cbd   : > { %9415 = vmatprep.subr.bf16.mxu0 %v10123_v9 }
0x1cbf   : > { %9402 = vmatmul.mubr.msk.bf16.vlgmr.msra.gmra.mxu0 %vm602_vm0, %v10644_v19 }
0x1cc0   : > { %9417 = vmatprep.mubr.msk.bf16.mxu0 %vm10124_vm1, %v10123_v9  ;;  %9416 = vmatpush3.bf16.msra.mxu0 %v4065_v3  ;;  %v9910_v3 = vld [vmem:[%s11698_s2 + $0x88] sm:$0xff]  }
0x1cc1   : > { %9429 = vmatprep.subr.bf16.mxu0 %v10123_v9 }
0x1d6f   : > { %v3648_v26 = vpop.f32.mrf.mxu0 }
0x1d70   : > { %v3654_v28 = vpack.c.bf16 %v3648_v26, %v3648_v26 }
0x1d71   : > { %v9374_v29 = vpop.f32.mrf.mxu0 }
0x1d72   : > { %9378 = vmatmul.mubr.msk.bf16.vlgmr.msra.gmra.mxu1 %vm824_vm2, %v3654_v28  ;;  %v8448_v29 = vld [vmem:[%s11665_s11 + $0x1] ss:$0 sm:$0xff] }
0x1d73   : > { %9390 = vmatpush3.bf16.msra.mxu1 %v9902_v27  ;;  %9393 = vmatprep.mubr.msk.bf16.mxu1 %vm10124_vm1, %v10123_v9 }
0x1d74   : > { %9391 = vmatprep.subr.bf16.mxu1 %v10123_v9 }
0x1d77   : > { %v3761_v31 = vpop.f32.mrf.mxu0  ;;  %9392 = vmatpush3.bf16.msra.mxu1 %v9903_v30 }
0x1d78   : > { %9405 = vmatprep.subr.mxu1 %v10123_v9  ;;  %v3762_v41 = vadd.f32 %v8417_v47, %v3761_v31  ;;  %v8449_v31 = vld [vmem:[%s11666_s12 + $0x1] ss:$0 sm:$0xff] }
0x1d79   : > { %v9387_v32 = vpop.f32.mrf.mxu0 }
0x1d7a   : > { %9394 = vmatmul.mubr.msk.bf16.vlgmr.msra.gmra.mxu1 %vm602_vm0, %v10644_v19  ;;  %v8426_v19 = vld [vmem:[%s11660_s6 + $0x7] ss:$0 sm:$0xff] }
0x1d7b   : > { %v3764_v33 = vpop.f32.mrf.mxu0  ;;  %9407 = vmatprep.mubr.msk.f32.mxu1 %vm10124_vm1, %v10123_v9 }
0x1d7d   : > { %v9388_v34 = vpop.f32.mrf.mxu0 }
0x1d7f   : > { %v3891_v35 = vpop.f32.mrf.mxu0 }
0x1d80   : > { %v3892_v51 = vadd.f32 %v8435_v49, %v3891_v35  ;;  %v9906_v35 = vld [vmem:[%s11669_s15 + $0x38] sm:$0xff]  }
0x1d81   : > { %v9403_v36 = vpop.f32.mrf.mxu0 }
0x1d82   : > { %v9907_v36 = vld [vmem:[%s11669_s15 + $0x30] sm:$0xff]  }
0x1d83   : > { %v3894_v37 = vpop.f32.mrf.mxu0 }
0x1d84   : > { %v9908_v37 = vld [vmem:[%s11669_s15 + $0x28] sm:$0xff]  }
0x1d85   : > { %v9404_v38 = vpop.f32.mrf.mxu0 }
0x1d86   : > { %v9909_v38 = vld [vmem:[%s11669_s15 + $0x20] sm:$0xff]  }
0x1e32   : > { %v3695_v42 = vpop.f32.mrf.mxu1 }
0x1e33   : > { %v3701_v43 = vadd.f32 %v3695_v42, %v3291_v39  ;;  %v8455_v39 = vld [vmem:[%s11668_s14 + $0x1] ss:$0 sm:$0xff] }
0x1e34   : > { %v9379_v44 = vpop.f32.mrf.mxu1 }
0x1e36   : > { %v3698_v45 = vpop.f32.mrf.mxu1 }
0x1e38   : > { %v9380_v22 = vpop.f32.mrf.mxu1 }
0x1e3a   : > { %v3826_v46 = vpop.f32.mrf.mxu1 }
0x1e3b   : > { %v3827_v48 = vadd.f32 %v8426_v19, %v3826_v46 }
0x1e3c   : > { %v9395_v40 = vpop.f32.mrf.mxu1 }
0x1e3d   : > { %9406 = vmatpush3.xpose.msk.msra.mxu1 %vm824_vm2, %v3827_v48 }
0x1e3e   : > { %v3829_v50 = vpop.f32.mrf.mxu1  ;;  %9410 = vmatprep.subr.mxu1 %v10123_v9 }
0x1e40   : > { %v9396_v52 = vpop.f32.mrf.mxu1  ;;  %9408 = vmatmul.mubr.msk.f32.vlgmr.msra.gmra.mxu1 %vm824_vm2, %v3762_v41 }
0x1e41   : > { %9411 = vmatpush3.msra.mxu1 %v3892_v51  ;;  %9412 = vmatprep.mubr.msk.f32.mxu1 %vm10124_vm1, %v10123_v9 }
0x1e42   : > { %9421 = vmatprep.subr.bf16.mxu1 %v10123_v9 }
0x1f00   : > { %v3969_v53 = vpop.f32.mrf.mxu1 }
0x1f01   : > { %v3973_v54 = vmul.f32 0.35355338, %v3969_v53  ;;  %v8468_v53 = vld [vmem:[%s11670_s16 + $0x1] ss:$0 sm:$0xff] }
0x1f02   : > { %v9409_v55 = vpop.f32.mrf.mxu1 }
0x1f03   : > { %v3974_v56 = vsel %vm824_vm2, %v3973_v54, -inf }
0x1f04   : > { %3975 = vmax.xlane.f32.xlu0 %v3974_v56 }
0x1f8d   : > { %v3976_v57 = vpop.xlane.xlu0 %3975 }
0x1f8e   : > { %v3977_v58 = vsub.f32 %v3973_v54, %v3976_v57 }
0x1f90   : > { %v3978_v60 = vmul.f32 1.442695, %v3977_v58 }
0x1f92   : > { %10008 = vpow2.f32 %v3978_v60 }
0x1f9f   : > { %v10009_v61 = vpop.eup %10008 }
0x1fa0   : > { %v3980_v62 = vsel %vm824_vm2, %v10009_v61, 0.0 }
0x1fa1   : > { %3981 = vadd.xlane.f32.xlu1 %v3980_v62 }
0x202a   : > { %v3982_v63 = vpop.xlane.xlu1 %3981 }
0x202b   : > { %10010 = vrcp.f32 %v3982_v63 }
0x2038   : > { %v10011_v0 = vpop.eup %10010 }
0x2039   : > { %v3984_v1 = vmul.f32 %v10011_v0, %v10009_v61 }
0x203b   : > { %9413 = vmatmul.mubr.msk.f32.vlgmr.msra.gmra.mxu1 %vm824_vm2, %v3984_v1 }
0x203c   : > { %9425 = vmatprep.mubr.msk.bf16.mxu1 %vm10124_vm1, %v10123_v9 }
0x20fb   : > { %v4054_v4 = vpop.f32.mrf.mxu1 }
0x20fc   : > { %v4060_v5 = vpack.c.bf16 %v4054_v4, %v4054_v4  ;;  %v9911_v4 = vld [vmem:[%s11661_s7 + $0x88] sm:$0xff]  }
0x20fd   : > { %v9414_v6 = vpop.f32.mrf.mxu1 }
0x20fe   : > { %9418 = vmatmul.mubr.msk.bf16.vlgmr.msra.gmra.mxu0 %vm824_vm2, %v4060_v5  ;;  %v9912_v5 = vld [vmem:[%s11698_s2 + $0x80] sm:$0xff]  }
0x20ff   : > { %9437 = vmatprep.mubr.msk.bf16.mxu0 %vm10124_vm1, %v10123_v9  ;;  %9430 = vmatpush3.bf16.msra.mxu0 %v9906_v35  ;;  %v9913_v6 = vld [vmem:[%s11661_s7 + $0x80] sm:$0xff]  }
0x2100   : > { %9431 = vmatprep.subr.bf16.mxu0 %v10123_v9 }
0x2103   : > { %9432 = vmatpush3.bf16.msra.mxu0 %v9907_v36  ;;  %v9916_v36 = vld [vmem:[%s11698_s2 + $0x98] sm:$0xff]  }
0x2104   : > { %9433 = vmatprep.subr.bf16.mxu0 %v10123_v9 }
0x2107   : > { %9434 = vmatpush3.bf16.msra.mxu0 %v9908_v37 }
0x2108   : > { %9435 = vmatprep.subr.bf16.mxu0 %v10123_v9 }
0x210b   : > { %9436 = vmatpush3.bf16.msra.mxu0 %v9909_v38 }
0x210c   : > { %9457 = vmatprep.subr.bf16.mxu0 %v10123_v9 }
0x21be   : > { %v4101_v7 = vpop.f32.mrf.mxu0 }
0x21bf   : > { %v4107_v8 = vadd.f32 %v4101_v7, %v3701_v43 }
0x21c0   : > { %v9419_v11 = vpop.f32.mrf.mxu0 }
0x21c1   : > { %v4108_v12 = vadd.f32 %v4107_v8, %v10613_v59  ;;  %v9904_v59 = vld [vmem:[%s11667_s13 + $0x18] sm:$0xff]  }
0x21c2   : > { %v4104_v13 = vpop.f32.mrf.mxu0  ;;  %9422 = vmatpush3.bf16.msra.mxu1 %v9904_v59 }
0x21c3   : > { %v10893_v14 = vadd.f32 %v8445_v10, %v4108_v12  ;;  %9423 = vmatprep.subr.bf16.mxu1 %v10123_v9  ;;  %v8476_v12 = vld [vmem:[%s11700_s27 + $0x2] ss:$0 sm:$0xff] }
0x21c4   : > { %v9420_v15 = vpop.f32.mrf.mxu0 }
0x21c5   : > { %v4122_v16 = vsel %vm602_vm0, %v10893_v14, 0.0 }
0x21c6   : > { %4123 = vadd.xlane.f32.xlu0 %v4122_v16  ;;  %9424 = vmatpush3.bf16.msra.mxu1 %v9905_v24 }
0x21c7   : > { %9441 = vmatprep.subr.bf16.mxu1 %v10123_v9 }
0x224f   : > { %v4124_v17 = vpop.xlane.xlu0 %4123 }
0x2250   : > { %v4125_v18 = vmul.f32 0.03125, %v4124_v17  ;;  %v9914_v17 = vld [vmem:[%s11699_s5 + $0x88] sm:$0xff]  }
0x2252   : > { %v4126_v20 = vsub.f32 %v10893_v14, %v4125_v18 }
0x2254   : > { %v4127_v21 = vmul.f32 %v4126_v20, %v4126_v20 }
0x2256   : > { %v4128_v23 = vsel %vm602_vm0, %v4127_v21, 0.0  ;;  %v8501_v21 = vld [vmem:[%s11662_s8 + $0x8] ss:$0 sm:$0xff] }
0x2257   : > { %4129 = vadd.xlane.f32.xlu1 %v4128_v23 }
0x22e0   : > { %v4130_v25 = vpop.xlane.xlu1 %4129 }
0x22e1   : > { %v4131_v26 = vmul.f32 0.03125, %v4130_v25 }
0x22e3   : > { %v4132_v27 = vadd.f32 1e-05, %v4131_v26 }
0x22e5   : > { %10012 = vrsqrt.f32 %v4132_v27 }
0x22f2   : > { %v10013_v28 = vpop.eup %10012 }
0x22f3   : > { %v4134_v30 = vmul.f32 %v10013_v28, %v4126_v20  ;;  %v9915_v20 = vld [vmem:[%s11699_s5 + $0x80] sm:$0xff]  }
0x22f5   : > { %v4141_v32 = vmul.f32 %v8448_v29, %v4134_v30 }
0x22f7   : > { %v4148_v33 = vadd.f32 %v8449_v31, %v4141_v32  ;;  %v8492_v31 = vld [vmem:[%s11660_s6 + $0x8] ss:$0 sm:$0xff] }
0x22f9   : > { %v4154_v34 = vpack.c.bf16 %v4148_v33, %v4148_v33  ;;  %v8483_v33 = vld [vmem:[%s11702_s4 + $0x8] ss:$0 sm:$0xff] }
0x22fb   : > { %9426 = vmatmul.mubr.msk.bf16.vlgmr.msra.gmra.mxu1 %vm602_vm0, %v4154_v34 }
0x22fc   : > { %9445 = vmatprep.mubr.msk.bf16.mxu1 %vm10124_vm1, %v10123_v9  ;;  %9442 = vmatpush3.bf16.msra.mxu1 %v9910_v3  ;;  %v8523_v3 = vld [vmem:[%s11660_s6 + $0x9] ss:$0 sm:$0xff] }
0x22fd   : > { %9443 = vmatprep.subr.bf16.mxu1 %v10123_v9 }
0x2300   : > { %9444 = vmatpush3.bf16.msra.mxu1 %v9912_v5  ;;  %v8514_v5 = vld [vmem:[%s11702_s4 + $0x9] ss:$0 sm:$0xff] }
0x2301   : > { %9449 = vmatprep.subr.bf16.mxu1 %v10123_v9 }
0x23bb   : > { %v4212_v42 = vpop.f32.mrf.mxu1 }
0x23bc   : > { %v4213_v43 = vadd.f32 %v8455_v39, %v4212_v42  ;;  %v9917_v42 = vld [vmem:[%s11698_s2 + $0x90] sm:$0xff]  }
0x23bd   : > { %v9427_v44 = vpop.f32.mrf.mxu1 }
0x23be   : > { %v4218_v45 = vmul.f32 %v4213_v43, %v4213_v43  ;;  %v9919_v44 = vld [vmem:[%s11661_s7 + $0x90] sm:$0xff]  }
0x23bf   : > { %v4215_v22 = vpop.f32.mrf.mxu1 }
0x23c0   : > { %v4219_v19 = vmul.f32 %v4218_v45, %v4213_v43 }
0x23c1   : > { %v9428_v46 = vpop.f32.mrf.mxu1 }
0x23c2   : > { %v4220_v47 = vmul.f32 0.044715, %v4219_v19 }
0x23c4   : > { %v4221_v48 = vadd.f32 %v4220_v47, %v4213_v43 }
0x23c6   : > { %v4222_v49 = vmul.f32 0.7978846, %v4221_v48 }
0x23c8   : > { %10014 = vtanh.f32 %v4222_v49 }
0x23d5   : > { %v10015_v40 = vpop.eup %10014 }
0x23d6   : > { %v4224_v41 = vadd.f32 1.0, %v10015_v40 }
0x23d8   : > { %v4225_v50 = vmul.f32 0.5, %v4224_v41 }
0x23da   : > { %v4226_v51 = vmul.f32 %v4225_v50, %v4213_v43  ;;  %v9918_v43 = vld [vmem:[%s11661_s7 + $0x98] sm:$0xff]  }
0x23dc   : > { %v4236_v52 = vpack.c.bf16 %v4226_v51, %v4226_v51 }
0x23de   : > { %9438 = vmatmul.mubr.msk.bf16.vlgmr.msra.gmra.mxu0 %vm2406_vm4, %v4236_v52 }
0x23df   : > { %9461 = vmatprep.mubr.msk.bf16.mxu0 %vm10124_vm1, %v10123_v9  ;;  %9458 = vmatpush3.bf16.msra.mxu0 %v9911_v4 }
0x23e0   : > { %9459 = vmatprep.subr.bf16.mxu0 %v10123_v9 }
0x23e3   : > { %9460 = vmatpush3.bf16.msra.mxu0 %v9913_v6 }
0x23e4   : > { %9470 = vmatprep.subr.mxu0 %v10123_v9 }
0x249e   : > { %v4306_v54 = vpop.f32.mrf.mxu0 }
0x249f   : > { %v4307_v55 = vadd.f32 %v8468_v53, %v4306_v54 }
0x24a0   : > { %v9439_v56 = vpop.f32.mrf.mxu0 }
0x24a1   : > { %v10942_v57 = vadd.f32 %v4307_v55, %v10893_v14  ;;  %v8477_v14 = vld [vmem:[%s11701_s22 + $0x2] ss:$0 sm:$0xff] }
0x24a2   : > { %v4309_v58 = vpop.f32.mrf.mxu0 }
0x24a3   : > { %v4317_v60 = vsel %vm602_vm0, %v10942_v57, 0.0 }
0x24a4   : > { %4318 = vadd.xlane.f32.xlu0 %v4317_v60  ;;  %v9440_v61 = vpop.f32.mrf.mxu0 }
0x252d   : > { %v4319_v62 = vpop.xlane.xlu0 %4318 }
0x252e   : > { %v4320_v63 = vmul.f32 0.03125, %v4319_v62  ;;  %v9920_v62 = vld [vmem:[%s11699_s5 + $0x98] sm:$0xff]  }
0x2530   : > { %v4321_v0 = vsub.f32 %v10942_v57, %v4320_v63 }
0x2532   : > { %v4322_v1 = vmul.f32 %v4321_v0, %v4321_v0 }
0x2534   : > { %v4323_v2 = vsel %vm602_vm0, %v4322_v1, 0.0 }
0x2535   : > { %4324 = vadd.xlane.f32.xlu1 %v4323_v2 }
0x25be   : > { %v4325_v7 = vpop.xlane.xlu1 %4324 }
0x25bf   : > { %v4326_v8 = vmul.f32 0.03125, %v4325_v7  ;;  %v8532_v7 = vld [vmem:[%s11662_s8 + $0x9] ss:$0 sm:$0xff] }
0x25c1   : > { %v4327_v10 = vadd.f32 1e-05, %v4326_v8 }
0x25c3   : > { %10016 = vrsqrt.f32 %v4327_v10 }
0x25d0   : > { %v10017_v11 = vpop.eup %10016 }
0x25d1   : > { %v4329_v13 = vmul.f32 %v10017_v11, %v4321_v0  ;;  %v9921_v0 = vld [vmem:[%s11699_s5 + $0x90] sm:$0xff]  }
0x25d3   : > { %v4336_v15 = vmul.f32 %v8476_v12, %v4329_v13 }
0x25d5   : > { %v4343_v16 = vadd.f32 %v8477_v14, %v4336_v15 }
0x25d7   : > { %v10973_v18 = vpack.c.bf16 %v4343_v16, %v4343_v16 }
0x25d9   : > { %9446 = vmatmul.mubr.msk.bf16.vlgmr.msra.gmra.mxu1 %vm602_vm0, %v10973_v18  ;;  %9462 = vmatmul.mubr.msk.bf16.vlgmr.msra.gmra.mxu0 %vm602_vm0, %v10973_v18 }
0x25da   : > { %9450 = vmatpush3.bf16.msra.mxu1 %v9914_v17  ;;  %9453 = vmatprep.mubr.msk.bf16.mxu1 %vm10124_vm1, %v10123_v9 }
0x25db   : > { %9451 = vmatprep.subr.bf16.mxu1 %v10123_v9  ;;  %9472 = vmatprep.mubr.msk.f32.mxu0 %vm10124_vm1, %v10123_v9 }
0x25de   : > { %9452 = vmatpush3.bf16.msra.mxu1 %v9915_v20 }
0x25df   : > { %9465 = vmatprep.subr.mxu1 %v10123_v9 }
0x25e1   : > { %9454 = vmatmul.mubr.msk.bf16.vlgmr.msra.gmra.mxu1 %vm602_vm0, %v10973_v18 }
0x25e2   : > { %9467 = vmatprep.mubr.msk.f32.mxu1 %vm10124_vm1, %v10123_v9 }
0x2699   : > { %v4407_v23 = vpop.f32.mrf.mxu1  ;;  %v4537_v59 = vpop.f32.mrf.mxu0 }
0x269a   : > { %v4538_v24 = vadd.f32 %v8501_v21, %v4537_v59  ;;  %v4408_v37 = vadd.f32 %v8483_v33, %v4407_v23  ;;  %v8539_v33 = vld [vmem:[%s11663_s9 + $0x24] sm:$0xf] }
0x269b   : > { %v9447_v25 = vpop.f32.mrf.mxu1  ;;  %v9463_v26 = vpop.f32.mrf.mxu0 }
0x269c   : > { %9471 = vmatpush3.msra.mxu0 %v4538_v24  ;;  %v8508_v26 = vld [vmem:[%s11663_s9 + $0x20] sm:$0xf] }
0x269d   : > { %v4410_v27 = vpop.f32.mrf.mxu1  ;;  %v4540_v28 = vpop.f32.mrf.mxu0  ;;  %9483 = vmatprep.subr.bf16.mxu0 %v10123_v9 }
0x269f   : > { %v9448_v29 = vpop.f32.mrf.mxu1  ;;  %v9464_v30 = vpop.f32.mrf.mxu0 }
0x26a0   : > { %v5116_v29 = vsel %vm1350_vm3, %v8508_v26, 0  ;;  %v9922_v30 = vld [vmem:[%s11699_s5 + $0xa8] sm:$0xff]   ;;  %v9932_v26 = vld [vmem:[%s11699_s5 + $0xb8] sm:$0xff]  }
0x26a1   : > { %v4472_v32 = vpop.f32.mrf.mxu1 }
0x26a2   : > { %v4473_v34 = vadd.f32 %v8492_v31, %v4472_v32  ;;  %v9923_v32 = vld [vmem:[%s11699_s5 + $0xa0] sm:$0xff]  }
0x26a3   : > { %v9455_v35 = vpop.f32.mrf.mxu1 }
0x26a4   : > { %9466 = vmatpush3.xpose.msk.msra.mxu1 %vm824_vm2, %v4473_v34  ;;  %v5070_v34 = vsel %vm1350_vm3, %v8539_v33, 0 }
0x26a5   : > { %v4475_v38 = vpop.f32.mrf.mxu1  ;;  %9475 = vmatprep.subr.bf16.mxu1 %v10123_v9 }
0x26a7   : > { %v9456_v39 = vpop.f32.mrf.mxu1  ;;  %9468 = vmatmul.mubr.msk.f32.vlgmr.msra.gmra.mxu1 %vm824_vm2, %v4408_v37 }
0x26a8   : > { %9476 = vmatpush3.bf16.msra.mxu1 %v9916_v36  ;;  %9479 = vmatprep.mubr.msk.bf16.mxu1 %vm10124_vm1, %v10123_v9  ;;  %v9924_v36 = vld [vmem:[%s11698_s2 + $0xa8] sm:$0xff]  }
0x26a9   : > { %9477 = vmatprep.subr.bf16.mxu1 %v10123_v9 }
0x26ac   : > { %9478 = vmatpush3.bf16.msra.mxu1 %v9917_v42  ;;  %v9925_v42 = vld [vmem:[%s11698_s2 + $0xa0] sm:$0xff]  }
0x26ad   : > { %9491 = vmatprep.subr.bf16.mxu1 %v10123_v9 }
0x26af   : > { %9480 = vmatmul.mubr.msk.bf16.vlgmr.msra.gmra.mxu1 %vm602_vm0, %v10973_v18 }
0x26b0   : > { %9492 = vmatpush3.bf16.msra.mxu1 %v9918_v43  ;;  %9495 = vmatprep.mubr.msk.bf16.mxu1 %vm10124_vm1, %v10123_v9 }
0x26b1   : > { %9493 = vmatprep.subr.bf16.mxu1 %v10123_v9 }
0x26b4   : > { %9494 = vmatpush3.bf16.msra.mxu1 %v9919_v44 }
0x26b5   : > { %9509 = vmatprep.subr.bf16.mxu1 %v10123_v9 }
0x26b7   : > { %9496 = vmatmul.mubr.msk.bf16.vlgmr.msra.gmra.mxu1 %vm602_vm0, %v10973_v18 }
0x26b8   : > { %9511 = vmatprep.mubr.msk.bf16.mxu1 %vm10124_vm1, %v10123_v9  ;;  %9510 = vmatpush3.bf16.msra.mxu1 %v5070_v34 }
0x26b9   : > { %9521 = vmatprep.subr.bf16.mxu1 %v10123_v9 }
0x2767   : > { %v4615_v45 = vpop.f32.mrf.mxu1 }
0x2768   : > { %v4619_v22 = vmul.f32 0.35355338, %v4615_v45  ;;  %v9926_v45 = vld [vmem:[%s11661_s7 + $0xa8] sm:$0xff]  }
0x2769   : > { %v9469_v19 = vpop.f32.mrf.mxu1 }
0x276a   : > { %v4620_v46 = vsel %vm824_vm2, %v4619_v22, -inf  ;;  %v8556_v19 = vld [vmem:[%s11660_s6 + $0xa] ss:$0 sm:$0xff] }
0x276b   : > { %4621 = vmax.xlane.f32.xlu0 %v4620_v46 }
0x276f   : > { %v4766_v47 = vpop.f32.mrf.mxu1 }
0x2770   : > { %v4767_v10 = vadd.f32 %v8514_v5, %v4766_v47  ;;  %v9927_v47 = vld [vmem:[%s11661_s7 + $0xa0] sm:$0xff]  }
0x2771   : > { %v9481_v48 = vpop.f32.mrf.mxu1 }
0x2773   : > { %v4769_v49 = vpop.f32.mrf.mxu1 }
0x2775   : > { %v9482_v40 = vpop.f32.mrf.mxu1 }
0x2777   : > { %v4896_v41 = vpop.f32.mrf.mxu1 }
0x2778   : > { %v4897_v12 = vadd.f32 %v8532_v7, %v4896_v41 }
0x2779   : > { %v9497_v50 = vpop.f32.mrf.mxu1 }
0x277b   : > { %v4899_v51 = vpop.f32.mrf.mxu1 }
0x277d   : > { %v9498_v52 = vpop.f32.mrf.mxu1 }
0x27f4   : > { %v4622_v53 = vpop.xlane.xlu0 %4621 }
0x27f5   : > { %v4623_v54 = vsub.f32 %v4619_v22, %v4622_v53 }
0x27f7   : > { %v4624_v55 = vmul.f32 1.442695, %v4623_v54  ;;  %v8547_v54 = vld [vmem:[%s11702_s4 + $0xa] ss:$0 sm:$0xff] }
0x27f9   : > { %10018 = vpow2.f32 %v4624_v55 }
0x2806   : > { %v10019_v56 = vpop.eup %10018 }
0x2807   : > { %v4626_v58 = vsel %vm824_vm2, %v10019_v56, 0.0 }
0x2808   : > { %4627 = vadd.xlane.f32.xlu1 %v4626_v58 }
0x2891   : > { %v4628_v60 = vpop.xlane.xlu1 %4627 }
0x2892   : > { %10020 = vrcp.f32 %v4628_v60 }
0x289f   : > { %v10021_v61 = vpop.eup %10020 }
0x28a0   : > { %v4630_v63 = vmul.f32 %v10021_v61, %v10019_v56 }
0x28a2   : > { %9473 = vmatmul.mubr.msk.f32.vlgmr.msra.gmra.mxu0 %vm824_vm2, %v4630_v63 }
0x28a3   : > { %9484 = vmatpush3.bf16.msra.mxu0 %v9920_v62  ;;  %9487 = vmatprep.mubr.msk.bf16.mxu0 %vm10124_vm1, %v10123_v9  ;;  %v8565_v62 = vld [vmem:[%s11662_s8 + $0xa] ss:$0 sm:$0xff] }
0x28a4   : > { %9485 = vmatprep.subr.bf16.mxu0 %v10123_v9 }
0x28a7   : > { %9486 = vmatpush3.bf16.msra.mxu0 %v9921_v0 }
0x28a8   : > { %9499 = vmatprep.subr.mxu0 %v10123_v9 }
0x28aa   : > { %9488 = vmatmul.mubr.msk.bf16.vlgmr.msra.gmra.mxu0 %vm602_vm0, %v10973_v18 }
0x28ab   : > { %9501 = vmatprep.mubr.msk.f32.mxu0 %vm10124_vm1, %v10123_v9 }
0x2962   : > { %v4700_v1 = vpop.f32.mrf.mxu0 }
0x2963   : > { %v4706_v31 = vpack.c.bf16 %v4700_v1, %v4700_v1 }
0x2964   : > { %v9474_v2 = vpop.f32.mrf.mxu0 }
0x296a   : > { %v4831_v4 = vpop.f32.mrf.mxu0 }
0x296b   : > { %v4832_v6 = vadd.f32 %v8523_v3, %v4831_v4 }
0x296c   : > { %v9489_v8 = vpop.f32.mrf.mxu0 }
0x296d   : > { %9500 = vmatpush3.xpose.msk.msra.mxu0 %vm824_vm2, %v4832_v6 }
0x296e   : > { %v4834_v11 = vpop.f32.mrf.mxu0  ;;  %9504 = vmatprep.subr.mxu0 %v10123_v9 }
0x2970   : > { %v9490_v13 = vpop.f32.mrf.mxu0  ;;  %9502 = vmatmul.mubr.msk.f32.vlgmr.msra.gmra.mxu0 %vm824_vm2, %v4767_v10 }
0x2971   : > { %9505 = vmatpush3.msra.mxu0 %v4897_v12  ;;  %9506 = vmatprep.mubr.msk.f32.mxu0 %vm10124_vm1, %v10123_v9 }
0x2972   : > { %9515 = vmatprep.subr.bf16.mxu0 %v10123_v9 }
0x2a30   : > { %v4974_v14 = vpop.f32.mrf.mxu0 }
0x2a31   : > { %v4978_v15 = vmul.f32 0.35355338, %v4974_v14 }
0x2a32   : > { %v9503_v16 = vpop.f32.mrf.mxu0 }
0x2a33   : > { %v4979_v17 = vsel %vm824_vm2, %v4978_v15, -inf  ;;  %v9928_v16 = vld [vmem:[%s11698_s2 + $0xb8] sm:$0xff]  }
0x2a34   : > { %4980 = vmax.xlane.f32.xlu0 %v4979_v17 }
0x2abd   : > { %v4981_v20 = vpop.xlane.xlu0 %4980 }
0x2abe   : > { %v4982_v21 = vsub.f32 %v4978_v15, %v4981_v20  ;;  %v9929_v20 = vld [vmem:[%s11698_s2 + $0xb0] sm:$0xff]  }
0x2ac0   : > { %v4983_v23 = vmul.f32 1.442695, %v4982_v21  ;;  %v9930_v21 = vld [vmem:[%s11661_s7 + $0xb8] sm:$0xff]  }
0x2ac2   : > { %10022 = vpow2.f32 %v4983_v23  ;;  %v9931_v23 = vld [vmem:[%s11661_s7 + $0xb0] sm:$0xff]  }
0x2acf   : > { %v10023_v59 = vpop.eup %10022 }
0x2ad0   : > { %v4985_v24 = vsel %vm824_vm2, %v10023_v59, 0.0 }
0x2ad1   : > { %4986 = vadd.xlane.f32.xlu1 %v4985_v24 }
0x2b5a   : > { %v4987_v25 = vpop.xlane.xlu1 %4986 }
0x2b5b   : > { %10024 = vrcp.f32 %v4987_v25 }
0x2b68   : > { %v10025_v27 = vpop.eup %10024 }
0x2b69   : > { %v4989_v28 = vmul.f32 %v10025_v27, %v10023_v59  ;;  %v8572_v59 = vld [vmem:[%s11663_s9 + $0x28] sm:$0xf] }
0x2b6a   : > { %v5521_v24 = vsel %vm1350_vm3, %v8572_v59, 0  ;;  %v9935_v59 = vld [vmem:[%s11667_s13 + $0x20] sm:$0xff]  }
0x2b6b   : > { %9507 = vmatmul.mubr.msk.f32.vlgmr.msra.gmra.mxu0 %vm824_vm2, %v4989_v28 }
0x2b6c   : > { %9516 = vmatpush3.bf16.msra.mxu0 %v5116_v29  ;;  %9517 = vmatprep.mubr.msk.bf16.mxu0 %vm10124_vm1, %v10123_v9  ;;  %v9933_v29 = vld [vmem:[%s11699_s5 + $0xb0] sm:$0xff]  }
0x2b6d   : > { %9529 = vmatprep.subr.bf16.mxu0 %v10123_v9 }
0x2b6f   : > { %9518 = vmatmul.mubr.msk.bf16.vlgmr.msra.gmra.mxu0 %vm824_vm2, %v4706_v31 }
0x2b70   : > { %9530 = vmatpush3.bf16.msra.mxu0 %v9922_v30  ;;  %9533 = vmatprep.mubr.msk.bf16.mxu0 %vm10124_vm1, %v10123_v9 }
0x2b71   : > { %9531 = vmatprep.subr.bf16.mxu0 %v10123_v9 }
0x2b74   : > { %9532 = vmatpush3.bf16.msra.mxu0 %v9923_v32 }
0x2b75   : > { %9545 = vmatprep.subr.mxu0 %v10123_v9 }
0x2b77   : > { %9534 = vmatmul.mubr.msk.bf16.vlgmr.msra.gmra.mxu0 %vm602_vm0, %v10973_v18 }
0x2b78   : > { %9547 = vmatprep.mubr.msk.f32.mxu0 %vm10124_vm1, %v10123_v9 }
0x2c2b   : > { %v5059_v35 = vpop.f32.mrf.mxu0 }
0x2c2c   : > { %v5065_v37 = vpack.c.bf16 %v5059_v35, %v5059_v35 }
0x2c2d   : > { %v9508_v38 = vpop.f32.mrf.mxu0 }
0x2c2e   : > { %9512 = vmatmul.mubr.msk.bf16.vlgmr.msra.gmra.mxu1 %vm824_vm2, %v5065_v37 }
0x2c2f   : > { %v11097_v39 = vpop.f32.mrf.mxu0  ;;  %9522 = vmatpush3.bf16.msra.mxu1 %v9924_v36  ;;  %9525 = vmatprep.mubr.msk.bf16.mxu1 %vm10124_vm1, %v10123_v9 }
0x2c30   : > { %9523 = vmatprep.subr.bf16.mxu1 %v10123_v9 }
0x2c31   : > { %v9519_v43 = vpop.f32.mrf.mxu0 }
0x2c33   : > { %v5155_v44 = vpop.f32.mrf.mxu0  ;;  %9524 = vmatpush3.bf16.msra.mxu1 %v9925_v42 }
0x2c34   : > { %9537 = vmatprep.subr.bf16.mxu1 %v10123_v9 }
0x2c35   : > { %v9520_v22 = vpop.f32.mrf.mxu0 }
0x2c36   : > { %9526 = vmatmul.mubr.msk.bf16.vlgmr.msra.gmra.mxu1 %vm602_vm0, %v10973_v18 }
0x2c37   : > { %v5282_v46 = vpop.f32.mrf.mxu0  ;;  %9538 = vmatpush3.bf16.msra.mxu1 %v9926_v45  ;;  %9541 = vmatprep.mubr.msk.bf16.mxu1 %vm10124_vm1, %v10123_v9 }
0x2c38   : > { %v5283_v48 = vadd.f32 %v8556_v19, %v5282_v46  ;;  %9539 = vmatprep.subr.bf16.mxu1 %v10123_v9  ;;  %v8579_v46 = vld [vmem:[%s11702_s4 + $0xb] ss:$0 sm:$0xff] }
0x2c39   : > { %v9535_v49 = vpop.f32.mrf.mxu0 }
0x2c3a   : > { %9546 = vmatpush3.xpose.msk.msra.mxu0 %vm824_vm2, %v5283_v48  ;;  %v8597_v48 = vld [vmem:[%s11662_s8 + $0xb] ss:$0 sm:$0xff] }
0x2c3b   : > { %v5285_v40 = vpop.f32.mrf.mxu0  ;;  %9540 = vmatpush3.bf16.msra.mxu1 %v9927_v47  ;;  %9550 = vmatprep.subr.mxu0 %v10123_v9 }
0x2c3c   : > { %9555 = vmatprep.subr.bf16.mxu1 %v10123_v9 }
0x2c3d   : > { %v9536_v41 = vpop.f32.mrf.mxu0 }
0x2c3e   : > { %9542 = vmatmul.mubr.msk.bf16.vlgmr.msra.gmra.mxu1 %vm602_vm0, %v10973_v18 }
0x2c3f   : > { %9557 = vmatprep.mubr.msk.bf16.mxu1 %vm10124_vm1, %v10123_v9  ;;  %9556 = vmatpush3.bf16.msra.mxu1 %v5521_v24 }
0x2c40   : > { %9569 = vmatprep.subr.bf16.mxu1 %v10123_v9 }
0x2cee   : > { %v11127_v50 = vpop.f32.mrf.mxu1 }
0x2cef   : > { %v5153_v38 = vadd.f32 %v11097_v39, %v11127_v50 }
0x2cf0   : > { %v9513_v51 = vpop.f32.mrf.mxu1 }
0x2cf2   : > { %v5109_v52 = vpop.f32.mrf.mxu1 }
0x2cf4   : > { %v9514_v53 = vpop.f32.mrf.mxu1 }
0x2cf6   : > { %v5217_v55 = vpop.f32.mrf.mxu1 }
0x2cf7   : > { %v5218_v56 = vadd.f32 %v8547_v54, %v5217_v55 }
0x2cf8   : > { %v9527_v58 = vpop.f32.mrf.mxu1 }
0x2cf9   : > { %9548 = vmatmul.mubr.msk.f32.vlgmr.msra.gmra.mxu0 %vm824_vm2, %v5218_v56 }
0x2cfa   : > { %v5220_v60 = vpop.f32.mrf.mxu1  ;;  %9552 = vmatprep.mubr.msk.f32.mxu0 %vm10124_vm1, %v10123_v9 }
0x2cfc   : > { %v9528_v61 = vpop.f32.mrf.mxu1 }
0x2cfe   : > { %v5347_v63 = vpop.f32.mrf.mxu1 }
0x2cff   : > { %v5348_v0 = vadd.f32 %v8565_v62, %v5347_v63 }
0x2d00   : > { %v9543_v1 = vpop.f32.mrf.mxu1 }
0x2d01   : > { %9551 = vmatpush3.msra.mxu0 %v5348_v0  ;;  %v8604_v1 = vld [vmem:[%s11663_s9 + $0x2c] sm:$0xf] }
0x2d02   : > { %v5350_v2 = vpop.f32.mrf.mxu1  ;;  %9561 = vmatprep.subr.bf16.mxu0 %v10123_v9 }
0x2d03   : > { %v5927_v2 = vsel %vm1350_vm3, %v8604_v1, 0 }
0x2d04   : > { %v9544_v3 = vpop.f32.mrf.mxu1 }
0x2db9   : > { %v5425_v4 = vpop.f32.mrf.mxu0 }
0x2dba   : > { %v5429_v5 = vmul.f32 0.35355338, %v5425_v4 }
0x2dbb   : > { %v9549_v6 = vpop.f32.mrf.mxu0 }
0x2dbc   : > { %v5430_v7 = vsel %vm824_vm2, %v5429_v5, -inf }
0x2dbd   : > { %5431 = vmax.xlane.f32.xlu0 %v5430_v7 }
0x2e46   : > { %v5432_v8 = vpop.xlane.xlu0 %5431 }
0x2e47   : > { %v5433_v10 = vsub.f32 %v5429_v5, %v5432_v8  ;;  %v8607_v8 = vld [vmem:[%s11664_s10 + $0x2] ss:$0 sm:$0xff] }
0x2e49   : > { %v5434_v11 = vmul.f32 1.442695, %v5433_v10 }
0x2e4b   : > { %10026 = vpow2.f32 %v5434_v11 }
0x2e58   : > { %v10027_v12 = vpop.eup %10026 }
0x2e59   : > { %v5436_v13 = vsel %vm824_vm2, %v10027_v12, 0.0 }
0x2e5a   : > { %5437 = vadd.xlane.f32.xlu1 %v5436_v13 }
0x2ee3   : > { %v5438_v14 = vpop.xlane.xlu1 %5437 }
0x2ee4   : > { %10028 = vrcp.f32 %v5438_v14 }
0x2ef1   : > { %v10029_v15 = vpop.eup %10028 }
0x2ef2   : > { %v5440_v17 = vmul.f32 %v10029_v15, %v10027_v12 }
0x2ef4   : > { %9553 = vmatmul.mubr.msk.f32.vlgmr.msra.gmra.mxu0 %vm824_vm2, %v5440_v17 }
0x2ef5   : > { %9562 = vmatpush3.bf16.msra.mxu0 %v9928_v16  ;;  %9565 = vmatprep.mubr.msk.bf16.mxu0 %vm10124_vm1, %v10123_v9 }
0x2ef6   : > { %9563 = vmatprep.subr.bf16.mxu0 %v10123_v9 }
0x2ef9   : > { %9564 = vmatpush3.bf16.msra.mxu0 %v9929_v20 }
0x2efa   : > { %9577 = vmatprep.subr.bf16.mxu0 %v10123_v9 }
0x2efc   : > { %9566 = vmatmul.mubr.msk.bf16.vlgmr.msra.gmra.mxu0 %vm602_vm0, %v10973_v18 }
0x2efd   : > { %9578 = vmatpush3.bf16.msra.mxu0 %v9930_v21  ;;  %9581 = vmatprep.mubr.msk.bf16.mxu0 %vm10124_vm1, %v10123_v9 }
0x2efe   : > { %9579 = vmatprep.subr.bf16.mxu0 %v10123_v9 }
0x2f01   : > { %9580 = vmatpush3.bf16.msra.mxu0 %v9931_v23 }
0x2f02   : > { %9595 = vmatprep.subr.bf16.mxu0 %v10123_v9 }
0x2f04   : > { %9582 = vmatmul.mubr.msk.bf16.vlgmr.msra.gmra.mxu0 %vm602_vm0, %v10973_v18 }
0x2f05   : > { %9597 = vmatprep.mubr.msk.bf16.mxu0 %vm10124_vm1, %v10123_v9  ;;  %9596 = vmatpush3.bf16.msra.mxu0 %v5927_v2  ;;  %v9940_v2 = vld [vmem:[%s11698_s2 + $0xc8] sm:$0xff]  }
0x2f06   : > { %9609 = vmatprep.subr.bf16.mxu0 %v10123_v9 }
0x2fb4   : > { %v5510_v25 = vpop.f32.mrf.mxu0 }
0x2fb5   : > { %v5516_v27 = vpack.c.bf16 %v5510_v25, %v5510_v25 }
0x2fb6   : > { %v9554_v28 = vpop.f32.mrf.mxu0 }
0x2fb7   : > { %9558 = vmatmul.mubr.msk.bf16.vlgmr.msra.gmra.mxu1 %vm824_vm2, %v5516_v27  ;;  %v8610_v28 = vld [vmem:[%s11665_s11 + $0x2] ss:$0 sm:$0xff] }
0x2fb8   : > { %9570 = vmatpush3.bf16.msra.mxu1 %v9932_v26  ;;  %9573 = vmatprep.mubr.msk.bf16.mxu1 %vm10124_vm1, %v10123_v9 }
0x2fb9   : > { %9571 = vmatprep.subr.bf16.mxu1 %v10123_v9 }
0x2fbc   : > { %v5623_v30 = vpop.f32.mrf.mxu0  ;;  %9572 = vmatpush3.bf16.msra.mxu1 %v9933_v29 }
0x2fbd   : > { %9585 = vmatprep.subr.mxu1 %v10123_v9  ;;  %v5624_v49 = vadd.f32 %v8579_v46, %v5623_v30  ;;  %v8611_v30 = vld [vmem:[%s11666_s12 + $0x2] ss:$0 sm:$0xff] }
0x2fbe   : > { %v9567_v31 = vpop.f32.mrf.mxu0 }
0x2fbf   : > { %9574 = vmatmul.mubr.msk.bf16.vlgmr.msra.gmra.mxu1 %vm602_vm0, %v10973_v18  ;;  %v8588_v18 = vld [vmem:[%s11660_s6 + $0xb] ss:$0 sm:$0xff] }
0x2fc0   : > { %v5626_v32 = vpop.f32.mrf.mxu0  ;;  %9587 = vmatprep.mubr.msk.f32.mxu1 %vm10124_vm1, %v10123_v9 }
0x2fc2   : > { %v9568_v33 = vpop.f32.mrf.mxu0 }
0x2fc4   : > { %v5753_v34 = vpop.f32.mrf.mxu0 }
0x2fc5   : > { %v5754_v41 = vadd.f32 %v8597_v48, %v5753_v34  ;;  %v9936_v34 = vld [vmem:[%s11669_s15 + $0x58] sm:$0xff]  }
0x2fc6   : > { %v9583_v35 = vpop.f32.mrf.mxu0 }
0x2fc7   : > { %v9937_v35 = vld [vmem:[%s11669_s15 + $0x50] sm:$0xff]  }
0x2fc8   : > { %v5756_v36 = vpop.f32.mrf.mxu0 }
0x2fc9   : > { %v9938_v36 = vld [vmem:[%s11669_s15 + $0x48] sm:$0xff]  }
0x2fca   : > { %v9584_v37 = vpop.f32.mrf.mxu0 }
0x2fcb   : > { %v9939_v37 = vld [vmem:[%s11669_s15 + $0x40] sm:$0xff]  }
0x3077   : > { %v5557_v42 = vpop.f32.mrf.mxu1 }
0x3078   : > { %v5563_v43 = vadd.f32 %v5557_v42, %v5153_v38  ;;  %v8617_v38 = vld [vmem:[%s11668_s14 + $0x2] ss:$0 sm:$0xff] }
0x3079   : > { %v9559_v44 = vpop.f32.mrf.mxu1 }
0x307b   : > { %v5560_v45 = vpop.f32.mrf.mxu1 }
0x307d   : > { %v9560_v22 = vpop.f32.mrf.mxu1 }
0x307f   : > { %v5688_v19 = vpop.f32.mrf.mxu1 }
0x3080   : > { %v5689_v47 = vadd.f32 %v8588_v18, %v5688_v19 }
0x3081   : > { %v9575_v39 = vpop.f32.mrf.mxu1 }
0x3082   : > { %9586 = vmatpush3.xpose.msk.msra.mxu1 %vm824_vm2, %v5689_v47 }
0x3083   : > { %v5691_v40 = vpop.f32.mrf.mxu1  ;;  %9590 = vmatprep.subr.mxu1 %v10123_v9 }
0x3085   : > { %v9576_v50 = vpop.f32.mrf.mxu1  ;;  %9588 = vmatmul.mubr.msk.f32.vlgmr.msra.gmra.mxu1 %vm824_vm2, %v5624_v49 }
0x3086   : > { %9591 = vmatpush3.msra.mxu1 %v5754_v41  ;;  %9592 = vmatprep.mubr.msk.f32.mxu1 %vm10124_vm1, %v10123_v9 }
0x3087   : > { %9601 = vmatprep.subr.bf16.mxu1 %v10123_v9 }
0x3145   : > { %v5831_v51 = vpop.f32.mrf.mxu1 }
0x3146   : > { %v5835_v52 = vmul.f32 0.35355338, %v5831_v51  ;;  %v8630_v51 = vld [vmem:[%s11670_s16 + $0x2] ss:$0 sm:$0xff] }
0x3147   : > { %v9589_v53 = vpop.f32.mrf.mxu1 }
0x3148   : > { %v5836_v54 = vsel %vm824_vm2, %v5835_v52, -inf }
0x3149   : > { %5837 = vmax.xlane.f32.xlu0 %v5836_v54 }
0x31d2   : > { %v5838_v55 = vpop.xlane.xlu0 %5837 }
0x31d3   : > { %v5839_v56 = vsub.f32 %v5835_v52, %v5838_v55 }
0x31d5   : > { %v5840_v58 = vmul.f32 1.442695, %v5839_v56 }
0x31d7   : > { %10030 = vpow2.f32 %v5840_v58 }
0x31e4   : > { %v10031_v60 = vpop.eup %10030 }
0x31e5   : > { %v5842_v61 = vsel %vm824_vm2, %v10031_v60, 0.0 }
0x31e6   : > { %5843 = vadd.xlane.f32.xlu1 %v5842_v61 }
0x326f   : > { %v5844_v62 = vpop.xlane.xlu1 %5843 }
0x3270   : > { %10032 = vrcp.f32 %v5844_v62 }
0x327d   : > { %v10033_v63 = vpop.eup %10032 }
0x327e   : > { %v5846_v0 = vmul.f32 %v10033_v63, %v10031_v60 }
0x3280   : > { %9593 = vmatmul.mubr.msk.f32.vlgmr.msra.gmra.mxu1 %vm824_vm2, %v5846_v0 }
0x3281   : > { %9605 = vmatprep.mubr.msk.bf16.mxu1 %vm10124_vm1, %v10123_v9 }
0x3340   : > { %v5916_v3 = vpop.f32.mrf.mxu1 }
0x3341   : > { %v5922_v4 = vpack.c.bf16 %v5916_v3, %v5916_v3  ;;  %v9941_v3 = vld [vmem:[%s11661_s7 + $0xc8] sm:$0xff]  }
0x3342   : > { %v9594_v5 = vpop.f32.mrf.mxu1 }
0x3343   : > { %9598 = vmatmul.mubr.msk.bf16.vlgmr.msra.gmra.mxu0 %vm824_vm2, %v5922_v4  ;;  %v9942_v4 = vld [vmem:[%s11698_s2 + $0xc0] sm:$0xff]  }
0x3344   : > { %9617 = vmatprep.mubr.msk.bf16.mxu0 %vm10124_vm1, %v10123_v9  ;;  %9610 = vmatpush3.bf16.msra.mxu0 %v9936_v34  ;;  %v9943_v5 = vld [vmem:[%s11661_s7 + $0xc0] sm:$0xff]  }
0x3345   : > { %9611 = vmatprep.subr.bf16.mxu0 %v10123_v9 }
0x3348   : > { %9612 = vmatpush3.bf16.msra.mxu0 %v9937_v35  ;;  %v9946_v35 = vld [vmem:[%s11698_s2 + $0xd8] sm:$0xff]  }
0x3349   : > { %9613 = vmatprep.subr.bf16.mxu0 %v10123_v9 }
0x334c   : > { %9614 = vmatpush3.bf16.msra.mxu0 %v9938_v36 }
0x334d   : > { %9615 = vmatprep.subr.bf16.mxu0 %v10123_v9 }
0x3350   : > { %9616 = vmatpush3.bf16.msra.mxu0 %v9939_v37 }
0x3351   : > { %9637 = vmatprep.subr.bf16.mxu0 %v10123_v9 }
0x3403   : > { %v5963_v6 = vpop.f32.mrf.mxu0 }
0x3404   : > { %v5969_v7 = vadd.f32 %v5963_v6, %v5563_v43 }
0x3405   : > { %v9599_v10 = vpop.f32.mrf.mxu0 }
0x3406   : > { %v5970_v11 = vadd.f32 %v5969_v7, %v10942_v57  ;;  %v9934_v57 = vld [vmem:[%s11667_s13 + $0x28] sm:$0xff]  }
0x3407   : > { %v5966_v12 = vpop.f32.mrf.mxu0  ;;  %9602 = vmatpush3.bf16.msra.mxu1 %v9934_v57 }
0x3408   : > { %v11222_v13 = vadd.f32 %v8607_v8, %v5970_v11  ;;  %9603 = vmatprep.subr.bf16.mxu1 %v10123_v9  ;;  %v8638_v11 = vld [vmem:[%s11700_s27 + $0x3] ss:$0 sm:$0xff] }
0x3409   : > { %v9600_v14 = vpop.f32.mrf.mxu0 }
0x340a   : > { %v5984_v15 = vsel %vm602_vm0, %v11222_v13, 0.0 }
0x340b   : > { %5985 = vadd.xlane.f32.xlu0 %v5984_v15  ;;  %9604 = vmatpush3.bf16.msra.mxu1 %v9935_v59 }
0x340c   : > { %9621 = vmatprep.subr.bf16.mxu1 %v10123_v9 }
0x3494   : > { %v5986_v16 = vpop.xlane.xlu0 %5985 }
0x3495   : > { %v5987_v17 = vmul.f32 0.03125, %v5986_v16  ;;  %v9944_v16 = vld [vmem:[%s11699_s5 + $0xc8] sm:$0xff]  }
0x3497   : > { %v5988_v20 = vsub.f32 %v11222_v13, %v5987_v17 }
0x3499   : > { %v5989_v21 = vmul.f32 %v5988_v20, %v5988_v20 }
0x349b   : > { %v5990_v23 = vsel %vm602_vm0, %v5989_v21, 0.0  ;;  %v8663_v21 = vld [vmem:[%s11662_s8 + $0xc] ss:$0 sm:$0xff] }
0x349c   : > { %5991 = vadd.xlane.f32.xlu1 %v5990_v23 }
0x3525   : > { %v5992_v24 = vpop.xlane.xlu1 %5991 }
0x3526   : > { %v5993_v25 = vmul.f32 0.03125, %v5992_v24 }
0x3528   : > { %v5994_v26 = vadd.f32 1e-05, %v5993_v25 }
0x352a   : > { %10034 = vrsqrt.f32 %v5994_v26 }
0x3537   : > { %v10035_v27 = vpop.eup %10034 }
0x3538   : > { %v5996_v29 = vmul.f32 %v10035_v27, %v5988_v20  ;;  %v9945_v20 = vld [vmem:[%s11699_s5 + $0xc0] sm:$0xff]  }
0x353a   : > { %v6003_v31 = vmul.f32 %v8610_v28, %v5996_v29 }
0x353c   : > { %v6010_v32 = vadd.f32 %v8611_v30, %v6003_v31  ;;  %v8654_v30 = vld [vmem:[%s11660_s6 + $0xc] ss:$0 sm:$0xff] }
0x353e   : > { %v6016_v33 = vpack.c.bf16 %v6010_v32, %v6010_v32  ;;  %v8645_v32 = vld [vmem:[%s11702_s4 + $0xc] ss:$0 sm:$0xff] }
0x3540   : > { %9606 = vmatmul.mubr.msk.bf16.vlgmr.msra.gmra.mxu1 %vm602_vm0, %v6016_v33 }
0x3541   : > { %9625 = vmatprep.mubr.msk.bf16.mxu1 %vm10124_vm1, %v10123_v9  ;;  %9622 = vmatpush3.bf16.msra.mxu1 %v9940_v2  ;;  %v8685_v2 = vld [vmem:[%s11660_s6 + $0xd] ss:$0 sm:$0xff] }
0x3542   : > { %9623 = vmatprep.subr.bf16.mxu1 %v10123_v9 }
0x3545   : > { %9624 = vmatpush3.bf16.msra.mxu1 %v9942_v4  ;;  %v8676_v4 = vld [vmem:[%s11702_s4 + $0xd] ss:$0 sm:$0xff] }
0x3546   : > { %9629 = vmatprep.subr.bf16.mxu1 %v10123_v9 }
0x3600   : > { %v6074_v42 = vpop.f32.mrf.mxu1 }
0x3601   : > { %v6075_v43 = vadd.f32 %v8617_v38, %v6074_v42  ;;  %v9947_v42 = vld [vmem:[%s11698_s2 + $0xd0] sm:$0xff]  }
0x3602   : > { %v9607_v44 = vpop.f32.mrf.mxu1 }
0x3603   : > { %v6080_v45 = vmul.f32 %v6075_v43, %v6075_v43  ;;  %v9949_v44 = vld [vmem:[%s11661_s7 + $0xd0] sm:$0xff]  }
0x3604   : > { %v6077_v22 = vpop.f32.mrf.mxu1 }
0x3605   : > { %v6081_v18 = vmul.f32 %v6080_v45, %v6075_v43 }
0x3606   : > { %v9608_v19 = vpop.f32.mrf.mxu1 }
0x3607   : > { %v6082_v46 = vmul.f32 0.044715, %v6081_v18 }
0x3609   : > { %v6083_v47 = vadd.f32 %v6082_v46, %v6075_v43 }
0x360b   : > { %v6084_v48 = vmul.f32 0.7978846, %v6083_v47 }
0x360d   : > { %10036 = vtanh.f32 %v6084_v48 }
0x361a   : > { %v10037_v39 = vpop.eup %10036 }
0x361b   : > { %v6086_v49 = vadd.f32 1.0, %v10037_v39 }
0x361d   : > { %v6087_v40 = vmul.f32 0.5, %v6086_v49 }
0x361f   : > { %v6088_v41 = vmul.f32 %v6087_v40, %v6075_v43  ;;  %v9948_v43 = vld [vmem:[%s11661_s7 + $0xd8] sm:$0xff]  }
0x3621   : > { %v6098_v50 = vpack.c.bf16 %v6088_v41, %v6088_v41 }
0x3623   : > { %9618 = vmatmul.mubr.msk.bf16.vlgmr.msra.gmra.mxu0 %vm2406_vm4, %v6098_v50 }
0x3624   : > { %9641 = vmatprep.mubr.msk.bf16.mxu0 %vm10124_vm1, %v10123_v9  ;;  %9638 = vmatpush3.bf16.msra.mxu0 %v9941_v3 }
0x3625   : > { %9639 = vmatprep.subr.bf16.mxu0 %v10123_v9 }
0x3628   : > { %9640 = vmatpush3.bf16.msra.mxu0 %v9943_v5 }
0x3629   : > { %9650 = vmatprep.subr.mxu0 %v10123_v9 }
0x36e3   : > { %v6168_v52 = vpop.f32.mrf.mxu0 }
0x36e4   : > { %v6169_v53 = vadd.f32 %v8630_v51, %v6168_v52 }
0x36e5   : > { %v9619_v54 = vpop.f32.mrf.mxu0 }
0x36e6   : > { %v11271_v55 = vadd.f32 %v6169_v53, %v11222_v13  ;;  %v8639_v13 = vld [vmem:[%s11701_s22 + $0x3] ss:$0 sm:$0xff] }
0x36e7   : > { %v6171_v56 = vpop.f32.mrf.mxu0 }
0x36e8   : > { %v6179_v58 = vsel %vm602_vm0, %v11271_v55, 0.0 }
0x36e9   : > { %6180 = vadd.xlane.f32.xlu0 %v6179_v58  ;;  %v9620_v60 = vpop.f32.mrf.mxu0 }
0x3772   : > { %v6181_v61 = vpop.xlane.xlu0 %6180 }
0x3773   : > { %v6182_v62 = vmul.f32 0.03125, %v6181_v61  ;;  %v9950_v61 = vld [vmem:[%s11699_s5 + $0xd8] sm:$0xff]  }
0x3775   : > { %v6183_v63 = vsub.f32 %v11271_v55, %v6182_v62 }
0x3777   : > { %v6184_v0 = vmul.f32 %v6183_v63, %v6183_v63 }
0x3779   : > { %v6185_v1 = vsel %vm602_vm0, %v6184_v0, 0.0 }
0x377a   : > { %6186 = vadd.xlane.f32.xlu1 %v6185_v1 }
0x3803   : > { %v6187_v6 = vpop.xlane.xlu1 %6186 }
0x3804   : > { %v6188_v7 = vmul.f32 0.03125, %v6187_v6  ;;  %v8694_v6 = vld [vmem:[%s11662_s8 + $0xd] ss:$0 sm:$0xff] }
0x3806   : > { %v6189_v8 = vadd.f32 1e-05, %v6188_v7 }
0x3808   : > { %10038 = vrsqrt.f32 %v6189_v8 }
0x3815   : > { %v10039_v10 = vpop.eup %10038 }
0x3816   : > { %v6191_v12 = vmul.f32 %v10039_v10, %v6183_v63  ;;  %v9951_v63 = vld [vmem:[%s11699_s5 + $0xd0] sm:$0xff]  }
0x3818   : > { %v6198_v14 = vmul.f32 %v8638_v11, %v6191_v12 }
0x381a   : > { %v6205_v15 = vadd.f32 %v8639_v13, %v6198_v14 }
0x381c   : > { %v11302_v17 = vpack.c.bf16 %v6205_v15, %v6205_v15 }
0x381e   : > { %9626 = vmatmul.mubr.msk.bf16.vlgmr.msra.gmra.mxu1 %vm602_vm0, %v11302_v17  ;;  %9642 = vmatmul.mubr.msk.bf16.vlgmr.msra.gmra.mxu0 %vm602_vm0, %v11302_v17 }
0x381f   : > { %9630 = vmatpush3.bf16.msra.mxu1 %v9944_v16  ;;  %9633 = vmatprep.mubr.msk.bf16.mxu1 %vm10124_vm1, %v10123_v9 }
0x3820   : > { %9631 = vmatprep.subr.bf16.mxu1 %v10123_v9  ;;  %9652 = vmatprep.mubr.msk.f32.mxu0 %vm10124_vm1, %v10123_v9 }
0x3823   : > { %9632 = vmatpush3.bf16.msra.mxu1 %v9945_v20 }
0x3824   : > { %9645 = vmatprep.subr.mxu1 %v10123_v9 }
0x3826   : > { %9634 = vmatmul.mubr.msk.bf16.vlgmr.msra.gmra.mxu1 %vm602_vm0, %v11302_v17 }
0x3827   : > { %9647 = vmatprep.mubr.msk.f32.mxu1 %vm10124_vm1, %v10123_v9 }
0x38de   : > { %v6269_v23 = vpop.f32.mrf.mxu1  ;;  %v6399_v57 = vpop.f32.mrf.mxu0 }
0x38df   : > { %v6400_v59 = vadd.f32 %v8663_v21, %v6399_v57  ;;  %v6270_v36 = vadd.f32 %v8645_v32, %v6269_v23  ;;  %v8701_v32 = vld [vmem:[%s11663_s9 + $0x34] sm:$0xf] }
0x38e0   : > { %v9627_v24 = vpop.f32.mrf.mxu1  ;;  %v9643_v25 = vpop.f32.mrf.mxu0 }
0x38e1   : > { %9651 = vmatpush3.msra.mxu0 %v6400_v59  ;;  %v8670_v25 = vld [vmem:[%s11663_s9 + $0x30] sm:$0xf] }
0x38e2   : > { %v6272_v26 = vpop.f32.mrf.mxu1  ;;  %v6402_v27 = vpop.f32.mrf.mxu0  ;;  %9663 = vmatprep.subr.bf16.mxu0 %v10123_v9 }
0x38e4   : > { %v9628_v28 = vpop.f32.mrf.mxu1  ;;  %v9644_v29 = vpop.f32.mrf.mxu0 }
0x38e5   : > { %v6978_v28 = vsel %vm1350_vm3, %v8670_v25, 0  ;;  %v9952_v29 = vld [vmem:[%s11699_s5 + $0xe8] sm:$0xff]   ;;  %v9962_v25 = vld [vmem:[%s11699_s5 + $0xf8] sm:$0xff]  }
0x38e6   : > { %v6334_v31 = vpop.f32.mrf.mxu1 }
0x38e7   : > { %v6335_v33 = vadd.f32 %v8654_v30, %v6334_v31  ;;  %v9953_v31 = vld [vmem:[%s11699_s5 + $0xe0] sm:$0xff]  }
0x38e8   : > { %v9635_v34 = vpop.f32.mrf.mxu1 }
0x38e9   : > { %9646 = vmatpush3.xpose.msk.msra.mxu1 %vm824_vm2, %v6335_v33  ;;  %v6932_v33 = vsel %vm1350_vm3, %v8701_v32, 0 }
0x38ea   : > { %v6337_v37 = vpop.f32.mrf.mxu1  ;;  %9655 = vmatprep.subr.bf16.mxu1 %v10123_v9 }
0x38ec   : > { %v9636_v38 = vpop.f32.mrf.mxu1  ;;  %9648 = vmatmul.mubr.msk.f32.vlgmr.msra.gmra.mxu1 %vm824_vm2, %v6270_v36 }
0x38ed   : > { %9656 = vmatpush3.bf16.msra.mxu1 %v9946_v35  ;;  %9659 = vmatprep.mubr.msk.bf16.mxu1 %vm10124_vm1, %v10123_v9  ;;  %v9954_v35 = vld [vmem:[%s11698_s2 + $0xe8] sm:$0xff]  }
0x38ee   : > { %9657 = vmatprep.subr.bf16.mxu1 %v10123_v9 }
0x38f1   : > { %9658 = vmatpush3.bf16.msra.mxu1 %v9947_v42  ;;  %v9955_v42 = vld [vmem:[%s11698_s2 + $0xe0] sm:$0xff]  }
0x38f2   : > { %9671 = vmatprep.subr.bf16.mxu1 %v10123_v9 }
0x38f4   : > { %9660 = vmatmul.mubr.msk.bf16.vlgmr.msra.gmra.mxu1 %vm602_vm0, %v11302_v17 }
0x38f5   : > { %9672 = vmatpush3.bf16.msra.mxu1 %v9948_v43  ;;  %9675 = vmatprep.mubr.msk.bf16.mxu1 %vm10124_vm1, %v10123_v9 }
0x38f6   : > { %9673 = vmatprep.subr.bf16.mxu1 %v10123_v9 }
0x38f9   : > { %9674 = vmatpush3.bf16.msra.mxu1 %v9949_v44 }
0x38fa   : > { %9689 = vmatprep.subr.bf16.mxu1 %v10123_v9 }
0x38fc   : > { %9676 = vmatmul.mubr.msk.bf16.vlgmr.msra.gmra.mxu1 %vm602_vm0, %v11302_v17 }
0x38fd   : > { %9691 = vmatprep.mubr.msk.bf16.mxu1 %vm10124_vm1, %v10123_v9  ;;  %9690 = vmatpush3.bf16.msra.mxu1 %v6932_v33 }
0x38fe   : > { %9701 = vmatprep.subr.bf16.mxu1 %v10123_v9 }
0x39ac   : > { %v6477_v45 = vpop.f32.mrf.mxu1 }
0x39ad   : > { %v6481_v22 = vmul.f32 0.35355338, %v6477_v45  ;;  %v9956_v45 = vld [vmem:[%s11661_s7 + $0xe8] sm:$0xff]  }
0x39ae   : > { %v9649_v18 = vpop.f32.mrf.mxu1 }
0x39af   : > { %v6482_v19 = vsel %vm824_vm2, %v6481_v22, -inf  ;;  %v8718_v18 = vld [vmem:[%s11660_s6 + $0xe] ss:$0 sm:$0xff] }
0x39b0   : > { %6483 = vmax.xlane.f32.xlu0 %v6482_v19 }
0x39b4   : > { %v6628_v46 = vpop.f32.mrf.mxu1 }
0x39b5   : > { %v6629_v8 = vadd.f32 %v8676_v4, %v6628_v46  ;;  %v9957_v46 = vld [vmem:[%s11661_s7 + $0xe0] sm:$0xff]  }
0x39b6   : > { %v9661_v47 = vpop.f32.mrf.mxu1 }
0x39b8   : > { %v6631_v48 = vpop.f32.mrf.mxu1 }
0x39ba   : > { %v9662_v39 = vpop.f32.mrf.mxu1 }
0x39bc   : > { %v6758_v49 = vpop.f32.mrf.mxu1 }
0x39bd   : > { %v6759_v11 = vadd.f32 %v8694_v6, %v6758_v49 }
0x39be   : > { %v9677_v40 = vpop.f32.mrf.mxu1 }
0x39c0   : > { %v6761_v41 = vpop.f32.mrf.mxu1 }
0x39c2   : > { %v9678_v50 = vpop.f32.mrf.mxu1 }
0x3a39   : > { %v6484_v51 = vpop.xlane.xlu0 %6483 }
0x3a3a   : > { %v6485_v52 = vsub.f32 %v6481_v22, %v6484_v51 }
0x3a3c   : > { %v6486_v53 = vmul.f32 1.442695, %v6485_v52  ;;  %v8709_v52 = vld [vmem:[%s11702_s4 + $0xe] ss:$0 sm:$0xff] }
0x3a3e   : > { %10040 = vpow2.f32 %v6486_v53 }
0x3a4b   : > { %v10041_v54 = vpop.eup %10040 }
0x3a4c   : > { %v6488_v56 = vsel %vm824_vm2, %v10041_v54, 0.0 }
0x3a4d   : > { %6489 = vadd.xlane.f32.xlu1 %v6488_v56 }
0x3ad6   : > { %v6490_v58 = vpop.xlane.xlu1 %6489 }
0x3ad7   : > { %10042 = vrcp.f32 %v6490_v58 }
0x3ae4   : > { %v10043_v60 = vpop.eup %10042 }
0x3ae5   : > { %v6492_v62 = vmul.f32 %v10043_v60, %v10041_v54 }
0x3ae7   : > { %9653 = vmatmul.mubr.msk.f32.vlgmr.msra.gmra.mxu0 %vm824_vm2, %v6492_v62 }
0x3ae8   : > { %9664 = vmatpush3.bf16.msra.mxu0 %v9950_v61  ;;  %9667 = vmatprep.mubr.msk.bf16.mxu0 %vm10124_vm1, %v10123_v9  ;;  %v8727_v61 = vld [vmem:[%s11662_s8 + $0xe] ss:$0 sm:$0xff] }
0x3ae9   : > { %9665 = vmatprep.subr.bf16.mxu0 %v10123_v9 }
0x3aec   : > { %9666 = vmatpush3.bf16.msra.mxu0 %v9951_v63 }
0x3aed   : > { %9679 = vmatprep.subr.mxu0 %v10123_v9 }
0x3aef   : > { %9668 = vmatmul.mubr.msk.bf16.vlgmr.msra.gmra.mxu0 %vm602_vm0, %v11302_v17 }
0x3af0   : > { %9681 = vmatprep.mubr.msk.f32.mxu0 %vm10124_vm1, %v10123_v9 }
0x3ba7   : > { %v6562_v0 = vpop.f32.mrf.mxu0 }
0x3ba8   : > { %v6568_v30 = vpack.c.bf16 %v6562_v0, %v6562_v0 }
0x3ba9   : > { %v9654_v1 = vpop.f32.mrf.mxu0 }
0x3baf   : > { %v6693_v3 = vpop.f32.mrf.mxu0 }
0x3bb0   : > { %v6694_v5 = vadd.f32 %v8685_v2, %v6693_v3 }
0x3bb1   : > { %v9669_v7 = vpop.f32.mrf.mxu0 }
0x3bb2   : > { %9680 = vmatpush3.xpose.msk.msra.mxu0 %vm824_vm2, %v6694_v5 }
0x3bb3   : > { %v6696_v10 = vpop.f32.mrf.mxu0  ;;  %9684 = vmatprep.subr.mxu0 %v10123_v9 }
0x3bb5   : > { %v9670_v12 = vpop.f32.mrf.mxu0  ;;  %9682 = vmatmul.mubr.msk.f32.vlgmr.msra.gmra.mxu0 %vm824_vm2, %v6629_v8 }
0x3bb6   : > { %9685 = vmatpush3.msra.mxu0 %v6759_v11  ;;  %9686 = vmatprep.mubr.msk.f32.mxu0 %vm10124_vm1, %v10123_v9 }
0x3bb7   : > { %9695 = vmatprep.subr.bf16.mxu0 %v10123_v9 }
0x3c75   : > { %v6836_v13 = vpop.f32.mrf.mxu0 }
0x3c76   : > { %v6840_v14 = vmul.f32 0.35355338, %v6836_v13 }
0x3c77   : > { %v9683_v15 = vpop.f32.mrf.mxu0 }
0x3c78   : > { %v6841_v16 = vsel %vm824_vm2, %v6840_v14, -inf  ;;  %v9958_v15 = vld [vmem:[%s11698_s2 + $0xf8] sm:$0xff]  }
0x3c79   : > { %6842 = vmax.xlane.f32.xlu0 %v6841_v16 }
0x3d02   : > { %v6843_v20 = vpop.xlane.xlu0 %6842 }
0x3d03   : > { %v6844_v21 = vsub.f32 %v6840_v14, %v6843_v20  ;;  %v9959_v20 = vld [vmem:[%s11698_s2 + $0xf0] sm:$0xff]   ;;  %s10067_s2 = scalar_lea.vmem %s10066_s29, 256 }
0x3d04   : > { %p10069_p1 = scmp.lt.s32.totalorder %s10067_s2, %s10061_s1 }
0x3d05   : > { %v6845_v23 = vmul.f32 1.442695, %v6844_v21  ;;  %v9960_v21 = vld [vmem:[%s11661_s7 + $0xf8] sm:$0xff]  }
0x3d06   : > { %p10070_p2 = por %p10069_p1, %p10068_p0 }
0x3d07   : > { %10044 = vpow2.f32 %v6845_v23  ;;  %v9961_v23 = vld [vmem:[%s11661_s7 + $0xf0] sm:$0xff]  }
0x3d08   : > { %p10071_p3 = pnand %p10070_p2, %p10064_p13 }
0x3d14   : > { %v10045_v57 = vpop.eup %10044 }
0x3d15   : > { %v6847_v59 = vsel %vm824_vm2, %v10045_v57, 0.0 }
0x3d16   : > { %6848 = vadd.xlane.f32.xlu1 %v6847_v59 }
0x3d9f   : > { %v6849_v24 = vpop.xlane.xlu1 %6848 }
0x3da0   : > { %10046 = vrcp.f32 %v6849_v24 }
0x3dad   : > { %v10047_v26 = vpop.eup %10046 }
0x3dae   : > { %v6851_v27 = vmul.f32 %v10047_v26, %v10045_v57  ;;  %v8734_v57 = vld [vmem:[%s11663_s9 + $0x38] sm:$0xf] }
0x3daf   : > { %v7383_v59 = vsel %vm1350_vm3, %v8734_v57, 0  ;;  %v9965_v57 = vld [vmem:[%s11667_s13 + $0x30] sm:$0xff]  }
0x3db0   : > { %9687 = vmatmul.mubr.msk.f32.vlgmr.msra.gmra.mxu0 %vm824_vm2, %v6851_v27 }
0x3db1   : > { %9696 = vmatpush3.bf16.msra.mxu0 %v6978_v28  ;;  %9697 = vmatprep.mubr.msk.bf16.mxu0 %vm10124_vm1, %v10123_v9  ;;  %v9963_v28 = vld [vmem:[%s11699_s5 + $0xf0] sm:$0xff]  }
0x3db2   : > { %9709 = vmatprep.subr.bf16.mxu0 %v10123_v9 }
0x3db4   : > { %9698 = vmatmul.mubr.msk.bf16.vlgmr.msra.gmra.mxu0 %vm824_vm2, %v6568_v30 }
0x3db5   : > { %9710 = vmatpush3.bf16.msra.mxu0 %v9952_v29  ;;  %9713 = vmatprep.mubr.msk.bf16.mxu0 %vm10124_vm1, %v10123_v9 }
0x3db6   : > { %9711 = vmatprep.subr.bf16.mxu0 %v10123_v9 }
0x3db9   : > { %9712 = vmatpush3.bf16.msra.mxu0 %v9953_v31 }
0x3dba   : > { %9725 = vmatprep.subr.mxu0 %v10123_v9 }
0x3dbc   : > { %9714 = vmatmul.mubr.msk.bf16.vlgmr.msra.gmra.mxu0 %vm602_vm0, %v11302_v17 }
0x3dbd   : > { %9727 = vmatprep.mubr.msk.f32.mxu0 %vm10124_vm1, %v10123_v9 }
0x3e70   : > { %v6921_v34 = vpop.f32.mrf.mxu0 }
0x3e71   : > { %v6927_v36 = vpack.c.bf16 %v6921_v34, %v6921_v34 }
0x3e72   : > { %v9688_v37 = vpop.f32.mrf.mxu0 }
0x3e73   : > { %9692 = vmatmul.mubr.msk.bf16.vlgmr.msra.gmra.mxu1 %vm824_vm2, %v6927_v36 }
0x3e74   : > { %v11426_v38 = vpop.f32.mrf.mxu0  ;;  %9702 = vmatpush3.bf16.msra.mxu1 %v9954_v35  ;;  %9705 = vmatprep.mubr.msk.bf16.mxu1 %vm10124_vm1, %v10123_v9 }
0x3e75   : > { %9703 = vmatprep.subr.bf16.mxu1 %v10123_v9 }
0x3e76   : > { %v9699_v43 = vpop.f32.mrf.mxu0 }
0x3e78   : > { %v7017_v44 = vpop.f32.mrf.mxu0  ;;  %9704 = vmatpush3.bf16.msra.mxu1 %v9955_v42 }
0x3e79   : > { %9717 = vmatprep.subr.bf16.mxu1 %v10123_v9 }
0x3e7a   : > { %v9700_v22 = vpop.f32.mrf.mxu0 }
0x3e7b   : > { %9706 = vmatmul.mubr.msk.bf16.vlgmr.msra.gmra.mxu1 %vm602_vm0, %v11302_v17 }
0x3e7c   : > { %v7144_v19 = vpop.f32.mrf.mxu0  ;;  %9718 = vmatpush3.bf16.msra.mxu1 %v9956_v45  ;;  %9721 = vmatprep.mubr.msk.bf16.mxu1 %vm10124_vm1, %v10123_v9 }
0x3e7d   : > { %v7145_v47 = vadd.f32 %v8718_v18, %v7144_v19  ;;  %9719 = vmatprep.subr.bf16.mxu1 %v10123_v9  ;;  %v8741_v19 = vld [vmem:[%s11702_s4 + $0xf] ss:$0 sm:$0xff]  ;;  %s11613_s4 = scalar_lea.hbm %s11673_s19, %s8803_s28 }
0x3e7e   : > { %v9715_v48 = vpop.f32.mrf.mxu0 }
0x3e7f   : > { %9726 = vmatpush3.xpose.msk.msra.mxu0 %vm824_vm2, %v7145_v47  ;;  %v8759_v47 = vld [vmem:[%s11662_s8 + $0xf] ss:$0 sm:$0xff] }
0x3e80   : > { %v7147_v39 = vpop.f32.mrf.mxu0  ;;  %9720 = vmatpush3.bf16.msra.mxu1 %v9957_v46  ;;  %9730 = vmatprep.subr.mxu0 %v10123_v9 }
0x3e81   : > { %9735 = vmatprep.subr.bf16.mxu1 %v10123_v9 }
0x3e82   : > { %v9716_v49 = vpop.f32.mrf.mxu0 }
0x3e83   : > { %9722 = vmatmul.mubr.msk.bf16.vlgmr.msra.gmra.mxu1 %vm602_vm0, %v11302_v17 }
0x3e84   : > { %9737 = vmatprep.mubr.msk.bf16.mxu1 %vm10124_vm1, %v10123_v9  ;;  %9736 = vmatpush3.bf16.msra.mxu1 %v7383_v59 }
0x3e85   : > { %9749 = vmatprep.subr.bf16.mxu1 %v10123_v9 }
0x3f33   : > { %v11456_v40 = vpop.f32.mrf.mxu1 }
0x3f34   : > { %v7015_v37 = vadd.f32 %v11426_v38, %v11456_v40 }
0x3f35   : > { %v9693_v41 = vpop.f32.mrf.mxu1 }
0x3f37   : > { %v6971_v50 = vpop.f32.mrf.mxu1 }
0x3f39   : > { %v9694_v51 = vpop.f32.mrf.mxu1 }
0x3f3b   : > { %v7079_v53 = vpop.f32.mrf.mxu1 }
0x3f3c   : > { %v7080_v54 = vadd.f32 %v8709_v52, %v7079_v53 }
0x3f3d   : > { %v9707_v56 = vpop.f32.mrf.mxu1 }
0x3f3e   : > { %9728 = vmatmul.mubr.msk.f32.vlgmr.msra.gmra.mxu0 %vm824_vm2, %v7080_v54 }
0x3f3f   : > { %v7082_v58 = vpop.f32.mrf.mxu1  ;;  %9732 = vmatprep.mubr.msk.f32.mxu0 %vm10124_vm1, %v10123_v9 }
0x3f41   : > { %v9708_v60 = vpop.f32.mrf.mxu1 }
0x3f43   : > { %v7209_v62 = vpop.f32.mrf.mxu1 }
0x3f44   : > { %v7210_v63 = vadd.f32 %v8727_v61, %v7209_v62 }
0x3f45   : > { %v9723_v0 = vpop.f32.mrf.mxu1 }
0x3f46   : > { %9731 = vmatpush3.msra.mxu0 %v7210_v63  ;;  %v8766_v0 = vld [vmem:[%s11663_s9 + $0x3c] sm:$0xf] }
0x3f47   : > { %v7212_v1 = vpop.f32.mrf.mxu1  ;;  %9741 = vmatprep.subr.bf16.mxu0 %v10123_v9 }
0x3f48   : > { %v7789_v1 = vsel %vm1350_vm3, %v8766_v0, 0 }
0x3f49   : > { %v9724_v2 = vpop.f32.mrf.mxu1 }
0x3ffe   : > { %v7287_v3 = vpop.f32.mrf.mxu0 }
0x3fff   : > { %v7291_v4 = vmul.f32 0.35355338, %v7287_v3 }
0x4000   : > { %v9729_v5 = vpop.f32.mrf.mxu0 }
0x4001   : > { %v7292_v6 = vsel %vm824_vm2, %v7291_v4, -inf }
0x4002   : > { %7293 = vmax.xlane.f32.xlu0 %v7292_v6 }
0x408b   : > { %v7294_v7 = vpop.xlane.xlu0 %7293 }
0x408c   : > { %v7295_v8 = vsub.f32 %v7291_v4, %v7294_v7  ;;  %v8769_v7 = vld [vmem:[%s11664_s10 + $0x3] ss:$0 sm:$0xff] }
0x408e   : > { %v7296_v10 = vmul.f32 1.442695, %v7295_v8 }
0x4090   : > { %10048 = vpow2.f32 %v7296_v10 }
0x409d   : > { %v10049_v11 = vpop.eup %10048 }
0x409e   : > { %v7298_v12 = vsel %vm824_vm2, %v10049_v11, 0.0 }
0x409f   : > { %7299 = vadd.xlane.f32.xlu1 %v7298_v12 }
0x4128   : > { %v7300_v13 = vpop.xlane.xlu1 %7299 }
0x4129   : > { %10050 = vrcp.f32 %v7300_v13 }
0x4136   : > { %v10051_v14 = vpop.eup %10050 }
0x4137   : > { %v7302_v16 = vmul.f32 %v10051_v14, %v10049_v11 }
0x4139   : > { %9733 = vmatmul.mubr.msk.f32.vlgmr.msra.gmra.mxu0 %vm824_vm2, %v7302_v16 }
0x413a   : > { %9742 = vmatpush3.bf16.msra.mxu0 %v9958_v15  ;;  %9745 = vmatprep.mubr.msk.bf16.mxu0 %vm10124_vm1, %v10123_v9 }
0x413b   : > { %9743 = vmatprep.subr.bf16.mxu0 %v10123_v9 }
0x413e   : > { %9744 = vmatpush3.bf16.msra.mxu0 %v9959_v20 }
0x413f   : > { %9757 = vmatprep.subr.bf16.mxu0 %v10123_v9 }
0x4141   : > { %9746 = vmatmul.mubr.msk.bf16.vlgmr.msra.gmra.mxu0 %vm602_vm0, %v11302_v17 }
0x4142   : > { %9758 = vmatpush3.bf16.msra.mxu0 %v9960_v21  ;;  %9761 = vmatprep.mubr.msk.bf16.mxu0 %vm10124_vm1, %v10123_v9 }
0x4143   : > { %9759 = vmatprep.subr.bf16.mxu0 %v10123_v9 }
0x4146   : > { %9760 = vmatpush3.bf16.msra.mxu0 %v9961_v23 }
0x4147   : > { %9775 = vmatprep.subr.bf16.mxu0 %v10123_v9 }
0x4149   : > { %9762 = vmatmul.mubr.msk.bf16.vlgmr.msra.gmra.mxu0 %vm602_vm0, %v11302_v17 }
0x414a   : > { %9777 = vmatprep.mubr.msk.bf16.mxu0 %vm10124_vm1, %v10123_v9  ;;  %9776 = vmatpush3.bf16.msra.mxu0 %v7789_v1 }
0x414b   : > { %9789 = vmatprep.subr.bf16.mxu0 %v10123_v9 }
0x41f9   : > { %v7372_v24 = vpop.f32.mrf.mxu0 }
0x41fa   : > { %v7378_v26 = vpack.c.bf16 %v7372_v24, %v7372_v24 }
0x41fb   : > { %v9734_v27 = vpop.f32.mrf.mxu0 }
0x41fc   : > { %9738 = vmatmul.mubr.msk.bf16.vlgmr.msra.gmra.mxu1 %vm824_vm2, %v7378_v26  ;;  %v8772_v27 = vld [vmem:[%s11665_s11 + $0x3] ss:$0 sm:$0xff] }
0x41fd   : > { %9750 = vmatpush3.bf16.msra.mxu1 %v9962_v25  ;;  %9753 = vmatprep.mubr.msk.bf16.mxu1 %vm10124_vm1, %v10123_v9 }
0x41fe   : > { %9751 = vmatprep.subr.bf16.mxu1 %v10123_v9 }
0x4201   : > { %v7485_v29 = vpop.f32.mrf.mxu0  ;;  %9752 = vmatpush3.bf16.msra.mxu1 %v9963_v28 }
0x4202   : > { %9765 = vmatprep.subr.mxu1 %v10123_v9  ;;  %v7486_v48 = vadd.f32 %v8741_v19, %v7485_v29  ;;  %v8773_v29 = vld [vmem:[%s11666_s12 + $0x3] ss:$0 sm:$0xff] }
0x4203   : > { %v9747_v30 = vpop.f32.mrf.mxu0 }
0x4204   : > { %9754 = vmatmul.mubr.msk.bf16.vlgmr.msra.gmra.mxu1 %vm602_vm0, %v11302_v17  ;;  %v8750_v17 = vld [vmem:[%s11660_s6 + $0xf] ss:$0 sm:$0xff] }
0x4205   : > { %v7488_v31 = vpop.f32.mrf.mxu0  ;;  %9767 = vmatprep.mubr.msk.f32.mxu1 %vm10124_vm1, %v10123_v9 }
0x4207   : > { %v9748_v32 = vpop.f32.mrf.mxu0 }
0x4209   : > { %v7615_v33 = vpop.f32.mrf.mxu0 }
0x420a   : > { %v7616_v49 = vadd.f32 %v8759_v47, %v7615_v33  ;;  %v9966_v33 = vld [vmem:[%s11669_s15 + $0x78] sm:$0xff]  }
0x420b   : > { %v9763_v34 = vpop.f32.mrf.mxu0 }
0x420c   : > { %v9967_v34 = vld [vmem:[%s11669_s15 + $0x70] sm:$0xff]  }
0x420d   : > { %v7618_v35 = vpop.f32.mrf.mxu0 }
0x420e   : > { %v9968_v35 = vld [vmem:[%s11669_s15 + $0x68] sm:$0xff]  }
0x420f   : > { %v9764_v36 = vpop.f32.mrf.mxu0 }
0x4210   : > { %v9969_v36 = vld [vmem:[%s11669_s15 + $0x60] sm:$0xff]  }
0x42bc   : > { %v7419_v42 = vpop.f32.mrf.mxu1 }
0x42bd   : > { %v7425_v43 = vadd.f32 %v7419_v42, %v7015_v37  ;;  %v8779_v37 = vld [vmem:[%s11668_s14 + $0x3] ss:$0 sm:$0xff] }
0x42be   : > { %v9739_v44 = vpop.f32.mrf.mxu1 }
0x42c0   : > { %v7422_v45 = vpop.f32.mrf.mxu1 }
0x42c2   : > { %v9740_v22 = vpop.f32.mrf.mxu1 }
0x42c4   : > { %v7550_v18 = vpop.f32.mrf.mxu1 }
0x42c5   : > { %v7551_v46 = vadd.f32 %v8750_v17, %v7550_v18 }
0x42c6   : > { %v9755_v38 = vpop.f32.mrf.mxu1 }
0x42c7   : > { %9766 = vmatpush3.xpose.msk.msra.mxu1 %vm824_vm2, %v7551_v46 }
0x42c8   : > { %v7553_v39 = vpop.f32.mrf.mxu1  ;;  %9770 = vmatprep.subr.mxu1 %v10123_v9 }
0x42ca   : > { %v9756_v40 = vpop.f32.mrf.mxu1  ;;  %9768 = vmatmul.mubr.msk.f32.vlgmr.msra.gmra.mxu1 %vm824_vm2, %v7486_v48 }
0x42cb   : > { %9771 = vmatpush3.msra.mxu1 %v7616_v49  ;;  %9772 = vmatprep.mubr.msk.f32.mxu1 %vm10124_vm1, %v10123_v9 }
0x42cc   : > { %9781 = vmatprep.subr.bf16.mxu1 %v10123_v9 }
0x438a   : > { %v7693_v41 = vpop.f32.mrf.mxu1 }
0x438b   : > { %v7697_v50 = vmul.f32 0.35355338, %v7693_v41  ;;  %v9970_v41 = vld [vmem:[%s11671_s17 + $0x8] sm:$0xff]  }
0x438c   : > { %v9769_v51 = vpop.f32.mrf.mxu1 }
0x438d   : > { %v7698_v52 = vsel %vm824_vm2, %v7697_v50, -inf  ;;  %v8792_v51 = vld [vmem:[%s11670_s16 + $0x3] ss:$0 sm:$0xff] }
0x438e   : > { %7699 = vmax.xlane.f32.xlu0 %v7698_v52 }
0x4417   : > { %v7700_v53 = vpop.xlane.xlu0 %7699 }
0x4418   : > { %v7701_v54 = vsub.f32 %v7697_v50, %v7700_v53  ;;  %v9971_v50 = vld [vmem:[%s11671_s17] sm:$0xff]  }
0x441a   : > { %v7702_v56 = vmul.f32 1.442695, %v7701_v54 }
0x441c   : > { %10052 = vpow2.f32 %v7702_v56 }
0x4429   : > { %v10053_v58 = vpop.eup %10052 }
0x442a   : > { %v7704_v60 = vsel %vm824_vm2, %v10053_v58, 0.0 }
0x442b   : > { %7705 = vadd.xlane.f32.xlu1 %v7704_v60 }
0x44b4   : > { %v7706_v61 = vpop.xlane.xlu1 %7705 }
0x44b5   : > { %10054 = vrcp.f32 %v7706_v61 }
0x44c2   : > { %v10055_v62 = vpop.eup %10054 }
0x44c3   : > { %v7708_v63 = vmul.f32 %v10055_v62, %v10053_v58 }
0x44c5   : > { %9773 = vmatmul.mubr.msk.f32.vlgmr.msra.gmra.mxu1 %vm824_vm2, %v7708_v63 }
0x44c6   : > { %9785 = vmatprep.mubr.msk.bf16.mxu1 %vm10124_vm1, %v10123_v9 }
0x4585   : > { %v7778_v2 = vpop.f32.mrf.mxu1 }
0x4586   : > { %v7784_v3 = vpack.c.bf16 %v7778_v2, %v7778_v2 }
0x4587   : > { %v9774_v4 = vpop.f32.mrf.mxu1 }
0x4588   : > { %9778 = vmatmul.mubr.msk.bf16.vlgmr.msra.gmra.mxu0 %vm824_vm2, %v7784_v3 }
0x4589   : > { %9797 = vmatprep.mubr.msk.bf16.mxu0 %vm10124_vm1, %v10123_v9  ;;  %9790 = vmatpush3.bf16.msra.mxu0 %v9966_v33 }
0x458a   : > { %9791 = vmatprep.subr.bf16.mxu0 %v10123_v9 }
0x458d   : > { %9792 = vmatpush3.bf16.msra.mxu0 %v9967_v34 }
0x458e   : > { %9793 = vmatprep.subr.bf16.mxu0 %v10123_v9 }
0x4591   : > { %9794 = vmatpush3.bf16.msra.mxu0 %v9968_v35 }
0x4592   : > { %9795 = vmatprep.subr.bf16.mxu0 %v10123_v9 }
0x4595   : > { %9796 = vmatpush3.bf16.msra.mxu0 %v9969_v36 }
0x4648   : > { %v7825_v5 = vpop.f32.mrf.mxu0 }
0x4649   : > { %v7831_v6 = vadd.f32 %v7825_v5, %v7425_v43 }
0x464a   : > { %v9779_v8 = vpop.f32.mrf.mxu0 }
0x464b   : > { %v7832_v10 = vadd.f32 %v7831_v6, %v11271_v55  ;;  %v9964_v55 = vld [vmem:[%s11667_s13 + $0x38] sm:$0xff]  }
0x464c   : > { %v7828_v11 = vpop.f32.mrf.mxu0  ;;  %9782 = vmatpush3.bf16.msra.mxu1 %v9964_v55 }
0x464d   : > { %v11551_v12 = vadd.f32 %v8769_v7, %v7832_v10  ;;  %9783 = vmatprep.subr.bf16.mxu1 %v10123_v9 }
0x464e   : > { %v9780_v13 = vpop.f32.mrf.mxu0 }
0x464f   : > { %v7846_v14 = vsel %vm602_vm0, %v11551_v12, 0.0 }
0x4650   : > { %7847 = vadd.xlane.f32.xlu0 %v7846_v14  ;;  %9784 = vmatpush3.bf16.msra.mxu1 %v9965_v57 }
0x4651   : > { %9801 = vmatprep.subr.bf16.mxu1 %v10123_v9 }
0x46d9   : > { %v7848_v15 = vpop.xlane.xlu0 %7847 }
0x46da   : > { %v7849_v16 = vmul.f32 0.03125, %v7848_v15 }
0x46dc   : > { %v7850_v20 = vsub.f32 %v11551_v12, %v7849_v16 }
0x46de   : > { %v7851_v21 = vmul.f32 %v7850_v20, %v7850_v20 }
0x46e0   : > { %v7852_v23 = vsel %vm602_vm0, %v7851_v21, 0.0 }
0x46e1   : > { %7853 = vadd.xlane.f32.xlu1 %v7852_v23 }
0x476a   : > { %v7854_v59 = vpop.xlane.xlu1 %7853 }
0x476b   : > { %v7855_v24 = vmul.f32 0.03125, %v7854_v59 }
0x476d   : > { %v7856_v25 = vadd.f32 1e-05, %v7855_v24 }
0x476f   : > { %10056 = vrsqrt.f32 %v7856_v25 }
0x477c   : > { %v10057_v26 = vpop.eup %10056 }
0x477d   : > { %v7858_v28 = vmul.f32 %v10057_v26, %v7850_v20 }
0x477f   : > { %v7865_v30 = vmul.f32 %v8772_v27, %v7858_v28 }
0x4781   : > { %v7872_v31 = vadd.f32 %v8773_v29, %v7865_v30 }
0x4783   : > { %v7878_v32 = vpack.c.bf16 %v7872_v31, %v7872_v31 }
0x4785   : > { %9786 = vmatmul.mubr.msk.bf16.vlgmr.msra.gmra.mxu1 %vm602_vm0, %v7878_v32 }
0x4786   : > { %9805 = vmatprep.mubr.msk.bf16.mxu1 %vm10124_vm1, %v10123_v9  ;;  %9802 = vmatpush3.bf16.msra.mxu1 %v9970_v41 }
0x4787   : > { %9803 = vmatprep.subr.bf16.mxu1 %v10123_v9  ;;  %v8798_v9 = vld [vmem:[%s11672_s18] ss:$0 sm:$0xff] }
0x478a   : > { %9804 = vmatpush3.bf16.msra.mxu1 %v9971_v50 }
0x4845   : > { %v7936_v42 = vpop.f32.mrf.mxu1 }
0x4846   : > { %v7937_v43 = vadd.f32 %v8779_v37, %v7936_v42 }
0x4847   : > { %v9787_v44 = vpop.f32.mrf.mxu1 }
0x4848   : > { %v7942_v45 = vmul.f32 %v7937_v43, %v7937_v43 }
0x4849   : > { %v7939_v22 = vpop.f32.mrf.mxu1 }
0x484a   : > { %v7943_v17 = vmul.f32 %v7942_v45, %v7937_v43 }
0x484b   : > { %v9788_v18 = vpop.f32.mrf.mxu1 }
0x484c   : > { %v7944_v19 = vmul.f32 0.044715, %v7943_v17 }
0x484e   : > { %v7945_v46 = vadd.f32 %v7944_v19, %v7937_v43 }
0x4850   : > { %v7946_v47 = vmul.f32 0.7978846, %v7945_v46 }
0x4852   : > { %10058 = vtanh.f32 %v7946_v47 }
0x485f   : > { %v10059_v38 = vpop.eup %10058 }
0x4860   : > { %v7948_v48 = vadd.f32 1.0, %v10059_v38 }
0x4862   : > { %v7949_v39 = vmul.f32 0.5, %v7948_v48 }
0x4864   : > { %v7950_v49 = vmul.f32 %v7949_v39, %v7937_v43 }
0x4866   : > { %v7960_v40 = vpack.c.bf16 %v7950_v49, %v7950_v49 }
0x4868   : > { %9798 = vmatmul.mubr.msk.bf16.vlgmr.msra.gmra.mxu0 %vm2406_vm4, %v7960_v40 }
0x4928   : > { %v8030_v52 = vpop.f32.mrf.mxu0 }
0x4929   : > { %v8031_v53 = vadd.f32 %v8792_v51, %v8030_v52 }
0x492a   : > { %v9799_v54 = vpop.f32.mrf.mxu0 }
0x492b   : > { %v8036_v56 = vadd.f32 %v8031_v53, %v11551_v12 }
0x492c   : > { %v8033_v58 = vpop.f32.mrf.mxu0 }
0x492d   : > { %v8041_v60 = vpack.c.bf16 %v8036_v56, %v8036_v56 }
0x492e   : > { %v9800_v61 = vpop.f32.mrf.mxu0 }
0x492f   : > { %9806 = vmatmul.mubr.msk.bf16.vlgmr.msra.gmra.mxu1 %vm602_vm0, %v8041_v60 }
0x49ef   : > { %v8098_v62 = vpop.f32.mrf.mxu1 }
0x49f0   : > { %v8099_v63 = vadd.f32 %v8798_v9, %v8098_v62 }
0x49f1   : > { %v9807_v0 = vpop.f32.mrf.mxu1 }
0x49f2   : > { %8105 = vst.msk [vmem:[%s593_s20] sm:$0xff] %vm8104_vm5, %v8099_v63 }
0x49f3   : > { %v8101_v1 = vpop.f32.mrf.mxu1 }
0x49f4   : > { %10074 = shalt.err (!%p10071_p3)
}
0x49f5   : > { %s10075_s28 = scalar_lea.hbm %s11613_s4, 128  ;;  %s10079_s26 = scalar_lea.hbm %s11673_s19, 256 }
0x49f6   : > { %p10076_p4 = scmp.ne.s32.totalorder %s11613_s4, %s10075_s28  ;;  %p10080_p9 = scmp.lt.s32.totalorder %s11613_s4, %s11673_s19 }
0x49f7   : > { %p10081_p10 = scmp.lt.s32.totalorder %s10079_s26, %s10075_s28 }
0x49f8   : > { %p10077_p7 = pnand %p10076_p4, %p10264_p5 }
0x49f9   : > { %p10082_p11 = por %p10081_p10, %p10080_p9 }
0x49fa   : > { %p10078_p8 = pneg %p10077_p7 }
0x49fc   : > { %p10083_p12 = pnand %p10082_p11, %p10078_p8 }
0x49fe   : > { %10086 = shalt.err (!%p10083_p12)
}
0x49ff   : > { %9809 = dma.vmem_to_hbm [thread:$0]  (%p10264_p5), %s11615_s25, 128, %s11613_s4, %s8107_s0   ;;  %v9808_v2 = vpop.f32.mrf.mxu1 }
0x4a00 PF: > { %s11703_s1 = sld [smem:[#allocation5_spill]]  ;;  %p9815_p13 = scmp.ge.s32.totalorder %s10121_s21, 2 }
0x4a02   : > { %p9812_p0 = pnand %p9815_p13, %p10268_p6 }
0x4a04   : > { %p9813_p1 = pneg %p9812_p0 }
0x4a06   : > { %s8132_s2 = sand.u32 1, %s11703_s1  }
0x4a07   : > { %s8133_s5 = scalar_lea.sflag [#allocation3], %s8132_s2 }
0x4a08   : > { %10104 = dma.done.wait (%p9813_p1), %s8133_s5, 128  }
0x4a09   : > { %10106 = vsyncadd (%p9813_p1), %s8133_s5, 4294967168  ;;  %s11705_s21 = sld [smem:[#allocation7_spill]]  ;;  %s11708_s0 = smov %s10113_s30 }
0x4a0a   : > { %s11706_s28 = sld [smem:[#allocation6_spill]] }
0x4a0b   : > { %s11707_s20 = sld [smem:[#allocation8_spill]] }
0x4a0f   : > { %p29_p2 = scmp.ge.s32.totalorder %s11705_s21, 4  }
0x4a10   : > { %s11709_s30 = smov %s11706_s28 }
0x4a11   :  { %31 = sbr.rel (!%p29_p2) target bundleno = 10 (0xa), region = 263 }
0x4a16   :  { %8138 = vsyncpa [#allocation3], 1 }
0x4a17   :  { %8140 = vsyncpa [#allocation3 + $0x1], 1 }

</bundles_post_ra>
